<compile_context>
chip_gen: v7x
topology: tpu7x:2x2x1
jax: 0.10.0
libtpu: 0.0.40
codegen_flags: <defaults>
</compile_context>

<pallas_src>
import functools

import jax
import jax.numpy as jnp
import numpy as np
from jax import lax
from jax.experimental import pallas as pl
from jax.experimental.pallas import tpu as pltpu


def _round_up(x, m):
    return (x + m - 1) // m * m


def _l2_normalize(x, axis):
    # torch F.normalize: x / max(||x||_2, 1e-12)  (rsqrt form, same clamp)
    ss = jnp.sum(x * x, axis=axis, keepdims=True)
    return x * lax.rsqrt(jnp.maximum(ss, 1e-24))


# --------------------------------------------------------------------------
# Pallas kernel: one batch tile of the AVENet head, fully fused per batch row.
# --------------------------------------------------------------------------
def _avenet_head_kernel(img_ref, audmat_ref, audself_ref,
                        a_ref, pos_ref, neg_ref, logits_ref, a0ref_ref,
                        *, epsilon, epsilon2, inv_tau, inv_logit_scale,
                        n_batch, tri_map):
    # img_ref     : (TB, S, C)  bf16 L2-normalized image features for this tile
    # audmat_ref  : (Bp, C)     bf16 pooled+normalized audio vectors; row 0 is a
    #                           zero pad so audio sample k sits in row k+1 (this
    #                           lines A0_f up with the packed logits columns)
    # audself_ref : (TB, C)     bf16 own audio vector per image row
    # a/pos/neg   : (TB, S)     f32 outputs (flattened spatial)
    # logits_ref  : (TB, Bp)    f32 packed [sim1 | A0_f (B cols) | sim2 | pad]/0.07
    # a0ref_ref   : (TB, Bp)    f32 max_s A0 (audio columns shifted by +1)
    i = pl.program_id(0)
    TB = img_ref.shape[0]
    Bp = audmat_ref.shape[0]

    audmat = audmat_ref[...]                                     # (Bp, C) bf16
    # Loop-invariant iota, hoisted (JAX does not CSE broadcasts).
    lane = lax.broadcasted_iota(jnp.int32, (1, Bp), 1)           # (1, Bp)
    base = i * TB + 1            # +1: audio sample k lives in column k+1

    for t in range(TB):          # small, unrolled; each row consumed in place
        img_t = img_ref[t]                                       # (S, C) bf16

        # A0 row: (S, C) x (C, Bp) bf16 MXU matmul, f32 accumulation.  The RHS
        # `audmat` is loop-invariant, so its MXU weight push is hoisted.
        a0 = lax.dot_general(img_t, audmat, (((1,), (1,)), ((), ())),
                             preferred_element_type=jnp.float32)  # (S, Bp) f32

        # A row: similarity with the sample's own audio, as a tiny MXU matvec
        # producing a lane-dense (1, S) row (cheaper than a one-hot select +
        # lane reduce over the (S, Bp) tile; MXU has plenty of slack here).
        A_row = lax.dot_general(audself_ref[pl.ds(t, 1), :], img_t,
                                (((1,), (1,)), ((), ())),
                                preferred_element_type=jnp.float32)  # (1, S)

        pos_row = jax.nn.sigmoid((A_row - epsilon) * inv_tau)        # (1, S)
        if tri_map:
            neg_row = 1.0 - jax.nn.sigmoid((A_row - epsilon2) * inv_tau)
        else:
            neg_row = 1.0 - pos_row

        # Per-audio-column statistics over the spatial axis (all f32: keeps the
        # padded columns' denominators tiny-but-nonzero -> no NaN before slice).
        pos_all = jax.nn.sigmoid((a0 - epsilon) * inv_tau)           # (S, Bp)
        num = jnp.sum(pos_all * a0, axis=0, keepdims=True)           # (1, Bp)
        den = jnp.sum(pos_all, axis=0, keepdims=True)                # (1, Bp)
        d_col = base + t                                             # diag column
        mask_row = jnp.where(lane == d_col, -99.0, 1.0)              # 1 - 100*eye
        a0f = num / den * mask_row                                   # (1, Bp)

        sim1 = jnp.sum(pos_row * A_row) / jnp.sum(pos_row)           # scalar
        sim2 = jnp.sum(neg_row * A_row) / jnp.sum(neg_row)           # scalar

        # Lane-dense packed logits row: [sim1, A0_f(1..B), sim2, ...] / 0.07.
        logits_row = jnp.where(lane == 0, sim1, a0f)
        logits_row = jnp.where(lane == (n_batch + 1), sim2, logits_row)

        a_ref[pl.ds(t, 1), :] = A_row
        pos_ref[pl.ds(t, 1), :] = pos_row
        neg_ref[pl.ds(t, 1), :] = neg_row
        logits_ref[pl.ds(t, 1), :] = logits_row * inv_logit_scale
        a0ref_ref[pl.ds(t, 1), :] = jnp.max(a0, axis=0, keepdims=True)


# --------------------------------------------------------------------------
# Wrapper: layout plumbing (NCHW <-> kernel layout), audio head, pallas_call.
# --------------------------------------------------------------------------
def avenet_forward(img_feat_nchw, aud_feat_nchw, *, epsilon=0.65, epsilon2=0.4,
                   tau=0.03, tri_map=True, use_neg=True, tile_b=16,
                   vmem_limit_bytes=32 * 1024 * 1024):
    """AVENet.forward from the backbone feature maps onwards.  Returns
    (A, logits, Pos, Neg, A0_ref) with the same shapes as the torch module."""
    B, C, H, W = img_feat_nchw.shape
    Ba, Ca, Ha, Wa = aud_feat_nchw.shape
    assert (B, C) == (Ba, Ca)
    S = H * W
    f32 = jnp.float32

    TB = tile_b
    assert TB % 8 == 0, "batch tile must be a multiple of 8 (sublane rule)"
    Bpad = _round_up(B, TB)                       # image batch padded to tiles
    # Lane axis: needs B+2 columns for [sim1 | A0_f | sim2]; keep a 128-multiple.
    Bp = _round_up(max(B + 2, Bpad + 1), 128)

    # ---- audio head (tiny) in the wrapper: AdaptiveMaxPool2d + L2 norm -------
    aud_pool = jnp.max(aud_feat_nchw.astype(f32).reshape(B, C, Ha * Wa), axis=-1)
    aud_own = _l2_normalize(aud_pool, axis=-1).astype(jnp.bfloat16)      # (B, C)
    # Column-shifted audio matrix: zero row 0, audio k -> row k+1, pad to Bp.
    aud_mat = jnp.pad(aud_own, ((1, Bp - B - 1), (0, 0)))                # (Bp, C)
    aud_own = jnp.pad(aud_own, ((0, Bpad - B), (0, 0)))                  # (Bpad, C)

    # ---- image features: normalize over channels, NCHW -> (Bpad, S, C) bf16 --
    img_n = _l2_normalize(img_feat_nchw.astype(f32), axis=1)             # (B,C,H,W)
    img_n = jnp.transpose(img_n, (0, 2, 3, 1)).reshape(B, S, C).astype(jnp.bfloat16)
    img_n = jnp.pad(img_n, ((0, Bpad - B), (0, 0), (0, 0)))              # (Bpad,S,C)

    kernel = functools.partial(
        _avenet_head_kernel, epsilon=float(epsilon), epsilon2=float(epsilon2),
        inv_tau=float(1.0 / tau), inv_logit_scale=float(1.0 / 0.07),
        n_batch=int(B), tri_map=bool(tri_map))

    out_shape = (
        jax.ShapeDtypeStruct((Bpad, S), f32),     # A   (flattened spatial)
        jax.ShapeDtypeStruct((Bpad, S), f32),     # Pos
        jax.ShapeDtypeStruct((Bpad, S), f32),     # Neg
        jax.ShapeDtypeStruct((Bpad, Bp), f32),    # packed logits block
        jax.ShapeDtypeStruct((Bpad, Bp), f32),    # A0_ref block (cols shifted +1)
    )
    row_spec = pl.BlockSpec((TB, S), lambda i: (i, 0))
    col_spec = pl.BlockSpec((TB, Bp), lambda i: (i, 0))

    A, Pos, Neg, logits_blk, a0ref_blk = pl.pallas_call(
        kernel,
        out_shape=out_shape,
        grid=(Bpad // TB,),
        in_specs=[
            pl.BlockSpec((TB, S, C), lambda i: (i, 0, 0)),   # image tile (streamed)
            pl.BlockSpec((Bp, C), lambda i: (0, 0)),          # audio matrix (resident)
            pl.BlockSpec((TB, C), lambda i: (i, 0)),          # own audio per row
        ],
        out_specs=(row_spec, row_spec, row_spec, col_spec, col_spec),
        compiler_params=pltpu.CompilerParams(
            dimension_semantics=("parallel",),
            vmem_limit_bytes=vmem_limit_bytes),
    )(img_n, aud_mat, aud_own)

    # Back to torch shapes; strip batch / lane padding.
    A = A[:B].reshape(B, 1, H, W)
    Pos = Pos[:B].reshape(B, 1, H, W)
    Neg = Neg[:B].reshape(B, 1, H, W)
    A0_ref = a0ref_blk[:B, 1:B + 1]
    n_logit_cols = B + 2 if use_neg else B + 1
    logits = logits_blk[:B, :n_logit_cols]
    return A, logits, Pos, Neg, A0_ref


# --------------------------------------------------------------------------
# Pure-JAX reference (mirrors the torch code line-by-line) for verification.
# The contractions use bf16 inputs / f32 accumulation, matching the kernel.
# --------------------------------------------------------------------------
def avenet_forward_reference(img_feat, aud_feat, *, epsilon=0.65, epsilon2=0.4,
                             tau=0.03, tri_map=True, use_neg=True):
    B, C, H, W = img_feat.shape
    img = _l2_normalize(img_feat.astype(jnp.float32), axis=1)            # (B,C,H,W)
    aud_p = jnp.max(aud_feat.astype(jnp.float32).reshape(B, C, -1), axis=-1)
    aud = _l2_normalize(aud_p, axis=-1)                                  # (B,C)
    img_b = img.astype(jnp.bfloat16)
    aud_b = aud.astype(jnp.bfloat16)
    A = jnp.einsum('nchw,nc->nhw', img_b, aud_b,
                   preferred_element_type=jnp.float32)[:, None]          # (B,1,H,W)
    A0 = jnp.einsum('nchw,kc->nkhw', img_b, aud_b,
                    preferred_element_type=jnp.float32)                  # (B,B,H,W)
    A0_ref = jnp.max(A0.reshape(B, B, -1), axis=-1)
    Pos = jax.nn.sigmoid((A - epsilon) / tau)
    Neg = 1.0 - (jax.nn.sigmoid((A - epsilon2) / tau) if tri_map else Pos)
    Pos_all = jax.nn.sigmoid((A0 - epsilon) / tau)
    mask = 1.0 - 100.0 * jnp.eye(B, dtype=jnp.float32)
    A0_f = ((Pos_all * A0).reshape(B, B, -1).sum(-1)
            / Pos_all.reshape(B, B, -1).sum(-1)) * mask
    sim1 = (Pos * A).reshape(B, 1, -1).sum(-1) / Pos.reshape(B, 1, -1).sum(-1)
    sim2 = (Neg * A).reshape(B, 1, -1).sum(-1) / Neg.reshape(B, 1, -1).sum(-1)
    parts = (sim1, A0_f, sim2) if use_neg else (sim1, A0_f)
    logits = jnp.concatenate(parts, axis=1) / 0.07
    return A, logits, Pos, Neg, A0_ref


if __name__ == "__main__":
    key = jax.random.PRNGKey(0)
    k_img, k_aud, k_wi, k_wa = jax.random.split(key, 4)

    # Small shapes consistent with the module: batch=12 (exercises batch-tile
    # padding and a 2-step parallel grid with TB=8), feature channels=32, image
    # heatmap 8x8, audio feature map 4x4 (real model: 512 ch, 14x14 heatmap).
    B, C = 12, 32
    image = jax.random.normal(k_img, (B, 3, 16, 16), jnp.float32)
    audio = jax.random.normal(k_aud, (B, 1, 16, 16), jnp.float32)

    # TODO(synk): stand-in for the external resnet18 backbones (networks.base_models):
    # deterministic 1x1 conv + strided subsample producing NCHW feature maps.
    w_img = jax.random.normal(k_wi, (C, 3), jnp.float32) * 0.1
    w_aud = jax.random.normal(k_wa, (C, 1), jnp.float32) * 0.1
    img_feat = jnp.einsum('nchw,dc->ndhw', image[:, :, ::2, ::2], w_img)   # (12, 32, 8, 8)
    aud_feat = jnp.einsum('nchw,dc->ndhw', audio[:, :, ::4, ::4], w_aud)   # (12, 32, 4, 4)

    outs = avenet_forward(img_feat, aud_feat,
                          epsilon=0.65, epsilon2=0.4, tri_map=True, use_neg=True,
                          tile_b=8)   # real shapes (B>=32): prefer tile_b=16..32
    outs = jax.block_until_ready(outs)

    refs = avenet_forward_reference(img_feat, aud_feat,
                                    epsilon=0.65, epsilon2=0.4,
                                    tri_map=True, use_neg=True)
    names = ("A", "logits", "Pos", "Neg", "A0_ref")
    for name, o, r in zip(names, outs, refs):
        np.testing.assert_allclose(np.asarray(o), np.asarray(r),
                                   rtol=2e-3, atol=2e-3, err_msg=name)

    print("KERNEL_OK")
</pallas_src>

<mosaic_0001>
module attributes {stable_mosaic.version = 11 : i64} {
  func.func @_avenet_head_kernel(%arg0: i32, %arg1: memref<8x64x32xbf16, #tpu.memory_space<vmem>>, %arg2: memref<128x32xbf16, #tpu.memory_space<vmem>>, %arg3: memref<8x32xbf16, #tpu.memory_space<vmem>>, %arg4: memref<8x64xf32, #tpu.memory_space<vmem>>, %arg5: memref<8x64xf32, #tpu.memory_space<vmem>>, %arg6: memref<8x64xf32, #tpu.memory_space<vmem>>, %arg7: memref<8x128xf32, #tpu.memory_space<vmem>>, %arg8: memref<8x128xf32, #tpu.memory_space<vmem>>) attributes {dimension_semantics = [#tpu.dimension_semantics<parallel>], iteration_bounds = array<i64: 2>, scalar_prefetch = 0 : i64, scratch_operands = 0 : i64, tpu.core_type = #tpu.core_type<tc>, window_params = [{transform_indices = @transform_0, window_bounds = array<i64: 8, 64, 32>}, {pipeline_mode = #tpu.pipeline_mode<synchronous>, transform_indices = @transform_1, window_bounds = array<i64: 128, 32>}, {transform_indices = @transform_2, window_bounds = array<i64: 8, 32>}, {transform_indices = @transform_3, window_bounds = array<i64: 8, 64>}, {transform_indices = @transform_4, window_bounds = array<i64: 8, 64>}, {transform_indices = @transform_5, window_bounds = array<i64: 8, 64>}, {transform_indices = @transform_6, window_bounds = array<i64: 8, 128>}, {transform_indices = @transform_7, window_bounds = array<i64: 8, 128>}]} {
    %c0 = arith.constant 0 : index
    %c0_0 = arith.constant 0 : index
    %0 = vector.load %arg2[%c0, %c0_0] : memref<128x32xbf16, #tpu.memory_space<vmem>>, vector<128x32xbf16>
    %1 = tpu.iota {dimensions = array<i32: 1>} : vector<1x128xi32>
    %c8_i32 = arith.constant 8 : i32
    %2 = arith.muli %arg0, %c8_i32 : i32
    %c1_i32 = arith.constant 1 : i32
    %3 = arith.addi %2, %c1_i32 : i32
    %c0_1 = arith.constant 0 : index
    %c0_2 = arith.constant 0 : index
    %c0_3 = arith.constant 0 : index
    %4 = vector.load %arg1[%c0_1, %c0_2, %c0_3] : memref<8x64x32xbf16, #tpu.memory_space<vmem>>, vector<1x64x32xbf16>
    %5 = vector.shape_cast %4 : vector<1x64x32xbf16> to vector<64x32xbf16>
    %cst = arith.constant dense<0.000000e+00> : vector<64x128xf32>
    %6 = tpu.matmul %5, %0, %cst {dimension_numbers = #tpu.dot_dimension_numbers<[1], [1], [0], [0], [0, 0, 1, 0], [], []>} : vector<64x32xbf16>, vector<128x32xbf16>, vector<64x128xf32> -> vector<64x128xf32>
    %c0_4 = arith.constant 0 : index
    %c0_5 = arith.constant 0 : index
    %7 = vector.load %arg3[%c0_4, %c0_5] : memref<8x32xbf16, #tpu.memory_space<vmem>>, vector<1x32xbf16>
    %cst_6 = arith.constant dense<0.000000e+00> : vector<1x64xf32>
    %8 = tpu.matmul %7, %5, %cst_6 {dimension_numbers = #tpu.dot_dimension_numbers<[1], [1], [0], [0], [0, 0, 1, 0], [], []>} : vector<1x32xbf16>, vector<64x32xbf16>, vector<1x64xf32> -> vector<1x64xf32>
    %cst_7 = arith.constant 6.500000e-01 : f32
    %9 = vector.broadcast %cst_7 : f32 to vector<1x64xf32>
    %10 = arith.subf %8, %9 : vector<1x64xf32>
    %cst_8 = arith.constant 33.3333321 : f32
    %11 = vector.broadcast %cst_8 : f32 to vector<1x64xf32>
    %12 = arith.mulf %10, %11 : vector<1x64xf32>
    %13 = arith.negf %12 : vector<1x64xf32>
    %14 = math.exp %13 : vector<1x64xf32>
    %cst_9 = arith.constant 1.000000e+00 : f32
    %15 = vector.broadcast %cst_9 : f32 to vector<1x64xf32>
    %16 = arith.addf %15, %14 : vector<1x64xf32>
    %17 = arith.divf %15, %16 : vector<1x64xf32>
    %cst_10 = arith.constant 4.000000e-01 : f32
    %18 = vector.broadcast %cst_10 : f32 to vector<1x64xf32>
    %19 = arith.subf %8, %18 : vector<1x64xf32>
    %cst_11 = arith.constant 33.3333321 : f32
    %20 = vector.broadcast %cst_11 : f32 to vector<1x64xf32>
    %21 = arith.mulf %19, %20 : vector<1x64xf32>
    %22 = arith.negf %21 : vector<1x64xf32>
    %23 = math.exp %22 : vector<1x64xf32>
    %cst_12 = arith.constant 1.000000e+00 : f32
    %24 = vector.broadcast %cst_12 : f32 to vector<1x64xf32>
    %25 = arith.addf %24, %23 : vector<1x64xf32>
    %26 = arith.divf %24, %25 : vector<1x64xf32>
    %cst_13 = arith.constant 1.000000e+00 : f32
    %27 = vector.broadcast %cst_13 : f32 to vector<1x64xf32>
    %28 = arith.subf %27, %26 : vector<1x64xf32>
    %cst_14 = arith.constant 6.500000e-01 : f32
    %29 = vector.broadcast %cst_14 : f32 to vector<64x128xf32>
    %30 = arith.subf %6, %29 : vector<64x128xf32>
    %cst_15 = arith.constant 33.3333321 : f32
    %31 = vector.broadcast %cst_15 : f32 to vector<64x128xf32>
    %32 = arith.mulf %30, %31 : vector<64x128xf32>
    %33 = arith.negf %32 : vector<64x128xf32>
    %34 = math.exp %33 : vector<64x128xf32>
    %cst_16 = arith.constant 1.000000e+00 : f32
    %35 = vector.broadcast %cst_16 : f32 to vector<64x128xf32>
    %36 = arith.addf %35, %34 : vector<64x128xf32>
    %37 = arith.divf %35, %36 : vector<64x128xf32>
    %38 = arith.mulf %37, %6 : vector<64x128xf32>
    %cst_17 = arith.constant dense<0.000000e+00> : vector<128xf32>
    %39 = vector.multi_reduction <add>, %38, %cst_17 [0] : vector<64x128xf32> to vector<128xf32>
    %40 = vector.shape_cast %39 : vector<128xf32> to vector<1x128xf32>
    %cst_18 = arith.constant dense<0.000000e+00> : vector<128xf32>
    %41 = vector.multi_reduction <add>, %37, %cst_18 [0] : vector<64x128xf32> to vector<128xf32>
    %42 = vector.shape_cast %41 : vector<128xf32> to vector<1x128xf32>
    %c0_i32 = arith.constant 0 : i32
    %43 = arith.addi %3, %c0_i32 : i32
    %44 = vector.broadcast %43 : i32 to vector<1x128xi32>
    %45 = arith.cmpi eq, %1, %44 : vector<1x128xi32>
    %cst_19 = arith.constant -9.900000e+01 : f32
    %cst_20 = arith.constant 1.000000e+00 : f32
    %46 = vector.broadcast %cst_19 : f32 to vector<1x128xf32>
    %47 = vector.broadcast %cst_20 : f32 to vector<1x128xf32>
    %48 = arith.select %45, %46, %47 : vector<1x128xi1>, vector<1x128xf32>
    %49 = arith.divf %40, %42 : vector<1x128xf32>
    %50 = arith.mulf %49, %48 : vector<1x128xf32>
    %51 = arith.mulf %17, %8 : vector<1x64xf32>
    %52 = vector.shape_cast %51 : vector<1x64xf32> to vector<1x1x64xf32>
    %cst_21 = arith.constant dense<0.000000e+00> : vector<1xf32>
    %53 = vector.multi_reduction <add>, %52, %cst_21 [1, 2] : vector<1x1x64xf32> to vector<1xf32>
    %54 = vector.shape_cast %53 : vector<1xf32> to vector<1x1x1xf32>
    %55 = vector.extract %54[0, 0, 0] : f32 from vector<1x1x1xf32>
    %56 = vector.shape_cast %17 : vector<1x64xf32> to vector<1x1x64xf32>
    %cst_22 = arith.constant dense<0.000000e+00> : vector<1xf32>
    %57 = vector.multi_reduction <add>, %56, %cst_22 [1, 2] : vector<1x1x64xf32> to vector<1xf32>
    %58 = vector.shape_cast %57 : vector<1xf32> to vector<1x1x1xf32>
    %59 = vector.extract %58[0, 0, 0] : f32 from vector<1x1x1xf32>
    %60 = arith.divf %55, %59 : f32
    %61 = arith.mulf %28, %8 : vector<1x64xf32>
    %62 = vector.shape_cast %61 : vector<1x64xf32> to vector<1x1x64xf32>
    %cst_23 = arith.constant dense<0.000000e+00> : vector<1xf32>
    %63 = vector.multi_reduction <add>, %62, %cst_23 [1, 2] : vector<1x1x64xf32> to vector<1xf32>
    %64 = vector.shape_cast %63 : vector<1xf32> to vector<1x1x1xf32>
    %65 = vector.extract %64[0, 0, 0] : f32 from vector<1x1x1xf32>
    %66 = vector.shape_cast %28 : vector<1x64xf32> to vector<1x1x64xf32>
    %cst_24 = arith.constant dense<0.000000e+00> : vector<1xf32>
    %67 = vector.multi_reduction <add>, %66, %cst_24 [1, 2] : vector<1x1x64xf32> to vector<1xf32>
    %68 = vector.shape_cast %67 : vector<1xf32> to vector<1x1x1xf32>
    %69 = vector.extract %68[0, 0, 0] : f32 from vector<1x1x1xf32>
    %70 = arith.divf %65, %69 : f32
    %c0_i32_25 = arith.constant 0 : i32
    %71 = vector.broadcast %c0_i32_25 : i32 to vector<1x128xi32>
    %72 = arith.cmpi eq, %1, %71 : vector<1x128xi32>
    %73 = vector.broadcast %60 : f32 to vector<1x128xf32>
    %74 = arith.select %72, %73, %50 : vector<1x128xi1>, vector<1x128xf32>
    %c13_i32 = arith.constant 13 : i32
    %75 = vector.broadcast %c13_i32 : i32 to vector<1x128xi32>
    %76 = arith.cmpi eq, %1, %75 : vector<1x128xi32>
    %77 = vector.broadcast %70 : f32 to vector<1x128xf32>
    %78 = arith.select %76, %77, %74 : vector<1x128xi1>, vector<1x128xf32>
    %c0_26 = arith.constant 0 : index
    %c0_27 = arith.constant 0 : index
    %79 = vector.load %arg4[%c0_26, %c0_27] : memref<8x64xf32, #tpu.memory_space<vmem>>, vector<1x64xf32>
    tpu.vector_store %arg4[%c0_26, %c0_27], %8 {strides = array<i32>} : memref<8x64xf32, #tpu.memory_space<vmem>>, vector<1x64xf32>,
    %c0_28 = arith.constant 0 : index
    %c0_29 = arith.constant 0 : index
    %80 = vector.load %arg5[%c0_28, %c0_29] : memref<8x64xf32, #tpu.memory_space<vmem>>, vector<1x64xf32>
    tpu.vector_store %arg5[%c0_28, %c0_29], %17 {strides = array<i32>} : memref<8x64xf32, #tpu.memory_space<vmem>>, vector<1x64xf32>,
    %c0_30 = arith.constant 0 : index
    %c0_31 = arith.constant 0 : index
    %81 = vector.load %arg6[%c0_30, %c0_31] : memref<8x64xf32, #tpu.memory_space<vmem>>, vector<1x64xf32>
    tpu.vector_store %arg6[%c0_30, %c0_31], %28 {strides = array<i32>} : memref<8x64xf32, #tpu.memory_space<vmem>>, vector<1x64xf32>,
    %cst_32 = arith.constant 14.2857141 : f32
    %82 = vector.broadcast %cst_32 : f32 to vector<1x128xf32>
    %83 = arith.mulf %78, %82 : vector<1x128xf32>
    %c0_33 = arith.constant 0 : index
    %c0_34 = arith.constant 0 : index
    %84 = vector.load %arg7[%c0_33, %c0_34] : memref<8x128xf32, #tpu.memory_space<vmem>>, vector<1x128xf32>
    tpu.vector_store %arg7[%c0_33, %c0_34], %83 {strides = array<i32>} : memref<8x128xf32, #tpu.memory_space<vmem>>, vector<1x128xf32>,
    %cst_35 = arith.constant dense<0xFF800000> : vector<128xf32>
    %85 = vector.multi_reduction <maximumf>, %6, %cst_35 [0] : vector<64x128xf32> to vector<128xf32>
    %86 = vector.shape_cast %85 : vector<128xf32> to vector<1x128xf32>
    %c0_36 = arith.constant 0 : index
    %c0_37 = arith.constant 0 : index
    %87 = vector.load %arg8[%c0_36, %c0_37] : memref<8x128xf32, #tpu.memory_space<vmem>>, vector<1x128xf32>
    tpu.vector_store %arg8[%c0_36, %c0_37], %86 {strides = array<i32>} : memref<8x128xf32, #tpu.memory_space<vmem>>, vector<1x128xf32>,
    %c1 = arith.constant 1 : index
    %c0_38 = arith.constant 0 : index
    %c0_39 = arith.constant 0 : index
    %88 = vector.load %arg1[%c1, %c0_38, %c0_39] : memref<8x64x32xbf16, #tpu.memory_space<vmem>>, vector<1x64x32xbf16>
    %89 = vector.shape_cast %88 : vector<1x64x32xbf16> to vector<64x32xbf16>
    %cst_40 = arith.constant dense<0.000000e+00> : vector<64x128xf32>
    %90 = tpu.matmul %89, %0, %cst_40 {dimension_numbers = #tpu.dot_dimension_numbers<[1], [1], [0], [0], [0, 0, 1, 0], [], []>} : vector<64x32xbf16>, vector<128x32xbf16>, vector<64x128xf32> -> vector<64x128xf32>
    %c1_41 = arith.constant 1 : index
    %c0_42 = arith.constant 0 : index
    %91 = vector.load %arg3[%c1_41, %c0_42] : memref<8x32xbf16, #tpu.memory_space<vmem>>, vector<1x32xbf16>
    %cst_43 = arith.constant dense<0.000000e+00> : vector<1x64xf32>
    %92 = tpu.matmul %91, %89, %cst_43 {dimension_numbers = #tpu.dot_dimension_numbers<[1], [1], [0], [0], [0, 0, 1, 0], [], []>} : vector<1x32xbf16>, vector<64x32xbf16>, vector<1x64xf32> -> vector<1x64xf32>
    %cst_44 = arith.constant 6.500000e-01 : f32
    %93 = vector.broadcast %cst_44 : f32 to vector<1x64xf32>
    %94 = arith.subf %92, %93 : vector<1x64xf32>
    %cst_45 = arith.constant 33.3333321 : f32
    %95 = vector.broadcast %cst_45 : f32 to vector<1x64xf32>
    %96 = arith.mulf %94, %95 : vector<1x64xf32>
    %97 = arith.negf %96 : vector<1x64xf32>
    %98 = math.exp %97 : vector<1x64xf32>
    %cst_46 = arith.constant 1.000000e+00 : f32
    %99 = vector.broadcast %cst_46 : f32 to vector<1x64xf32>
    %100 = arith.addf %99, %98 : vector<1x64xf32>
    %101 = arith.divf %99, %100 : vector<1x64xf32>
    %cst_47 = arith.constant 4.000000e-01 : f32
    %102 = vector.broadcast %cst_47 : f32 to vector<1x64xf32>
    %103 = arith.subf %92, %102 : vector<1x64xf32>
    %cst_48 = arith.constant 33.3333321 : f32
    %104 = vector.broadcast %cst_48 : f32 to vector<1x64xf32>
    %105 = arith.mulf %103, %104 : vector<1x64xf32>
    %106 = arith.negf %105 : vector<1x64xf32>
    %107 = math.exp %106 : vector<1x64xf32>
    %cst_49 = arith.constant 1.000000e+00 : f32
    %108 = vector.broadcast %cst_49 : f32 to vector<1x64xf32>
    %109 = arith.addf %108, %107 : vector<1x64xf32>
    %110 = arith.divf %108, %109 : vector<1x64xf32>
    %cst_50 = arith.constant 1.000000e+00 : f32
    %111 = vector.broadcast %cst_50 : f32 to vector<1x64xf32>
    %112 = arith.subf %111, %110 : vector<1x64xf32>
    %cst_51 = arith.constant 6.500000e-01 : f32
    %113 = vector.broadcast %cst_51 : f32 to vector<64x128xf32>
    %114 = arith.subf %90, %113 : vector<64x128xf32>
    %cst_52 = arith.constant 33.3333321 : f32
    %115 = vector.broadcast %cst_52 : f32 to vector<64x128xf32>
    %116 = arith.mulf %114, %115 : vector<64x128xf32>
    %117 = arith.negf %116 : vector<64x128xf32>
    %118 = math.exp %117 : vector<64x128xf32>
    %cst_53 = arith.constant 1.000000e+00 : f32
    %119 = vector.broadcast %cst_53 : f32 to vector<64x128xf32>
    %120 = arith.addf %119, %118 : vector<64x128xf32>
    %121 = arith.divf %119, %120 : vector<64x128xf32>
    %122 = arith.mulf %121, %90 : vector<64x128xf32>
    %cst_54 = arith.constant dense<0.000000e+00> : vector<128xf32>
    %123 = vector.multi_reduction <add>, %122, %cst_54 [0] : vector<64x128xf32> to vector<128xf32>
    %124 = vector.shape_cast %123 : vector<128xf32> to vector<1x128xf32>
    %cst_55 = arith.constant dense<0.000000e+00> : vector<128xf32>
    %125 = vector.multi_reduction <add>, %121, %cst_55 [0] : vector<64x128xf32> to vector<128xf32>
    %126 = vector.shape_cast %125 : vector<128xf32> to vector<1x128xf32>
    %c1_i32_56 = arith.constant 1 : i32
    %127 = arith.addi %3, %c1_i32_56 : i32
    %128 = vector.broadcast %127 : i32 to vector<1x128xi32>
    %129 = arith.cmpi eq, %1, %128 : vector<1x128xi32>
    %cst_57 = arith.constant -9.900000e+01 : f32
    %cst_58 = arith.constant 1.000000e+00 : f32
    %130 = vector.broadcast %cst_57 : f32 to vector<1x128xf32>
    %131 = vector.broadcast %cst_58 : f32 to vector<1x128xf32>
    %132 = arith.select %129, %130, %131 : vector<1x128xi1>, vector<1x128xf32>
    %133 = arith.divf %124, %126 : vector<1x128xf32>
    %134 = arith.mulf %133, %132 : vector<1x128xf32>
    %135 = arith.mulf %101, %92 : vector<1x64xf32>
    %136 = vector.shape_cast %135 : vector<1x64xf32> to vector<1x1x64xf32>
    %cst_59 = arith.constant dense<0.000000e+00> : vector<1xf32>
    %137 = vector.multi_reduction <add>, %136, %cst_59 [1, 2] : vector<1x1x64xf32> to vector<1xf32>
    %138 = vector.shape_cast %137 : vector<1xf32> to vector<1x1x1xf32>
    %139 = vector.extract %138[0, 0, 0] : f32 from vector<1x1x1xf32>
    %140 = vector.shape_cast %101 : vector<1x64xf32> to vector<1x1x64xf32>
    %cst_60 = arith.constant dense<0.000000e+00> : vector<1xf32>
    %141 = vector.multi_reduction <add>, %140, %cst_60 [1, 2] : vector<1x1x64xf32> to vector<1xf32>
    %142 = vector.shape_cast %141 : vector<1xf32> to vector<1x1x1xf32>
    %143 = vector.extract %142[0, 0, 0] : f32 from vector<1x1x1xf32>
    %144 = arith.divf %139, %143 : f32
    %145 = arith.mulf %112, %92 : vector<1x64xf32>
    %146 = vector.shape_cast %145 : vector<1x64xf32> to vector<1x1x64xf32>
    %cst_61 = arith.constant dense<0.000000e+00> : vector<1xf32>
    %147 = vector.multi_reduction <add>, %146, %cst_61 [1, 2] : vector<1x1x64xf32> to vector<1xf32>
    %148 = vector.shape_cast %147 : vector<1xf32> to vector<1x1x1xf32>
    %149 = vector.extract %148[0, 0, 0] : f32 from vector<1x1x1xf32>
    %150 = vector.shape_cast %112 : vector<1x64xf32> to vector<1x1x64xf32>
    %cst_62 = arith.constant dense<0.000000e+00> : vector<1xf32>
    %151 = vector.multi_reduction <add>, %150, %cst_62 [1, 2] : vector<1x1x64xf32> to vector<1xf32>
    %152 = vector.shape_cast %151 : vector<1xf32> to vector<1x1x1xf32>
    %153 = vector.extract %152[0, 0, 0] : f32 from vector<1x1x1xf32>
    %154 = arith.divf %149, %153 : f32
    %c0_i32_63 = arith.constant 0 : i32
    %155 = vector.broadcast %c0_i32_63 : i32 to vector<1x128xi32>
    %156 = arith.cmpi eq, %1, %155 : vector<1x128xi32>
    %157 = vector.broadcast %144 : f32 to vector<1x128xf32>
    %158 = arith.select %156, %157, %134 : vector<1x128xi1>, vector<1x128xf32>
    %c13_i32_64 = arith.constant 13 : i32
    %159 = vector.broadcast %c13_i32_64 : i32 to vector<1x128xi32>
    %160 = arith.cmpi eq, %1, %159 : vector<1x128xi32>
    %161 = vector.broadcast %154 : f32 to vector<1x128xf32>
    %162 = arith.select %160, %161, %158 : vector<1x128xi1>, vector<1x128xf32>
    %c1_65 = arith.constant 1 : index
    %c0_66 = arith.constant 0 : index
    %163 = vector.load %arg4[%c1_65, %c0_66] : memref<8x64xf32, #tpu.memory_space<vmem>>, vector<1x64xf32>
    tpu.vector_store %arg4[%c1_65, %c0_66], %92 {strides = array<i32>} : memref<8x64xf32, #tpu.memory_space<vmem>>, vector<1x64xf32>,
    %c1_67 = arith.constant 1 : index
    %c0_68 = arith.constant 0 : index
    %164 = vector.load %arg5[%c1_67, %c0_68] : memref<8x64xf32, #tpu.memory_space<vmem>>, vector<1x64xf32>
    tpu.vector_store %arg5[%c1_67, %c0_68], %101 {strides = array<i32>} : memref<8x64xf32, #tpu.memory_space<vmem>>, vector<1x64xf32>,
    %c1_69 = arith.constant 1 : index
    %c0_70 = arith.constant 0 : index
    %165 = vector.load %arg6[%c1_69, %c0_70] : memref<8x64xf32, #tpu.memory_space<vmem>>, vector<1x64xf32>
    tpu.vector_store %arg6[%c1_69, %c0_70], %112 {strides = array<i32>} : memref<8x64xf32, #tpu.memory_space<vmem>>, vector<1x64xf32>,
    %cst_71 = arith.constant 14.2857141 : f32
    %166 = vector.broadcast %cst_71 : f32 to vector<1x128xf32>
    %167 = arith.mulf %162, %166 : vector<1x128xf32>
    %c1_72 = arith.constant 1 : index
    %c0_73 = arith.constant 0 : index
    %168 = vector.load %arg7[%c1_72, %c0_73] : memref<8x128xf32, #tpu.memory_space<vmem>>, vector<1x128xf32>
    tpu.vector_store %arg7[%c1_72, %c0_73], %167 {strides = array<i32>} : memref<8x128xf32, #tpu.memory_space<vmem>>, vector<1x128xf32>,
    %cst_74 = arith.constant dense<0xFF800000> : vector<128xf32>
    %169 = vector.multi_reduction <maximumf>, %90, %cst_74 [0] : vector<64x128xf32> to vector<128xf32>
    %170 = vector.shape_cast %169 : vector<128xf32> to vector<1x128xf32>
    %c1_75 = arith.constant 1 : index
    %c0_76 = arith.constant 0 : index
    %171 = vector.load %arg8[%c1_75, %c0_76] : memref<8x128xf32, #tpu.memory_space<vmem>>, vector<1x128xf32>
    tpu.vector_store %arg8[%c1_75, %c0_76], %170 {strides = array<i32>} : memref<8x128xf32, #tpu.memory_space<vmem>>, vector<1x128xf32>,
    %c2 = arith.constant 2 : index
    %c0_77 = arith.constant 0 : index
    %c0_78 = arith.constant 0 : index
    %172 = vector.load %arg1[%c2, %c0_77, %c0_78] : memref<8x64x32xbf16, #tpu.memory_space<vmem>>, vector<1x64x32xbf16>
    %173 = vector.shape_cast %172 : vector<1x64x32xbf16> to vector<64x32xbf16>
    %cst_79 = arith.constant dense<0.000000e+00> : vector<64x128xf32>
    %174 = tpu.matmul %173, %0, %cst_79 {dimension_numbers = #tpu.dot_dimension_numbers<[1], [1], [0], [0], [0, 0, 1, 0], [], []>} : vector<64x32xbf16>, vector<128x32xbf16>, vector<64x128xf32> -> vector<64x128xf32>
    %c2_80 = arith.constant 2 : index
    %c0_81 = arith.constant 0 : index
    %175 = vector.load %arg3[%c2_80, %c0_81] : memref<8x32xbf16, #tpu.memory_space<vmem>>, vector<1x32xbf16>
    %cst_82 = arith.constant dense<0.000000e+00> : vector<1x64xf32>
    %176 = tpu.matmul %175, %173, %cst_82 {dimension_numbers = #tpu.dot_dimension_numbers<[1], [1], [0], [0], [0, 0, 1, 0], [], []>} : vector<1x32xbf16>, vector<64x32xbf16>, vector<1x64xf32> -> vector<1x64xf32>
    %cst_83 = arith.constant 6.500000e-01 : f32
    %177 = vector.broadcast %cst_83 : f32 to vector<1x64xf32>
    %178 = arith.subf %176, %177 : vector<1x64xf32>
    %cst_84 = arith.constant 33.3333321 : f32
    %179 = vector.broadcast %cst_84 : f32 to vector<1x64xf32>
    %180 = arith.mulf %178, %179 : vector<1x64xf32>
    %181 = arith.negf %180 : vector<1x64xf32>
    %182 = math.exp %181 : vector<1x64xf32>
    %cst_85 = arith.constant 1.000000e+00 : f32
    %183 = vector.broadcast %cst_85 : f32 to vector<1x64xf32>
    %184 = arith.addf %183, %182 : vector<1x64xf32>
    %185 = arith.divf %183, %184 : vector<1x64xf32>
    %cst_86 = arith.constant 4.000000e-01 : f32
    %186 = vector.broadcast %cst_86 : f32 to vector<1x64xf32>
    %187 = arith.subf %176, %186 : vector<1x64xf32>
    %cst_87 = arith.constant 33.3333321 : f32
    %188 = vector.broadcast %cst_87 : f32 to vector<1x64xf32>
    %189 = arith.mulf %187, %188 : vector<1x64xf32>
    %190 = arith.negf %189 : vector<1x64xf32>
    %191 = math.exp %190 : vector<1x64xf32>
    %cst_88 = arith.constant 1.000000e+00 : f32
    %192 = vector.broadcast %cst_88 : f32 to vector<1x64xf32>
    %193 = arith.addf %192, %191 : vector<1x64xf32>
    %194 = arith.divf %192, %193 : vector<1x64xf32>
    %cst_89 = arith.constant 1.000000e+00 : f32
    %195 = vector.broadcast %cst_89 : f32 to vector<1x64xf32>
    %196 = arith.subf %195, %194 : vector<1x64xf32>
    %cst_90 = arith.constant 6.500000e-01 : f32
    %197 = vector.broadcast %cst_90 : f32 to vector<64x128xf32>
    %198 = arith.subf %174, %197 : vector<64x128xf32>
    %cst_91 = arith.constant 33.3333321 : f32
    %199 = vector.broadcast %cst_91 : f32 to vector<64x128xf32>
    %200 = arith.mulf %198, %199 : vector<64x128xf32>
    %201 = arith.negf %200 : vector<64x128xf32>
    %202 = math.exp %201 : vector<64x128xf32>
    %cst_92 = arith.constant 1.000000e+00 : f32
    %203 = vector.broadcast %cst_92 : f32 to vector<64x128xf32>
    %204 = arith.addf %203, %202 : vector<64x128xf32>
    %205 = arith.divf %203, %204 : vector<64x128xf32>
    %206 = arith.mulf %205, %174 : vector<64x128xf32>
    %cst_93 = arith.constant dense<0.000000e+00> : vector<128xf32>
    %207 = vector.multi_reduction <add>, %206, %cst_93 [0] : vector<64x128xf32> to vector<128xf32>
    %208 = vector.shape_cast %207 : vector<128xf32> to vector<1x128xf32>
    %cst_94 = arith.constant dense<0.000000e+00> : vector<128xf32>
    %209 = vector.multi_reduction <add>, %205, %cst_94 [0] : vector<64x128xf32> to vector<128xf32>
    %210 = vector.shape_cast %209 : vector<128xf32> to vector<1x128xf32>
    %c2_i32 = arith.constant 2 : i32
    %211 = arith.addi %3, %c2_i32 : i32
    %212 = vector.broadcast %211 : i32 to vector<1x128xi32>
    %213 = arith.cmpi eq, %1, %212 : vector<1x128xi32>
    %cst_95 = arith.constant -9.900000e+01 : f32
    %cst_96 = arith.constant 1.000000e+00 : f32
    %214 = vector.broadcast %cst_95 : f32 to vector<1x128xf32>
    %215 = vector.broadcast %cst_96 : f32 to vector<1x128xf32>
    %216 = arith.select %213, %214, %215 : vector<1x128xi1>, vector<1x128xf32>
    %217 = arith.divf %208, %210 : vector<1x128xf32>
    %218 = arith.mulf %217, %216 : vector<1x128xf32>
    %219 = arith.mulf %185, %176 : vector<1x64xf32>
    %220 = vector.shape_cast %219 : vector<1x64xf32> to vector<1x1x64xf32>
    %cst_97 = arith.constant dense<0.000000e+00> : vector<1xf32>
    %221 = vector.multi_reduction <add>, %220, %cst_97 [1, 2] : vector<1x1x64xf32> to vector<1xf32>
    %222 = vector.shape_cast %221 : vector<1xf32> to vector<1x1x1xf32>
    %223 = vector.extract %222[0, 0, 0] : f32 from vector<1x1x1xf32>
    %224 = vector.shape_cast %185 : vector<1x64xf32> to vector<1x1x64xf32>
    %cst_98 = arith.constant dense<0.000000e+00> : vector<1xf32>
    %225 = vector.multi_reduction <add>, %224, %cst_98 [1, 2] : vector<1x1x64xf32> to vector<1xf32>
    %226 = vector.shape_cast %225 : vector<1xf32> to vector<1x1x1xf32>
    %227 = vector.extract %226[0, 0, 0] : f32 from vector<1x1x1xf32>
    %228 = arith.divf %223, %227 : f32
    %229 = arith.mulf %196, %176 : vector<1x64xf32>
    %230 = vector.shape_cast %229 : vector<1x64xf32> to vector<1x1x64xf32>
    %cst_99 = arith.constant dense<0.000000e+00> : vector<1xf32>
    %231 = vector.multi_reduction <add>, %230, %cst_99 [1, 2] : vector<1x1x64xf32> to vector<1xf32>
    %232 = vector.shape_cast %231 : vector<1xf32> to vector<1x1x1xf32>
    %233 = vector.extract %232[0, 0, 0] : f32 from vector<1x1x1xf32>
    %234 = vector.shape_cast %196 : vector<1x64xf32> to vector<1x1x64xf32>
    %cst_100 = arith.constant dense<0.000000e+00> : vector<1xf32>
    %235 = vector.multi_reduction <add>, %234, %cst_100 [1, 2] : vector<1x1x64xf32> to vector<1xf32>
    %236 = vector.shape_cast %235 : vector<1xf32> to vector<1x1x1xf32>
    %237 = vector.extract %236[0, 0, 0] : f32 from vector<1x1x1xf32>
    %238 = arith.divf %233, %237 : f32
    %c0_i32_101 = arith.constant 0 : i32
    %239 = vector.broadcast %c0_i32_101 : i32 to vector<1x128xi32>
    %240 = arith.cmpi eq, %1, %239 : vector<1x128xi32>
    %241 = vector.broadcast %228 : f32 to vector<1x128xf32>
    %242 = arith.select %240, %241, %218 : vector<1x128xi1>, vector<1x128xf32>
    %c13_i32_102 = arith.constant 13 : i32
    %243 = vector.broadcast %c13_i32_102 : i32 to vector<1x128xi32>
    %244 = arith.cmpi eq, %1, %243 : vector<1x128xi32>
    %245 = vector.broadcast %238 : f32 to vector<1x128xf32>
    %246 = arith.select %244, %245, %242 : vector<1x128xi1>, vector<1x128xf32>
    %c2_103 = arith.constant 2 : index
    %c0_104 = arith.constant 0 : index
    %247 = vector.load %arg4[%c2_103, %c0_104] : memref<8x64xf32, #tpu.memory_space<vmem>>, vector<1x64xf32>
    tpu.vector_store %arg4[%c2_103, %c0_104], %176 {strides = array<i32>} : memref<8x64xf32, #tpu.memory_space<vmem>>, vector<1x64xf32>,
    %c2_105 = arith.constant 2 : index
    %c0_106 = arith.constant 0 : index
    %248 = vector.load %arg5[%c2_105, %c0_106] : memref<8x64xf32, #tpu.memory_space<vmem>>, vector<1x64xf32>
    tpu.vector_store %arg5[%c2_105, %c0_106], %185 {strides = array<i32>} : memref<8x64xf32, #tpu.memory_space<vmem>>, vector<1x64xf32>,
    %c2_107 = arith.constant 2 : index
    %c0_108 = arith.constant 0 : index
    %249 = vector.load %arg6[%c2_107, %c0_108] : memref<8x64xf32, #tpu.memory_space<vmem>>, vector<1x64xf32>
    tpu.vector_store %arg6[%c2_107, %c0_108], %196 {strides = array<i32>} : memref<8x64xf32, #tpu.memory_space<vmem>>, vector<1x64xf32>,
    %cst_109 = arith.constant 14.2857141 : f32
    %250 = vector.broadcast %cst_109 : f32 to vector<1x128xf32>
    %251 = arith.mulf %246, %250 : vector<1x128xf32>
    %c2_110 = arith.constant 2 : index
    %c0_111 = arith.constant 0 : index
    %252 = vector.load %arg7[%c2_110, %c0_111] : memref<8x128xf32, #tpu.memory_space<vmem>>, vector<1x128xf32>
    tpu.vector_store %arg7[%c2_110, %c0_111], %251 {strides = array<i32>} : memref<8x128xf32, #tpu.memory_space<vmem>>, vector<1x128xf32>,
    %cst_112 = arith.constant dense<0xFF800000> : vector<128xf32>
    %253 = vector.multi_reduction <maximumf>, %174, %cst_112 [0] : vector<64x128xf32> to vector<128xf32>
    %254 = vector.shape_cast %253 : vector<128xf32> to vector<1x128xf32>
    %c2_113 = arith.constant 2 : index
    %c0_114 = arith.constant 0 : index
    %255 = vector.load %arg8[%c2_113, %c0_114] : memref<8x128xf32, #tpu.memory_space<vmem>>, vector<1x128xf32>
    tpu.vector_store %arg8[%c2_113, %c0_114], %254 {strides = array<i32>} : memref<8x128xf32, #tpu.memory_space<vmem>>, vector<1x128xf32>,
    %c3 = arith.constant 3 : index
    %c0_115 = arith.constant 0 : index
    %c0_116 = arith.constant 0 : index
    %256 = vector.load %arg1[%c3, %c0_115, %c0_116] : memref<8x64x32xbf16, #tpu.memory_space<vmem>>, vector<1x64x32xbf16>
    %257 = vector.shape_cast %256 : vector<1x64x32xbf16> to vector<64x32xbf16>
    %cst_117 = arith.constant dense<0.000000e+00> : vector<64x128xf32>
    %258 = tpu.matmul %257, %0, %cst_117 {dimension_numbers = #tpu.dot_dimension_numbers<[1], [1], [0], [0], [0, 0, 1, 0], [], []>} : vector<64x32xbf16>, vector<128x32xbf16>, vector<64x128xf32> -> vector<64x128xf32>
    %c3_118 = arith.constant 3 : index
    %c0_119 = arith.constant 0 : index
    %259 = vector.load %arg3[%c3_118, %c0_119] : memref<8x32xbf16, #tpu.memory_space<vmem>>, vector<1x32xbf16>
    %cst_120 = arith.constant dense<0.000000e+00> : vector<1x64xf32>
    %260 = tpu.matmul %259, %257, %cst_120 {dimension_numbers = #tpu.dot_dimension_numbers<[1], [1], [0], [0], [0, 0, 1, 0], [], []>} : vector<1x32xbf16>, vector<64x32xbf16>, vector<1x64xf32> -> vector<1x64xf32>
    %cst_121 = arith.constant 6.500000e-01 : f32
    %261 = vector.broadcast %cst_121 : f32 to vector<1x64xf32>
    %262 = arith.subf %260, %261 : vector<1x64xf32>
    %cst_122 = arith.constant 33.3333321 : f32
    %263 = vector.broadcast %cst_122 : f32 to vector<1x64xf32>
    %264 = arith.mulf %262, %263 : vector<1x64xf32>
    %265 = arith.negf %264 : vector<1x64xf32>
    %266 = math.exp %265 : vector<1x64xf32>
    %cst_123 = arith.constant 1.000000e+00 : f32
    %267 = vector.broadcast %cst_123 : f32 to vector<1x64xf32>
    %268 = arith.addf %267, %266 : vector<1x64xf32>
    %269 = arith.divf %267, %268 : vector<1x64xf32>
    %cst_124 = arith.constant 4.000000e-01 : f32
    %270 = vector.broadcast %cst_124 : f32 to vector<1x64xf32>
    %271 = arith.subf %260, %270 : vector<1x64xf32>
    %cst_125 = arith.constant 33.3333321 : f32
    %272 = vector.broadcast %cst_125 : f32 to vector<1x64xf32>
    %273 = arith.mulf %271, %272 : vector<1x64xf32>
    %274 = arith.negf %273 : vector<1x64xf32>
    %275 = math.exp %274 : vector<1x64xf32>
    %cst_126 = arith.constant 1.000000e+00 : f32
    %276 = vector.broadcast %cst_126 : f32 to vector<1x64xf32>
    %277 = arith.addf %276, %275 : vector<1x64xf32>
    %278 = arith.divf %276, %277 : vector<1x64xf32>
    %cst_127 = arith.constant 1.000000e+00 : f32
    %279 = vector.broadcast %cst_127 : f32 to vector<1x64xf32>
    %280 = arith.subf %279, %278 : vector<1x64xf32>
    %cst_128 = arith.constant 6.500000e-01 : f32
    %281 = vector.broadcast %cst_128 : f32 to vector<64x128xf32>
    %282 = arith.subf %258, %281 : vector<64x128xf32>
    %cst_129 = arith.constant 33.3333321 : f32
    %283 = vector.broadcast %cst_129 : f32 to vector<64x128xf32>
    %284 = arith.mulf %282, %283 : vector<64x128xf32>
    %285 = arith.negf %284 : vector<64x128xf32>
    %286 = math.exp %285 : vector<64x128xf32>
    %cst_130 = arith.constant 1.000000e+00 : f32
    %287 = vector.broadcast %cst_130 : f32 to vector<64x128xf32>
    %288 = arith.addf %287, %286 : vector<64x128xf32>
    %289 = arith.divf %287, %288 : vector<64x128xf32>
    %290 = arith.mulf %289, %258 : vector<64x128xf32>
    %cst_131 = arith.constant dense<0.000000e+00> : vector<128xf32>
    %291 = vector.multi_reduction <add>, %290, %cst_131 [0] : vector<64x128xf32> to vector<128xf32>
    %292 = vector.shape_cast %291 : vector<128xf32> to vector<1x128xf32>
    %cst_132 = arith.constant dense<0.000000e+00> : vector<128xf32>
    %293 = vector.multi_reduction <add>, %289, %cst_132 [0] : vector<64x128xf32> to vector<128xf32>
    %294 = vector.shape_cast %293 : vector<128xf32> to vector<1x128xf32>
    %c3_i32 = arith.constant 3 : i32
    %295 = arith.addi %3, %c3_i32 : i32
    %296 = vector.broadcast %295 : i32 to vector<1x128xi32>
    %297 = arith.cmpi eq, %1, %296 : vector<1x128xi32>
    %cst_133 = arith.constant -9.900000e+01 : f32
    %cst_134 = arith.constant 1.000000e+00 : f32
    %298 = vector.broadcast %cst_133 : f32 to vector<1x128xf32>
    %299 = vector.broadcast %cst_134 : f32 to vector<1x128xf32>
    %300 = arith.select %297, %298, %299 : vector<1x128xi1>, vector<1x128xf32>
    %301 = arith.divf %292, %294 : vector<1x128xf32>
    %302 = arith.mulf %301, %300 : vector<1x128xf32>
    %303 = arith.mulf %269, %260 : vector<1x64xf32>
    %304 = vector.shape_cast %303 : vector<1x64xf32> to vector<1x1x64xf32>
    %cst_135 = arith.constant dense<0.000000e+00> : vector<1xf32>
    %305 = vector.multi_reduction <add>, %304, %cst_135 [1, 2] : vector<1x1x64xf32> to vector<1xf32>
    %306 = vector.shape_cast %305 : vector<1xf32> to vector<1x1x1xf32>
    %307 = vector.extract %306[0, 0, 0] : f32 from vector<1x1x1xf32>
    %308 = vector.shape_cast %269 : vector<1x64xf32> to vector<1x1x64xf32>
    %cst_136 = arith.constant dense<0.000000e+00> : vector<1xf32>
    %309 = vector.multi_reduction <add>, %308, %cst_136 [1, 2] : vector<1x1x64xf32> to vector<1xf32>
    %310 = vector.shape_cast %309 : vector<1xf32> to vector<1x1x1xf32>
    %311 = vector.extract %310[0, 0, 0] : f32 from vector<1x1x1xf32>
    %312 = arith.divf %307, %311 : f32
    %313 = arith.mulf %280, %260 : vector<1x64xf32>
    %314 = vector.shape_cast %313 : vector<1x64xf32> to vector<1x1x64xf32>
    %cst_137 = arith.constant dense<0.000000e+00> : vector<1xf32>
    %315 = vector.multi_reduction <add>, %314, %cst_137 [1, 2] : vector<1x1x64xf32> to vector<1xf32>
    %316 = vector.shape_cast %315 : vector<1xf32> to vector<1x1x1xf32>
    %317 = vector.extract %316[0, 0, 0] : f32 from vector<1x1x1xf32>
    %318 = vector.shape_cast %280 : vector<1x64xf32> to vector<1x1x64xf32>
    %cst_138 = arith.constant dense<0.000000e+00> : vector<1xf32>
    %319 = vector.multi_reduction <add>, %318, %cst_138 [1, 2] : vector<1x1x64xf32> to vector<1xf32>
    %320 = vector.shape_cast %319 : vector<1xf32> to vector<1x1x1xf32>
    %321 = vector.extract %320[0, 0, 0] : f32 from vector<1x1x1xf32>
    %322 = arith.divf %317, %321 : f32
    %c0_i32_139 = arith.constant 0 : i32
    %323 = vector.broadcast %c0_i32_139 : i32 to vector<1x128xi32>
    %324 = arith.cmpi eq, %1, %323 : vector<1x128xi32>
    %325 = vector.broadcast %312 : f32 to vector<1x128xf32>
    %326 = arith.select %324, %325, %302 : vector<1x128xi1>, vector<1x128xf32>
    %c13_i32_140 = arith.constant 13 : i32
    %327 = vector.broadcast %c13_i32_140 : i32 to vector<1x128xi32>
    %328 = arith.cmpi eq, %1, %327 : vector<1x128xi32>
    %329 = vector.broadcast %322 : f32 to vector<1x128xf32>
    %330 = arith.select %328, %329, %326 : vector<1x128xi1>, vector<1x128xf32>
    %c3_141 = arith.constant 3 : index
    %c0_142 = arith.constant 0 : index
    %331 = vector.load %arg4[%c3_141, %c0_142] : memref<8x64xf32, #tpu.memory_space<vmem>>, vector<1x64xf32>
    tpu.vector_store %arg4[%c3_141, %c0_142], %260 {strides = array<i32>} : memref<8x64xf32, #tpu.memory_space<vmem>>, vector<1x64xf32>,
    %c3_143 = arith.constant 3 : index
    %c0_144 = arith.constant 0 : index
    %332 = vector.load %arg5[%c3_143, %c0_144] : memref<8x64xf32, #tpu.memory_space<vmem>>, vector<1x64xf32>
    tpu.vector_store %arg5[%c3_143, %c0_144], %269 {strides = array<i32>} : memref<8x64xf32, #tpu.memory_space<vmem>>, vector<1x64xf32>,
    %c3_145 = arith.constant 3 : index
    %c0_146 = arith.constant 0 : index
    %333 = vector.load %arg6[%c3_145, %c0_146] : memref<8x64xf32, #tpu.memory_space<vmem>>, vector<1x64xf32>
    tpu.vector_store %arg6[%c3_145, %c0_146], %280 {strides = array<i32>} : memref<8x64xf32, #tpu.memory_space<vmem>>, vector<1x64xf32>,
    %cst_147 = arith.constant 14.2857141 : f32
    %334 = vector.broadcast %cst_147 : f32 to vector<1x128xf32>
    %335 = arith.mulf %330, %334 : vector<1x128xf32>
    %c3_148 = arith.constant 3 : index
    %c0_149 = arith.constant 0 : index
    %336 = vector.load %arg7[%c3_148, %c0_149] : memref<8x128xf32, #tpu.memory_space<vmem>>, vector<1x128xf32>
    tpu.vector_store %arg7[%c3_148, %c0_149], %335 {strides = array<i32>} : memref<8x128xf32, #tpu.memory_space<vmem>>, vector<1x128xf32>,
    %cst_150 = arith.constant dense<0xFF800000> : vector<128xf32>
    %337 = vector.multi_reduction <maximumf>, %258, %cst_150 [0] : vector<64x128xf32> to vector<128xf32>
    %338 = vector.shape_cast %337 : vector<128xf32> to vector<1x128xf32>
    %c3_151 = arith.constant 3 : index
    %c0_152 = arith.constant 0 : index
    %339 = vector.load %arg8[%c3_151, %c0_152] : memref<8x128xf32, #tpu.memory_space<vmem>>, vector<1x128xf32>
    tpu.vector_store %arg8[%c3_151, %c0_152], %338 {strides = array<i32>} : memref<8x128xf32, #tpu.memory_space<vmem>>, vector<1x128xf32>,
    %c4 = arith.constant 4 : index
    %c0_153 = arith.constant 0 : index
    %c0_154 = arith.constant 0 : index
    %340 = vector.load %arg1[%c4, %c0_153, %c0_154] : memref<8x64x32xbf16, #tpu.memory_space<vmem>>, vector<1x64x32xbf16>
    %341 = vector.shape_cast %340 : vector<1x64x32xbf16> to vector<64x32xbf16>
    %cst_155 = arith.constant dense<0.000000e+00> : vector<64x128xf32>
    %342 = tpu.matmul %341, %0, %cst_155 {dimension_numbers = #tpu.dot_dimension_numbers<[1], [1], [0], [0], [0, 0, 1, 0], [], []>} : vector<64x32xbf16>, vector<128x32xbf16>, vector<64x128xf32> -> vector<64x128xf32>
    %c4_156 = arith.constant 4 : index
    %c0_157 = arith.constant 0 : index
    %343 = vector.load %arg3[%c4_156, %c0_157] : memref<8x32xbf16, #tpu.memory_space<vmem>>, vector<1x32xbf16>
    %cst_158 = arith.constant dense<0.000000e+00> : vector<1x64xf32>
    %344 = tpu.matmul %343, %341, %cst_158 {dimension_numbers = #tpu.dot_dimension_numbers<[1], [1], [0], [0], [0, 0, 1, 0], [], []>} : vector<1x32xbf16>, vector<64x32xbf16>, vector<1x64xf32> -> vector<1x64xf32>
    %cst_159 = arith.constant 6.500000e-01 : f32
    %345 = vector.broadcast %cst_159 : f32 to vector<1x64xf32>
    %346 = arith.subf %344, %345 : vector<1x64xf32>
    %cst_160 = arith.constant 33.3333321 : f32
    %347 = vector.broadcast %cst_160 : f32 to vector<1x64xf32>
    %348 = arith.mulf %346, %347 : vector<1x64xf32>
    %349 = arith.negf %348 : vector<1x64xf32>
    %350 = math.exp %349 : vector<1x64xf32>
    %cst_161 = arith.constant 1.000000e+00 : f32
    %351 = vector.broadcast %cst_161 : f32 to vector<1x64xf32>
    %352 = arith.addf %351, %350 : vector<1x64xf32>
    %353 = arith.divf %351, %352 : vector<1x64xf32>
    %cst_162 = arith.constant 4.000000e-01 : f32
    %354 = vector.broadcast %cst_162 : f32 to vector<1x64xf32>
    %355 = arith.subf %344, %354 : vector<1x64xf32>
    %cst_163 = arith.constant 33.3333321 : f32
    %356 = vector.broadcast %cst_163 : f32 to vector<1x64xf32>
    %357 = arith.mulf %355, %356 : vector<1x64xf32>
    %358 = arith.negf %357 : vector<1x64xf32>
    %359 = math.exp %358 : vector<1x64xf32>
    %cst_164 = arith.constant 1.000000e+00 : f32
    %360 = vector.broadcast %cst_164 : f32 to vector<1x64xf32>
    %361 = arith.addf %360, %359 : vector<1x64xf32>
    %362 = arith.divf %360, %361 : vector<1x64xf32>
    %cst_165 = arith.constant 1.000000e+00 : f32
    %363 = vector.broadcast %cst_165 : f32 to vector<1x64xf32>
    %364 = arith.subf %363, %362 : vector<1x64xf32>
    %cst_166 = arith.constant 6.500000e-01 : f32
    %365 = vector.broadcast %cst_166 : f32 to vector<64x128xf32>
    %366 = arith.subf %342, %365 : vector<64x128xf32>
    %cst_167 = arith.constant 33.3333321 : f32
    %367 = vector.broadcast %cst_167 : f32 to vector<64x128xf32>
    %368 = arith.mulf %366, %367 : vector<64x128xf32>
    %369 = arith.negf %368 : vector<64x128xf32>
    %370 = math.exp %369 : vector<64x128xf32>
    %cst_168 = arith.constant 1.000000e+00 : f32
    %371 = vector.broadcast %cst_168 : f32 to vector<64x128xf32>
    %372 = arith.addf %371, %370 : vector<64x128xf32>
    %373 = arith.divf %371, %372 : vector<64x128xf32>
    %374 = arith.mulf %373, %342 : vector<64x128xf32>
    %cst_169 = arith.constant dense<0.000000e+00> : vector<128xf32>
    %375 = vector.multi_reduction <add>, %374, %cst_169 [0] : vector<64x128xf32> to vector<128xf32>
    %376 = vector.shape_cast %375 : vector<128xf32> to vector<1x128xf32>
    %cst_170 = arith.constant dense<0.000000e+00> : vector<128xf32>
    %377 = vector.multi_reduction <add>, %373, %cst_170 [0] : vector<64x128xf32> to vector<128xf32>
    %378 = vector.shape_cast %377 : vector<128xf32> to vector<1x128xf32>
    %c4_i32 = arith.constant 4 : i32
    %379 = arith.addi %3, %c4_i32 : i32
    %380 = vector.broadcast %379 : i32 to vector<1x128xi32>
    %381 = arith.cmpi eq, %1, %380 : vector<1x128xi32>
    %cst_171 = arith.constant -9.900000e+01 : f32
    %cst_172 = arith.constant 1.000000e+00 : f32
    %382 = vector.broadcast %cst_171 : f32 to vector<1x128xf32>
    %383 = vector.broadcast %cst_172 : f32 to vector<1x128xf32>
    %384 = arith.select %381, %382, %383 : vector<1x128xi1>, vector<1x128xf32>
    %385 = arith.divf %376, %378 : vector<1x128xf32>
    %386 = arith.mulf %385, %384 : vector<1x128xf32>
    %387 = arith.mulf %353, %344 : vector<1x64xf32>
    %388 = vector.shape_cast %387 : vector<1x64xf32> to vector<1x1x64xf32>
    %cst_173 = arith.constant dense<0.000000e+00> : vector<1xf32>
    %389 = vector.multi_reduction <add>, %388, %cst_173 [1, 2] : vector<1x1x64xf32> to vector<1xf32>
    %390 = vector.shape_cast %389 : vector<1xf32> to vector<1x1x1xf32>
    %391 = vector.extract %390[0, 0, 0] : f32 from vector<1x1x1xf32>
    %392 = vector.shape_cast %353 : vector<1x64xf32> to vector<1x1x64xf32>
    %cst_174 = arith.constant dense<0.000000e+00> : vector<1xf32>
    %393 = vector.multi_reduction <add>, %392, %cst_174 [1, 2] : vector<1x1x64xf32> to vector<1xf32>
    %394 = vector.shape_cast %393 : vector<1xf32> to vector<1x1x1xf32>
    %395 = vector.extract %394[0, 0, 0] : f32 from vector<1x1x1xf32>
    %396 = arith.divf %391, %395 : f32
    %397 = arith.mulf %364, %344 : vector<1x64xf32>
    %398 = vector.shape_cast %397 : vector<1x64xf32> to vector<1x1x64xf32>
    %cst_175 = arith.constant dense<0.000000e+00> : vector<1xf32>
    %399 = vector.multi_reduction <add>, %398, %cst_175 [1, 2] : vector<1x1x64xf32> to vector<1xf32>
    %400 = vector.shape_cast %399 : vector<1xf32> to vector<1x1x1xf32>
    %401 = vector.extract %400[0, 0, 0] : f32 from vector<1x1x1xf32>
    %402 = vector.shape_cast %364 : vector<1x64xf32> to vector<1x1x64xf32>
    %cst_176 = arith.constant dense<0.000000e+00> : vector<1xf32>
    %403 = vector.multi_reduction <add>, %402, %cst_176 [1, 2] : vector<1x1x64xf32> to vector<1xf32>
    %404 = vector.shape_cast %403 : vector<1xf32> to vector<1x1x1xf32>
    %405 = vector.extract %404[0, 0, 0] : f32 from vector<1x1x1xf32>
    %406 = arith.divf %401, %405 : f32
    %c0_i32_177 = arith.constant 0 : i32
    %407 = vector.broadcast %c0_i32_177 : i32 to vector<1x128xi32>
    %408 = arith.cmpi eq, %1, %407 : vector<1x128xi32>
    %409 = vector.broadcast %396 : f32 to vector<1x128xf32>
    %410 = arith.select %408, %409, %386 : vector<1x128xi1>, vector<1x128xf32>
    %c13_i32_178 = arith.constant 13 : i32
    %411 = vector.broadcast %c13_i32_178 : i32 to vector<1x128xi32>
    %412 = arith.cmpi eq, %1, %411 : vector<1x128xi32>
    %413 = vector.broadcast %406 : f32 to vector<1x128xf32>
    %414 = arith.select %412, %413, %410 : vector<1x128xi1>, vector<1x128xf32>
    %c4_179 = arith.constant 4 : index
    %c0_180 = arith.constant 0 : index
    %415 = vector.load %arg4[%c4_179, %c0_180] : memref<8x64xf32, #tpu.memory_space<vmem>>, vector<1x64xf32>
    tpu.vector_store %arg4[%c4_179, %c0_180], %344 {strides = array<i32>} : memref<8x64xf32, #tpu.memory_space<vmem>>, vector<1x64xf32>,
    %c4_181 = arith.constant 4 : index
    %c0_182 = arith.constant 0 : index
    %416 = vector.load %arg5[%c4_181, %c0_182] : memref<8x64xf32, #tpu.memory_space<vmem>>, vector<1x64xf32>
    tpu.vector_store %arg5[%c4_181, %c0_182], %353 {strides = array<i32>} : memref<8x64xf32, #tpu.memory_space<vmem>>, vector<1x64xf32>,
    %c4_183 = arith.constant 4 : index
    %c0_184 = arith.constant 0 : index
    %417 = vector.load %arg6[%c4_183, %c0_184] : memref<8x64xf32, #tpu.memory_space<vmem>>, vector<1x64xf32>
    tpu.vector_store %arg6[%c4_183, %c0_184], %364 {strides = array<i32>} : memref<8x64xf32, #tpu.memory_space<vmem>>, vector<1x64xf32>,
    %cst_185 = arith.constant 14.2857141 : f32
    %418 = vector.broadcast %cst_185 : f32 to vector<1x128xf32>
    %419 = arith.mulf %414, %418 : vector<1x128xf32>
    %c4_186 = arith.constant 4 : index
    %c0_187 = arith.constant 0 : index
    %420 = vector.load %arg7[%c4_186, %c0_187] : memref<8x128xf32, #tpu.memory_space<vmem>>, vector<1x128xf32>
    tpu.vector_store %arg7[%c4_186, %c0_187], %419 {strides = array<i32>} : memref<8x128xf32, #tpu.memory_space<vmem>>, vector<1x128xf32>,
    %cst_188 = arith.constant dense<0xFF800000> : vector<128xf32>
    %421 = vector.multi_reduction <maximumf>, %342, %cst_188 [0] : vector<64x128xf32> to vector<128xf32>
    %422 = vector.shape_cast %421 : vector<128xf32> to vector<1x128xf32>
    %c4_189 = arith.constant 4 : index
    %c0_190 = arith.constant 0 : index
    %423 = vector.load %arg8[%c4_189, %c0_190] : memref<8x128xf32, #tpu.memory_space<vmem>>, vector<1x128xf32>
    tpu.vector_store %arg8[%c4_189, %c0_190], %422 {strides = array<i32>} : memref<8x128xf32, #tpu.memory_space<vmem>>, vector<1x128xf32>,
    %c5 = arith.constant 5 : index
    %c0_191 = arith.constant 0 : index
    %c0_192 = arith.constant 0 : index
    %424 = vector.load %arg1[%c5, %c0_191, %c0_192] : memref<8x64x32xbf16, #tpu.memory_space<vmem>>, vector<1x64x32xbf16>
    %425 = vector.shape_cast %424 : vector<1x64x32xbf16> to vector<64x32xbf16>
    %cst_193 = arith.constant dense<0.000000e+00> : vector<64x128xf32>
    %426 = tpu.matmul %425, %0, %cst_193 {dimension_numbers = #tpu.dot_dimension_numbers<[1], [1], [0], [0], [0, 0, 1, 0], [], []>} : vector<64x32xbf16>, vector<128x32xbf16>, vector<64x128xf32> -> vector<64x128xf32>
    %c5_194 = arith.constant 5 : index
    %c0_195 = arith.constant 0 : index
    %427 = vector.load %arg3[%c5_194, %c0_195] : memref<8x32xbf16, #tpu.memory_space<vmem>>, vector<1x32xbf16>
    %cst_196 = arith.constant dense<0.000000e+00> : vector<1x64xf32>
    %428 = tpu.matmul %427, %425, %cst_196 {dimension_numbers = #tpu.dot_dimension_numbers<[1], [1], [0], [0], [0, 0, 1, 0], [], []>} : vector<1x32xbf16>, vector<64x32xbf16>, vector<1x64xf32> -> vector<1x64xf32>
    %cst_197 = arith.constant 6.500000e-01 : f32
    %429 = vector.broadcast %cst_197 : f32 to vector<1x64xf32>
    %430 = arith.subf %428, %429 : vector<1x64xf32>
    %cst_198 = arith.constant 33.3333321 : f32
    %431 = vector.broadcast %cst_198 : f32 to vector<1x64xf32>
    %432 = arith.mulf %430, %431 : vector<1x64xf32>
    %433 = arith.negf %432 : vector<1x64xf32>
    %434 = math.exp %433 : vector<1x64xf32>
    %cst_199 = arith.constant 1.000000e+00 : f32
    %435 = vector.broadcast %cst_199 : f32 to vector<1x64xf32>
    %436 = arith.addf %435, %434 : vector<1x64xf32>
    %437 = arith.divf %435, %436 : vector<1x64xf32>
    %cst_200 = arith.constant 4.000000e-01 : f32
    %438 = vector.broadcast %cst_200 : f32 to vector<1x64xf32>
    %439 = arith.subf %428, %438 : vector<1x64xf32>
    %cst_201 = arith.constant 33.3333321 : f32
    %440 = vector.broadcast %cst_201 : f32 to vector<1x64xf32>
    %441 = arith.mulf %439, %440 : vector<1x64xf32>
    %442 = arith.negf %441 : vector<1x64xf32>
    %443 = math.exp %442 : vector<1x64xf32>
    %cst_202 = arith.constant 1.000000e+00 : f32
    %444 = vector.broadcast %cst_202 : f32 to vector<1x64xf32>
    %445 = arith.addf %444, %443 : vector<1x64xf32>
    %446 = arith.divf %444, %445 : vector<1x64xf32>
    %cst_203 = arith.constant 1.000000e+00 : f32
    %447 = vector.broadcast %cst_203 : f32 to vector<1x64xf32>
    %448 = arith.subf %447, %446 : vector<1x64xf32>
    %cst_204 = arith.constant 6.500000e-01 : f32
    %449 = vector.broadcast %cst_204 : f32 to vector<64x128xf32>
    %450 = arith.subf %426, %449 : vector<64x128xf32>
    %cst_205 = arith.constant 33.3333321 : f32
    %451 = vector.broadcast %cst_205 : f32 to vector<64x128xf32>
    %452 = arith.mulf %450, %451 : vector<64x128xf32>
    %453 = arith.negf %452 : vector<64x128xf32>
    %454 = math.exp %453 : vector<64x128xf32>
    %cst_206 = arith.constant 1.000000e+00 : f32
    %455 = vector.broadcast %cst_206 : f32 to vector<64x128xf32>
    %456 = arith.addf %455, %454 : vector<64x128xf32>
    %457 = arith.divf %455, %456 : vector<64x128xf32>
    %458 = arith.mulf %457, %426 : vector<64x128xf32>
    %cst_207 = arith.constant dense<0.000000e+00> : vector<128xf32>
    %459 = vector.multi_reduction <add>, %458, %cst_207 [0] : vector<64x128xf32> to vector<128xf32>
    %460 = vector.shape_cast %459 : vector<128xf32> to vector<1x128xf32>
    %cst_208 = arith.constant dense<0.000000e+00> : vector<128xf32>
    %461 = vector.multi_reduction <add>, %457, %cst_208 [0] : vector<64x128xf32> to vector<128xf32>
    %462 = vector.shape_cast %461 : vector<128xf32> to vector<1x128xf32>
    %c5_i32 = arith.constant 5 : i32
    %463 = arith.addi %3, %c5_i32 : i32
    %464 = vector.broadcast %463 : i32 to vector<1x128xi32>
    %465 = arith.cmpi eq, %1, %464 : vector<1x128xi32>
    %cst_209 = arith.constant -9.900000e+01 : f32
    %cst_210 = arith.constant 1.000000e+00 : f32
    %466 = vector.broadcast %cst_209 : f32 to vector<1x128xf32>
    %467 = vector.broadcast %cst_210 : f32 to vector<1x128xf32>
    %468 = arith.select %465, %466, %467 : vector<1x128xi1>, vector<1x128xf32>
    %469 = arith.divf %460, %462 : vector<1x128xf32>
    %470 = arith.mulf %469, %468 : vector<1x128xf32>
    %471 = arith.mulf %437, %428 : vector<1x64xf32>
    %472 = vector.shape_cast %471 : vector<1x64xf32> to vector<1x1x64xf32>
    %cst_211 = arith.constant dense<0.000000e+00> : vector<1xf32>
    %473 = vector.multi_reduction <add>, %472, %cst_211 [1, 2] : vector<1x1x64xf32> to vector<1xf32>
    %474 = vector.shape_cast %473 : vector<1xf32> to vector<1x1x1xf32>
    %475 = vector.extract %474[0, 0, 0] : f32 from vector<1x1x1xf32>
    %476 = vector.shape_cast %437 : vector<1x64xf32> to vector<1x1x64xf32>
    %cst_212 = arith.constant dense<0.000000e+00> : vector<1xf32>
    %477 = vector.multi_reduction <add>, %476, %cst_212 [1, 2] : vector<1x1x64xf32> to vector<1xf32>
    %478 = vector.shape_cast %477 : vector<1xf32> to vector<1x1x1xf32>
    %479 = vector.extract %478[0, 0, 0] : f32 from vector<1x1x1xf32>
    %480 = arith.divf %475, %479 : f32
    %481 = arith.mulf %448, %428 : vector<1x64xf32>
    %482 = vector.shape_cast %481 : vector<1x64xf32> to vector<1x1x64xf32>
    %cst_213 = arith.constant dense<0.000000e+00> : vector<1xf32>
    %483 = vector.multi_reduction <add>, %482, %cst_213 [1, 2] : vector<1x1x64xf32> to vector<1xf32>
    %484 = vector.shape_cast %483 : vector<1xf32> to vector<1x1x1xf32>
    %485 = vector.extract %484[0, 0, 0] : f32 from vector<1x1x1xf32>
    %486 = vector.shape_cast %448 : vector<1x64xf32> to vector<1x1x64xf32>
    %cst_214 = arith.constant dense<0.000000e+00> : vector<1xf32>
    %487 = vector.multi_reduction <add>, %486, %cst_214 [1, 2] : vector<1x1x64xf32> to vector<1xf32>
    %488 = vector.shape_cast %487 : vector<1xf32> to vector<1x1x1xf32>
    %489 = vector.extract %488[0, 0, 0] : f32 from vector<1x1x1xf32>
    %490 = arith.divf %485, %489 : f32
    %c0_i32_215 = arith.constant 0 : i32
    %491 = vector.broadcast %c0_i32_215 : i32 to vector<1x128xi32>
    %492 = arith.cmpi eq, %1, %491 : vector<1x128xi32>
    %493 = vector.broadcast %480 : f32 to vector<1x128xf32>
    %494 = arith.select %492, %493, %470 : vector<1x128xi1>, vector<1x128xf32>
    %c13_i32_216 = arith.constant 13 : i32
    %495 = vector.broadcast %c13_i32_216 : i32 to vector<1x128xi32>
    %496 = arith.cmpi eq, %1, %495 : vector<1x128xi32>
    %497 = vector.broadcast %490 : f32 to vector<1x128xf32>
    %498 = arith.select %496, %497, %494 : vector<1x128xi1>, vector<1x128xf32>
    %c5_217 = arith.constant 5 : index
    %c0_218 = arith.constant 0 : index
    %499 = vector.load %arg4[%c5_217, %c0_218] : memref<8x64xf32, #tpu.memory_space<vmem>>, vector<1x64xf32>
    tpu.vector_store %arg4[%c5_217, %c0_218], %428 {strides = array<i32>} : memref<8x64xf32, #tpu.memory_space<vmem>>, vector<1x64xf32>,
    %c5_219 = arith.constant 5 : index
    %c0_220 = arith.constant 0 : index
    %500 = vector.load %arg5[%c5_219, %c0_220] : memref<8x64xf32, #tpu.memory_space<vmem>>, vector<1x64xf32>
    tpu.vector_store %arg5[%c5_219, %c0_220], %437 {strides = array<i32>} : memref<8x64xf32, #tpu.memory_space<vmem>>, vector<1x64xf32>,
    %c5_221 = arith.constant 5 : index
    %c0_222 = arith.constant 0 : index
    %501 = vector.load %arg6[%c5_221, %c0_222] : memref<8x64xf32, #tpu.memory_space<vmem>>, vector<1x64xf32>
    tpu.vector_store %arg6[%c5_221, %c0_222], %448 {strides = array<i32>} : memref<8x64xf32, #tpu.memory_space<vmem>>, vector<1x64xf32>,
    %cst_223 = arith.constant 14.2857141 : f32
    %502 = vector.broadcast %cst_223 : f32 to vector<1x128xf32>
    %503 = arith.mulf %498, %502 : vector<1x128xf32>
    %c5_224 = arith.constant 5 : index
    %c0_225 = arith.constant 0 : index
    %504 = vector.load %arg7[%c5_224, %c0_225] : memref<8x128xf32, #tpu.memory_space<vmem>>, vector<1x128xf32>
    tpu.vector_store %arg7[%c5_224, %c0_225], %503 {strides = array<i32>} : memref<8x128xf32, #tpu.memory_space<vmem>>, vector<1x128xf32>,
    %cst_226 = arith.constant dense<0xFF800000> : vector<128xf32>
    %505 = vector.multi_reduction <maximumf>, %426, %cst_226 [0] : vector<64x128xf32> to vector<128xf32>
    %506 = vector.shape_cast %505 : vector<128xf32> to vector<1x128xf32>
    %c5_227 = arith.constant 5 : index
    %c0_228 = arith.constant 0 : index
    %507 = vector.load %arg8[%c5_227, %c0_228] : memref<8x128xf32, #tpu.memory_space<vmem>>, vector<1x128xf32>
    tpu.vector_store %arg8[%c5_227, %c0_228], %506 {strides = array<i32>} : memref<8x128xf32, #tpu.memory_space<vmem>>, vector<1x128xf32>,
    %c6 = arith.constant 6 : index
    %c0_229 = arith.constant 0 : index
    %c0_230 = arith.constant 0 : index
    %508 = vector.load %arg1[%c6, %c0_229, %c0_230] : memref<8x64x32xbf16, #tpu.memory_space<vmem>>, vector<1x64x32xbf16>
    %509 = vector.shape_cast %508 : vector<1x64x32xbf16> to vector<64x32xbf16>
    %cst_231 = arith.constant dense<0.000000e+00> : vector<64x128xf32>
    %510 = tpu.matmul %509, %0, %cst_231 {dimension_numbers = #tpu.dot_dimension_numbers<[1], [1], [0], [0], [0, 0, 1, 0], [], []>} : vector<64x32xbf16>, vector<128x32xbf16>, vector<64x128xf32> -> vector<64x128xf32>
    %c6_232 = arith.constant 6 : index
    %c0_233 = arith.constant 0 : index
    %511 = vector.load %arg3[%c6_232, %c0_233] : memref<8x32xbf16, #tpu.memory_space<vmem>>, vector<1x32xbf16>
    %cst_234 = arith.constant dense<0.000000e+00> : vector<1x64xf32>
    %512 = tpu.matmul %511, %509, %cst_234 {dimension_numbers = #tpu.dot_dimension_numbers<[1], [1], [0], [0], [0, 0, 1, 0], [], []>} : vector<1x32xbf16>, vector<64x32xbf16>, vector<1x64xf32> -> vector<1x64xf32>
    %cst_235 = arith.constant 6.500000e-01 : f32
    %513 = vector.broadcast %cst_235 : f32 to vector<1x64xf32>
    %514 = arith.subf %512, %513 : vector<1x64xf32>
    %cst_236 = arith.constant 33.3333321 : f32
    %515 = vector.broadcast %cst_236 : f32 to vector<1x64xf32>
    %516 = arith.mulf %514, %515 : vector<1x64xf32>
    %517 = arith.negf %516 : vector<1x64xf32>
    %518 = math.exp %517 : vector<1x64xf32>
    %cst_237 = arith.constant 1.000000e+00 : f32
    %519 = vector.broadcast %cst_237 : f32 to vector<1x64xf32>
    %520 = arith.addf %519, %518 : vector<1x64xf32>
    %521 = arith.divf %519, %520 : vector<1x64xf32>
    %cst_238 = arith.constant 4.000000e-01 : f32
    %522 = vector.broadcast %cst_238 : f32 to vector<1x64xf32>
    %523 = arith.subf %512, %522 : vector<1x64xf32>
    %cst_239 = arith.constant 33.3333321 : f32
    %524 = vector.broadcast %cst_239 : f32 to vector<1x64xf32>
    %525 = arith.mulf %523, %524 : vector<1x64xf32>
    %526 = arith.negf %525 : vector<1x64xf32>
    %527 = math.exp %526 : vector<1x64xf32>
    %cst_240 = arith.constant 1.000000e+00 : f32
    %528 = vector.broadcast %cst_240 : f32 to vector<1x64xf32>
    %529 = arith.addf %528, %527 : vector<1x64xf32>
    %530 = arith.divf %528, %529 : vector<1x64xf32>
    %cst_241 = arith.constant 1.000000e+00 : f32
    %531 = vector.broadcast %cst_241 : f32 to vector<1x64xf32>
    %532 = arith.subf %531, %530 : vector<1x64xf32>
    %cst_242 = arith.constant 6.500000e-01 : f32
    %533 = vector.broadcast %cst_242 : f32 to vector<64x128xf32>
    %534 = arith.subf %510, %533 : vector<64x128xf32>
    %cst_243 = arith.constant 33.3333321 : f32
    %535 = vector.broadcast %cst_243 : f32 to vector<64x128xf32>
    %536 = arith.mulf %534, %535 : vector<64x128xf32>
    %537 = arith.negf %536 : vector<64x128xf32>
    %538 = math.exp %537 : vector<64x128xf32>
    %cst_244 = arith.constant 1.000000e+00 : f32
    %539 = vector.broadcast %cst_244 : f32 to vector<64x128xf32>
    %540 = arith.addf %539, %538 : vector<64x128xf32>
    %541 = arith.divf %539, %540 : vector<64x128xf32>
    %542 = arith.mulf %541, %510 : vector<64x128xf32>
    %cst_245 = arith.constant dense<0.000000e+00> : vector<128xf32>
    %543 = vector.multi_reduction <add>, %542, %cst_245 [0] : vector<64x128xf32> to vector<128xf32>
    %544 = vector.shape_cast %543 : vector<128xf32> to vector<1x128xf32>
    %cst_246 = arith.constant dense<0.000000e+00> : vector<128xf32>
    %545 = vector.multi_reduction <add>, %541, %cst_246 [0] : vector<64x128xf32> to vector<128xf32>
    %546 = vector.shape_cast %545 : vector<128xf32> to vector<1x128xf32>
    %c6_i32 = arith.constant 6 : i32
    %547 = arith.addi %3, %c6_i32 : i32
    %548 = vector.broadcast %547 : i32 to vector<1x128xi32>
    %549 = arith.cmpi eq, %1, %548 : vector<1x128xi32>
    %cst_247 = arith.constant -9.900000e+01 : f32
    %cst_248 = arith.constant 1.000000e+00 : f32
    %550 = vector.broadcast %cst_247 : f32 to vector<1x128xf32>
    %551 = vector.broadcast %cst_248 : f32 to vector<1x128xf32>
    %552 = arith.select %549, %550, %551 : vector<1x128xi1>, vector<1x128xf32>
    %553 = arith.divf %544, %546 : vector<1x128xf32>
    %554 = arith.mulf %553, %552 : vector<1x128xf32>
    %555 = arith.mulf %521, %512 : vector<1x64xf32>
    %556 = vector.shape_cast %555 : vector<1x64xf32> to vector<1x1x64xf32>
    %cst_249 = arith.constant dense<0.000000e+00> : vector<1xf32>
    %557 = vector.multi_reduction <add>, %556, %cst_249 [1, 2] : vector<1x1x64xf32> to vector<1xf32>
    %558 = vector.shape_cast %557 : vector<1xf32> to vector<1x1x1xf32>
    %559 = vector.extract %558[0, 0, 0] : f32 from vector<1x1x1xf32>
    %560 = vector.shape_cast %521 : vector<1x64xf32> to vector<1x1x64xf32>
    %cst_250 = arith.constant dense<0.000000e+00> : vector<1xf32>
    %561 = vector.multi_reduction <add>, %560, %cst_250 [1, 2] : vector<1x1x64xf32> to vector<1xf32>
    %562 = vector.shape_cast %561 : vector<1xf32> to vector<1x1x1xf32>
    %563 = vector.extract %562[0, 0, 0] : f32 from vector<1x1x1xf32>
    %564 = arith.divf %559, %563 : f32
    %565 = arith.mulf %532, %512 : vector<1x64xf32>
    %566 = vector.shape_cast %565 : vector<1x64xf32> to vector<1x1x64xf32>
    %cst_251 = arith.constant dense<0.000000e+00> : vector<1xf32>
    %567 = vector.multi_reduction <add>, %566, %cst_251 [1, 2] : vector<1x1x64xf32> to vector<1xf32>
    %568 = vector.shape_cast %567 : vector<1xf32> to vector<1x1x1xf32>
    %569 = vector.extract %568[0, 0, 0] : f32 from vector<1x1x1xf32>
    %570 = vector.shape_cast %532 : vector<1x64xf32> to vector<1x1x64xf32>
    %cst_252 = arith.constant dense<0.000000e+00> : vector<1xf32>
    %571 = vector.multi_reduction <add>, %570, %cst_252 [1, 2] : vector<1x1x64xf32> to vector<1xf32>
    %572 = vector.shape_cast %571 : vector<1xf32> to vector<1x1x1xf32>
    %573 = vector.extract %572[0, 0, 0] : f32 from vector<1x1x1xf32>
    %574 = arith.divf %569, %573 : f32
    %c0_i32_253 = arith.constant 0 : i32
    %575 = vector.broadcast %c0_i32_253 : i32 to vector<1x128xi32>
    %576 = arith.cmpi eq, %1, %575 : vector<1x128xi32>
    %577 = vector.broadcast %564 : f32 to vector<1x128xf32>
    %578 = arith.select %576, %577, %554 : vector<1x128xi1>, vector<1x128xf32>
    %c13_i32_254 = arith.constant 13 : i32
    %579 = vector.broadcast %c13_i32_254 : i32 to vector<1x128xi32>
    %580 = arith.cmpi eq, %1, %579 : vector<1x128xi32>
    %581 = vector.broadcast %574 : f32 to vector<1x128xf32>
    %582 = arith.select %580, %581, %578 : vector<1x128xi1>, vector<1x128xf32>
    %c6_255 = arith.constant 6 : index
    %c0_256 = arith.constant 0 : index
    %583 = vector.load %arg4[%c6_255, %c0_256] : memref<8x64xf32, #tpu.memory_space<vmem>>, vector<1x64xf32>
    tpu.vector_store %arg4[%c6_255, %c0_256], %512 {strides = array<i32>} : memref<8x64xf32, #tpu.memory_space<vmem>>, vector<1x64xf32>,
    %c6_257 = arith.constant 6 : index
    %c0_258 = arith.constant 0 : index
    %584 = vector.load %arg5[%c6_257, %c0_258] : memref<8x64xf32, #tpu.memory_space<vmem>>, vector<1x64xf32>
    tpu.vector_store %arg5[%c6_257, %c0_258], %521 {strides = array<i32>} : memref<8x64xf32, #tpu.memory_space<vmem>>, vector<1x64xf32>,
    %c6_259 = arith.constant 6 : index
    %c0_260 = arith.constant 0 : index
    %585 = vector.load %arg6[%c6_259, %c0_260] : memref<8x64xf32, #tpu.memory_space<vmem>>, vector<1x64xf32>
    tpu.vector_store %arg6[%c6_259, %c0_260], %532 {strides = array<i32>} : memref<8x64xf32, #tpu.memory_space<vmem>>, vector<1x64xf32>,
    %cst_261 = arith.constant 14.2857141 : f32
    %586 = vector.broadcast %cst_261 : f32 to vector<1x128xf32>
    %587 = arith.mulf %582, %586 : vector<1x128xf32>
    %c6_262 = arith.constant 6 : index
    %c0_263 = arith.constant 0 : index
    %588 = vector.load %arg7[%c6_262, %c0_263] : memref<8x128xf32, #tpu.memory_space<vmem>>, vector<1x128xf32>
    tpu.vector_store %arg7[%c6_262, %c0_263], %587 {strides = array<i32>} : memref<8x128xf32, #tpu.memory_space<vmem>>, vector<1x128xf32>,
    %cst_264 = arith.constant dense<0xFF800000> : vector<128xf32>
    %589 = vector.multi_reduction <maximumf>, %510, %cst_264 [0] : vector<64x128xf32> to vector<128xf32>
    %590 = vector.shape_cast %589 : vector<128xf32> to vector<1x128xf32>
    %c6_265 = arith.constant 6 : index
    %c0_266 = arith.constant 0 : index
    %591 = vector.load %arg8[%c6_265, %c0_266] : memref<8x128xf32, #tpu.memory_space<vmem>>, vector<1x128xf32>
    tpu.vector_store %arg8[%c6_265, %c0_266], %590 {strides = array<i32>} : memref<8x128xf32, #tpu.memory_space<vmem>>, vector<1x128xf32>,
    %c7 = arith.constant 7 : index
    %c0_267 = arith.constant 0 : index
    %c0_268 = arith.constant 0 : index
    %592 = vector.load %arg1[%c7, %c0_267, %c0_268] : memref<8x64x32xbf16, #tpu.memory_space<vmem>>, vector<1x64x32xbf16>
    %593 = vector.shape_cast %592 : vector<1x64x32xbf16> to vector<64x32xbf16>
    %cst_269 = arith.constant dense<0.000000e+00> : vector<64x128xf32>
    %594 = tpu.matmul %593, %0, %cst_269 {dimension_numbers = #tpu.dot_dimension_numbers<[1], [1], [0], [0], [0, 0, 1, 0], [], []>} : vector<64x32xbf16>, vector<128x32xbf16>, vector<64x128xf32> -> vector<64x128xf32>
    %c7_270 = arith.constant 7 : index
    %c0_271 = arith.constant 0 : index
    %595 = vector.load %arg3[%c7_270, %c0_271] : memref<8x32xbf16, #tpu.memory_space<vmem>>, vector<1x32xbf16>
    %cst_272 = arith.constant dense<0.000000e+00> : vector<1x64xf32>
    %596 = tpu.matmul %595, %593, %cst_272 {dimension_numbers = #tpu.dot_dimension_numbers<[1], [1], [0], [0], [0, 0, 1, 0], [], []>} : vector<1x32xbf16>, vector<64x32xbf16>, vector<1x64xf32> -> vector<1x64xf32>
    %cst_273 = arith.constant 6.500000e-01 : f32
    %597 = vector.broadcast %cst_273 : f32 to vector<1x64xf32>
    %598 = arith.subf %596, %597 : vector<1x64xf32>
    %cst_274 = arith.constant 33.3333321 : f32
    %599 = vector.broadcast %cst_274 : f32 to vector<1x64xf32>
    %600 = arith.mulf %598, %599 : vector<1x64xf32>
    %601 = arith.negf %600 : vector<1x64xf32>
    %602 = math.exp %601 : vector<1x64xf32>
    %cst_275 = arith.constant 1.000000e+00 : f32
    %603 = vector.broadcast %cst_275 : f32 to vector<1x64xf32>
    %604 = arith.addf %603, %602 : vector<1x64xf32>
    %605 = arith.divf %603, %604 : vector<1x64xf32>
    %cst_276 = arith.constant 4.000000e-01 : f32
    %606 = vector.broadcast %cst_276 : f32 to vector<1x64xf32>
    %607 = arith.subf %596, %606 : vector<1x64xf32>
    %cst_277 = arith.constant 33.3333321 : f32
    %608 = vector.broadcast %cst_277 : f32 to vector<1x64xf32>
    %609 = arith.mulf %607, %608 : vector<1x64xf32>
    %610 = arith.negf %609 : vector<1x64xf32>
    %611 = math.exp %610 : vector<1x64xf32>
    %cst_278 = arith.constant 1.000000e+00 : f32
    %612 = vector.broadcast %cst_278 : f32 to vector<1x64xf32>
    %613 = arith.addf %612, %611 : vector<1x64xf32>
    %614 = arith.divf %612, %613 : vector<1x64xf32>
    %cst_279 = arith.constant 1.000000e+00 : f32
    %615 = vector.broadcast %cst_279 : f32 to vector<1x64xf32>
    %616 = arith.subf %615, %614 : vector<1x64xf32>
    %cst_280 = arith.constant 6.500000e-01 : f32
    %617 = vector.broadcast %cst_280 : f32 to vector<64x128xf32>
    %618 = arith.subf %594, %617 : vector<64x128xf32>
    %cst_281 = arith.constant 33.3333321 : f32
    %619 = vector.broadcast %cst_281 : f32 to vector<64x128xf32>
    %620 = arith.mulf %618, %619 : vector<64x128xf32>
    %621 = arith.negf %620 : vector<64x128xf32>
    %622 = math.exp %621 : vector<64x128xf32>
    %cst_282 = arith.constant 1.000000e+00 : f32
    %623 = vector.broadcast %cst_282 : f32 to vector<64x128xf32>
    %624 = arith.addf %623, %622 : vector<64x128xf32>
    %625 = arith.divf %623, %624 : vector<64x128xf32>
    %626 = arith.mulf %625, %594 : vector<64x128xf32>
    %cst_283 = arith.constant dense<0.000000e+00> : vector<128xf32>
    %627 = vector.multi_reduction <add>, %626, %cst_283 [0] : vector<64x128xf32> to vector<128xf32>
    %628 = vector.shape_cast %627 : vector<128xf32> to vector<1x128xf32>
    %cst_284 = arith.constant dense<0.000000e+00> : vector<128xf32>
    %629 = vector.multi_reduction <add>, %625, %cst_284 [0] : vector<64x128xf32> to vector<128xf32>
    %630 = vector.shape_cast %629 : vector<128xf32> to vector<1x128xf32>
    %c7_i32 = arith.constant 7 : i32
    %631 = arith.addi %3, %c7_i32 : i32
    %632 = vector.broadcast %631 : i32 to vector<1x128xi32>
    %633 = arith.cmpi eq, %1, %632 : vector<1x128xi32>
    %cst_285 = arith.constant -9.900000e+01 : f32
    %cst_286 = arith.constant 1.000000e+00 : f32
    %634 = vector.broadcast %cst_285 : f32 to vector<1x128xf32>
    %635 = vector.broadcast %cst_286 : f32 to vector<1x128xf32>
    %636 = arith.select %633, %634, %635 : vector<1x128xi1>, vector<1x128xf32>
    %637 = arith.divf %628, %630 : vector<1x128xf32>
    %638 = arith.mulf %637, %636 : vector<1x128xf32>
    %639 = arith.mulf %605, %596 : vector<1x64xf32>
    %640 = vector.shape_cast %639 : vector<1x64xf32> to vector<1x1x64xf32>
    %cst_287 = arith.constant dense<0.000000e+00> : vector<1xf32>
    %641 = vector.multi_reduction <add>, %640, %cst_287 [1, 2] : vector<1x1x64xf32> to vector<1xf32>
    %642 = vector.shape_cast %641 : vector<1xf32> to vector<1x1x1xf32>
    %643 = vector.extract %642[0, 0, 0] : f32 from vector<1x1x1xf32>
    %644 = vector.shape_cast %605 : vector<1x64xf32> to vector<1x1x64xf32>
    %cst_288 = arith.constant dense<0.000000e+00> : vector<1xf32>
    %645 = vector.multi_reduction <add>, %644, %cst_288 [1, 2] : vector<1x1x64xf32> to vector<1xf32>
    %646 = vector.shape_cast %645 : vector<1xf32> to vector<1x1x1xf32>
    %647 = vector.extract %646[0, 0, 0] : f32 from vector<1x1x1xf32>
    %648 = arith.divf %643, %647 : f32
    %649 = arith.mulf %616, %596 : vector<1x64xf32>
    %650 = vector.shape_cast %649 : vector<1x64xf32> to vector<1x1x64xf32>
    %cst_289 = arith.constant dense<0.000000e+00> : vector<1xf32>
    %651 = vector.multi_reduction <add>, %650, %cst_289 [1, 2] : vector<1x1x64xf32> to vector<1xf32>
    %652 = vector.shape_cast %651 : vector<1xf32> to vector<1x1x1xf32>
    %653 = vector.extract %652[0, 0, 0] : f32 from vector<1x1x1xf32>
    %654 = vector.shape_cast %616 : vector<1x64xf32> to vector<1x1x64xf32>
    %cst_290 = arith.constant dense<0.000000e+00> : vector<1xf32>
    %655 = vector.multi_reduction <add>, %654, %cst_290 [1, 2] : vector<1x1x64xf32> to vector<1xf32>
    %656 = vector.shape_cast %655 : vector<1xf32> to vector<1x1x1xf32>
    %657 = vector.extract %656[0, 0, 0] : f32 from vector<1x1x1xf32>
    %658 = arith.divf %653, %657 : f32
    %c0_i32_291 = arith.constant 0 : i32
    %659 = vector.broadcast %c0_i32_291 : i32 to vector<1x128xi32>
    %660 = arith.cmpi eq, %1, %659 : vector<1x128xi32>
    %661 = vector.broadcast %648 : f32 to vector<1x128xf32>
    %662 = arith.select %660, %661, %638 : vector<1x128xi1>, vector<1x128xf32>
    %c13_i32_292 = arith.constant 13 : i32
    %663 = vector.broadcast %c13_i32_292 : i32 to vector<1x128xi32>
    %664 = arith.cmpi eq, %1, %663 : vector<1x128xi32>
    %665 = vector.broadcast %658 : f32 to vector<1x128xf32>
    %666 = arith.select %664, %665, %662 : vector<1x128xi1>, vector<1x128xf32>
    %c7_293 = arith.constant 7 : index
    %c0_294 = arith.constant 0 : index
    %667 = vector.load %arg4[%c7_293, %c0_294] : memref<8x64xf32, #tpu.memory_space<vmem>>, vector<1x64xf32>
    tpu.vector_store %arg4[%c7_293, %c0_294], %596 {strides = array<i32>} : memref<8x64xf32, #tpu.memory_space<vmem>>, vector<1x64xf32>,
    %c7_295 = arith.constant 7 : index
    %c0_296 = arith.constant 0 : index
    %668 = vector.load %arg5[%c7_295, %c0_296] : memref<8x64xf32, #tpu.memory_space<vmem>>, vector<1x64xf32>
    tpu.vector_store %arg5[%c7_295, %c0_296], %605 {strides = array<i32>} : memref<8x64xf32, #tpu.memory_space<vmem>>, vector<1x64xf32>,
    %c7_297 = arith.constant 7 : index
    %c0_298 = arith.constant 0 : index
    %669 = vector.load %arg6[%c7_297, %c0_298] : memref<8x64xf32, #tpu.memory_space<vmem>>, vector<1x64xf32>
    tpu.vector_store %arg6[%c7_297, %c0_298], %616 {strides = array<i32>} : memref<8x64xf32, #tpu.memory_space<vmem>>, vector<1x64xf32>,
    %cst_299 = arith.constant 14.2857141 : f32
    %670 = vector.broadcast %cst_299 : f32 to vector<1x128xf32>
    %671 = arith.mulf %666, %670 : vector<1x128xf32>
    %c7_300 = arith.constant 7 : index
    %c0_301 = arith.constant 0 : index
    %672 = vector.load %arg7[%c7_300, %c0_301] : memref<8x128xf32, #tpu.memory_space<vmem>>, vector<1x128xf32>
    tpu.vector_store %arg7[%c7_300, %c0_301], %671 {strides = array<i32>} : memref<8x128xf32, #tpu.memory_space<vmem>>, vector<1x128xf32>,
    %cst_302 = arith.constant dense<0xFF800000> : vector<128xf32>
    %673 = vector.multi_reduction <maximumf>, %594, %cst_302 [0] : vector<64x128xf32> to vector<128xf32>
    %674 = vector.shape_cast %673 : vector<128xf32> to vector<1x128xf32>
    %c7_303 = arith.constant 7 : index
    %c0_304 = arith.constant 0 : index
    %675 = vector.load %arg8[%c7_303, %c0_304] : memref<8x128xf32, #tpu.memory_space<vmem>>, vector<1x128xf32>
    tpu.vector_store %arg8[%c7_303, %c0_304], %674 {strides = array<i32>} : memref<8x128xf32, #tpu.memory_space<vmem>>, vector<1x128xf32>,
    return
  }
  func.func @transform_0(%arg0: i32) -> (i32, i32, i32) {
    %c0_i32 = arith.constant 0 : i32
    %c0_i32_0 = arith.constant 0 : i32
    %c0_i32_1 = arith.constant 0 : i32
    return %arg0, %c0_i32, %c0_i32_0 : i32, i32, i32
  }
  func.func @transform_1(%arg0: i32) -> (i32, i32) {
    %c0_i32 = arith.constant 0 : i32
    %c0_i32_0 = arith.constant 0 : i32
    %c0_i32_1 = arith.constant 0 : i32
    return %c0_i32, %c0_i32_0 : i32, i32
  }
  func.func @transform_2(%arg0: i32) -> (i32, i32) {
    %c0_i32 = arith.constant 0 : i32
    %c0_i32_0 = arith.constant 0 : i32
    return %arg0, %c0_i32 : i32, i32
  }
  func.func @transform_3(%arg0: i32) -> (i32, i32) {
    %c0_i32 = arith.constant 0 : i32
    %c0_i32_0 = arith.constant 0 : i32
    return %arg0, %c0_i32 : i32, i32
  }
  func.func @transform_4(%arg0: i32) -> (i32, i32) {
    %c0_i32 = arith.constant 0 : i32
    %c0_i32_0 = arith.constant 0 : i32
    return %arg0, %c0_i32 : i32, i32
  }
  func.func @transform_5(%arg0: i32) -> (i32, i32) {
    %c0_i32 = arith.constant 0 : i32
    %c0_i32_0 = arith.constant 0 : i32
    return %arg0, %c0_i32 : i32, i32
  }
  func.func @transform_6(%arg0: i32) -> (i32, i32) {
    %c0_i32 = arith.constant 0 : i32
    %c0_i32_0 = arith.constant 0 : i32
    return %arg0, %c0_i32 : i32, i32
  }
  func.func @transform_7(%arg0: i32) -> (i32, i32) {
    %c0_i32 = arith.constant 0 : i32
    %c0_i32_0 = arith.constant 0 : i32
    return %arg0, %c0_i32 : i32, i32
  }
}

</mosaic_0001>

<bundles_post_ra>
// kernel: tpu_custom_call.1
= control target key start
LH: loop header
LB: loop body
LE: loop exit
PB: predicated region body
PF: predicated region fallthrough
CT: control target
= control target key end

     0   :  { %s6520_s0 = inlined_call_operand.vmem [shape: bf16[16,64,32], index: 0, kind: input, shape index: {}]   ;;  %s6521_s1 = inlined_call_operand.vmem [shape: bf16[128,32], index: 1, kind: input, shape index: {}]   ;;  %s6522_s2 = inlined_call_operand.vmem [shape: bf16[16,32], index: 2, kind: input, shape index: {}]   ;;  %s6523_s3 = inlined_call_operand.hbm [shape: f32[16,64], index: 3, kind: output, shape index: {0}]   ;;  %s6524_s4 = inlined_call_operand.hbm [shape: f32[16,64], index: 4, kind: output, shape index: {1}]   ;;  %s6525_s5 = inlined_call_operand.hbm [shape: f32[16,64], index: 5, kind: output, shape index: {2}]   ;;  %s6526_s6 = inlined_call_operand.hbm [shape: f32[16,128], index: 6, kind: output, shape index: {3}]   ;;  %s6527_s7 = inlined_call_operand.hbm [shape: f32[16,128], index: 7, kind: output, shape index: {4}]  }
   0x1   :  { %6531 = sst [smem:[#allocation14_spill]] %s6520_s0 }
   0x2   :  { %6532 = sst [smem:[#allocation15_spill]] %s6521_s1 }
   0x3   :  { %6533 = sst [smem:[#allocation16_spill]] %s6522_s2 }
   0x4   :  { %6534 = sst [smem:[#allocation17_spill]] %s6524_s4 }
   0x5   :  { %13 = vsyncpa [#allocation3], 0 }
   0x6   :  { %15 = vsyncpa [#allocation3 + $0x1], 0 }
   0x7   :  { %16 = vsyncpa [#allocation5], 0 }
   0x8   :  { %18 = vsyncpa [#allocation5 + $0x1], 0 }
   0x9   :  { %19 = vsyncpa [#allocation8], 0 }
   0xa   :  { %21 = vsyncpa [#allocation8 + $0x1], 0  ;;  %s5130_s24 = smov 0   ;;  %s5132_s25 = smov 0  }
   0xb   :  { %s5134_s26 = smov 0   ;;  %s5136_s27 = smov 0  }
   0xc LB: > { %s5151_s28 = sadd.s32 4294967295, %s5080_s27   ;;  %s6528_s29 = sadd.s32 4294967294, %s5080_s27   ;;  %s5080_s27 = sphi %s5136_s27, %s6550_s27   ;;  %s5076_s26 = sphi %s5134_s26, %s6549_s26   ;;  %s5072_s25 = sphi %s5132_s25, %s6548_s25   ;;  %s5068_s24 = sphi %s5130_s24, %s6547_s24  }
   0xd   : > { %s5155_s30 = sadd.s32 1, %s5080_s27   ;;  %s107_s8 = sadd.s32 1, %s5076_s26 }
   0xe   : > { %s104_s9 = ssub.s32 %s5080_s27, %s5155_s30  ;;  %p117_p0 = scmp.ne.s32.totalorder %s5076_s26, %s5072_s25 }
   0xf   : > { %p105_p1 = scmp.eq.s32.totalorder %s104_s9, 0  ;;  %p118_p2 = scmp.eq.s32.totalorder %s5151_s28, 1 }
  0x10   : > { %p123_p3 = scmp.ne.s32.totalorder %s5072_s25, %s5068_s24  ;;  %p124_p4 = scmp.eq.s32.totalorder %s6528_s29, 1 }
  0x11   : > { %s5168_s10 = scalar_select %p105_p1, %s5076_s26, %s107_s8  }
  0x12   : > { %p5170_p5 = por %p118_p2, %p117_p0  ;;  %p5174_p6 = por %p124_p4, %p123_p3 }
  0x13   : > { %6535 = sst [smem:[#allocation13_spill]] %s5168_s10  ;;  %p3502_p7 = scmp.ge.s32.totalorder %s5080_s27, 1 }
  0x14   : > { %p266_p8 = scmp.lt.s32.totalorder %s5080_s27, 3 }
  0x16   : > { %p267_p9 = pnand %p3502_p7, %p266_p8 }
  0x17   : > { %s5181_s13 = sshll.u32 (!%p267_p9), %s5151_s28, 3  ;;  %vm423_vm0 = vcmask (!%p267_p9), 261120   ;;  %s6538_s1 = sld [smem:[#allocation15_spill]] (!%p267_p9)  ;;  %v5082_v1 = vmov (!%p267_p9), 0.0   ;;  %vm5083_vm1 = vmmov (!%p267_p9), 0   ;;  %vm691_vm2 = vcmask (!%p267_p9), 516096  }
  0x18   : > { %270 = sbr.rel (%p267_p9) target bundleno = 1619 (0x653), region = 32  ;;  %3989 = vmatprep.subr.bf16.mxu1 (!%p267_p9), %v5082_v1  ;;  %p324_p10 = scmp.lt.s32.totalorder (!%p267_p9), %s5181_s13, 15  ;;  %3997 = vmatprep.mubr.msk.bf16.mxu1 (!%p267_p9), %vm5083_vm1, %v5082_v1 }
  0x19   : > { %s6539_s0 = sld [smem:[#allocation14_spill]] (!%p267_p9)  ;;  %p330_p11 = scmp.lt.s32.totalorder (!%p267_p9), %s5151_s28, 1 }
  0x1a   : > { %s6540_s2 = sld [smem:[#allocation16_spill]] (!%p267_p9)  ;;  %s6529_s17 = sand.u32 (!%p267_p9), 1, %s5072_s25  }
  0x1b   : > { %s354_s15 = sadd.s32 (!%p267_p9), 1, %s5181_s13  ;;  %s6541_s4 = sld [smem:[#allocation17_spill]] (!%p267_p9) }
  0x1d   : > { %v5186_v0 = vld [vmem:[%s6538_s1] sm:$0xff] (!%p267_p9)   ;;  %v5193_v2 = vld [vmem:[%s6538_s1 + $0x8] sm:$0xff] (!%p267_p9)   ;;  %v5221_v6 = vld [vmem:[%s6538_s1 + $0x10] sm:$0xff] (!%p267_p9)  }
  0x1e   : > { %4253 = vmatprep.subr.msk.bf16.mxu0 (!%p267_p9), %vm423_vm0, %v5186_v0  ;;  %v5199_v3 = vsel (!%p267_p9), %vm423_vm0, %v5186_v0, 0  ;;  %v5216_v5 = vsel (!%p267_p9), %vm423_vm0, %v5193_v2, 0  ;;  %v5234_v10 = vsel (!%p267_p9), %vm423_vm0, %v5221_v6, 0  ;;  %v5239_v11 = vld [vmem:[%s6538_s1 + $0x18] sm:$0xff] (!%p267_p9)   ;;  %v5249_v12 = vld [vmem:[%s6538_s1 + $0x20] sm:$0xff] (!%p267_p9)   ;;  %v5274_v19 = vld [vmem:[%s6538_s1 + $0x28] sm:$0xff] (!%p267_p9)  }
  0x1f   : > { %s325_s18 = scalar_select %p324_p10, %s5181_s13, 15  ;;  %3966 = vmatpush3.bf16.xpose.msra.mxu0 %v5199_v3  ;;  %v5260_v16 = vsel %vm423_vm0, %v5239_v11, 0  ;;  %v5265_v18 = vsel %vm423_vm0, %v5249_v12, 0  ;;  %v5284_v21 = vsel %vm423_vm0, %v5274_v19, 0  ;;  %v5289_v22 = vld [vmem:[%s6538_s1 + $0x30] sm:$0xff]   ;;  %v5307_v25 = vld [vmem:[%s6538_s1 + $0x38] sm:$0xff]  }
  0x20   : > { %4254 = vmatprep.subr.msk.bf16.mxu0 %vm423_vm0, %v5193_v2  ;;  %s331_s9 = scalar_select %p330_p11, %s5151_s28, 1  ;;  %v5302_v24 = vsel %vm423_vm0, %v5289_v22, 0  ;;  %v5317_v26 = vsel %vm423_vm0, %v5307_v25, 0 }
  0x21   : > { %s3828_s19 = sshll.u32 %s325_s18, 5  ;;  %s5453_s18 = sshll.u32 %s6529_s17, 3 }
  0x22   : > { %s5210_s22 = scalar_lea.vmem %s6539_s0, %s3828_s19  ;;  %s3511_s14 = sshll.u32 %s331_s9, 2 }
  0x23   : > { %v4475_v4 = vld [vmem:[%s5210_s22] sm:$0xff]   ;;  %v4476_v8 = vld [vmem:[%s5210_s22 + $0x8] sm:$0xff]   ;;  %s5244_s19 = scalar_lea.vmem %s6540_s2, %s3511_s14  ;;  %v4478_v13 = vld [vmem:[%s5210_s22 + $0x10] sm:$0xff]   ;;  %s5459_s20 = scalar_lea.vmem [#allocation2], %s5453_s18 }
  0x24   : > { %v425_v7 = vsel %vm423_vm0, %v4475_v4, 0  ;;  %3981 = vmatprep.mubr.msk.bf16.mxu0 %vm423_vm0, %v4475_v4  ;;  %v428_v9 = vsel %vm423_vm0, %v4476_v8, 0  ;;  %v4480_v14 = vld [vmem:[%s5210_s22 + $0x18] sm:$0xff]   ;;  %v431_v15 = vsel %vm423_vm0, %v4478_v13, 0  ;;  %v525_v20 = vld [vmem:[%s5244_s19] sm:$0x1] }
  0x25   : > { %3990 = vmatpush3.bf16.xpose.msra.mxu1 %v425_v7  ;;  %v434_v17 = vsel %vm423_vm0, %v4480_v14, 0  ;;  %v4487_v23 = vld [vmem:[%s5210_s22 + $0x20] sm:$0xff]   ;;  %v4488_v28 = vld [vmem:[%s5210_s22 + $0x28] sm:$0xff]   ;;  %v4489_v30 = vld [vmem:[%s5210_s22 + $0x30] sm:$0xff]   ;;  %s5488_s21 = scalar_lea.vmem [#allocation4], %s5453_s18  ;;  %s5496_s23 = scalar_lea.vmem [#allocation6], %s5453_s18 }
  0x26   : > { %3991 = vmatprep.subr.bf16.mxu1 %v5082_v1  ;;  %v796_v27 = vsel %vm423_vm0, %v4487_v23, 0  ;;  %v799_v29 = vsel %vm423_vm0, %v4488_v28, 0  ;;  %v802_v31 = vsel %vm423_vm0, %v4489_v30, 0  ;;  %v4490_v32 = vld [vmem:[%s5210_s22 + $0x38] sm:$0xff]   ;;  %v4492_v36 = vld [vmem:[%s5210_s22 + $0x40] sm:$0xff]   ;;  %v4493_v38 = vld [vmem:[%s5210_s22 + $0x48] sm:$0xff]  }
  0x27   : > { %3968 = vmatpush3.bf16.xpose.msra.mxu0 %v5216_v5  ;;  %v805_v33 = vsel %vm423_vm0, %v4490_v32, 0  ;;  %v4491_v34 = vld [vmem:[%s5244_s19] ss:$0 sps:$4 sm:$0x11]   ;;  %v1147_v37 = vsel %vm423_vm0, %v4492_v36, 0  ;;  %v1150_v39 = vsel %vm423_vm0, %v4493_v38, 0 }
  0x28   : > { %4255 = vmatprep.subr.msk.bf16.mxu0 %vm423_vm0, %v5221_v6  ;;  %v877_v35 = vshrl.u32 %v4491_v34, 16  ;;  %v4494_v40 = vld [vmem:[%s5210_s22 + $0x50] sm:$0xff]   ;;  %v4495_v42 = vld [vmem:[%s5210_s22 + $0x58] sm:$0xff]   ;;  %v4496_v44 = vld [vmem:[%s5244_s19] ss:$0 sps:$4 sm:$0x22]  }
  0x29   : > { %v1153_v41 = vsel %vm423_vm0, %v4494_v40, 0  ;;  %v1156_v43 = vsel %vm423_vm0, %v4495_v42, 0  ;;  %v1227_v45 = vrot.slane %v4496_v44, 1  ;;  %v4497_v46 = vld [vmem:[%s5210_s22 + $0x60] sm:$0xff]   ;;  %v4498_v47 = vld [vmem:[%s5210_s22 + $0x68] sm:$0xff]   ;;  %v4499_v49 = vld [vmem:[%s5210_s22 + $0x70] sm:$0xff]  }
  0x2a   : > { %v1496_v48 = vsel %vm423_vm0, %v4497_v46, 0  ;;  %v1499_v50 = vsel %vm423_vm0, %v4498_v47, 0  ;;  %v4500_v51 = vld [vmem:[%s5210_s22 + $0x78] sm:$0xff]   ;;  %v1502_v52 = vsel %vm423_vm0, %v4499_v49, 0  ;;  %s5530_s8 = scalar_lea.vmem [#allocation9], %s5453_s18 }
  0x2b   : > { %v4501_v53 = vld [vmem:[%s5244_s19] ss:$0 sps:$4 sm:$0x22]   ;;  %v1505_v54 = vsel %vm423_vm0, %v4500_v51, 0 }
  0x2c   : > { %v1577_v55 = vshrl.u32 %v4501_v53, 16 }
  0x2d   : > { %3992 = vmatpush3.bf16.xpose.msra.mxu1 %v428_v9 }
  0x2e   : > { %3993 = vmatprep.subr.bf16.mxu1 %v5082_v1  ;;  %v1579_v56 = vrot.slane %v1577_v55, 1 }
  0x2f   : > { %3970 = vmatpush3.bf16.xpose.msra.mxu0 %v5234_v10 }
  0x30   : > { %4256 = vmatprep.subr.msk.bf16.mxu0 %vm423_vm0, %v5239_v11 }
  0x35   : > { %3994 = vmatpush3.bf16.xpose.msra.mxu1 %v431_v15 }
  0x36   : > { %3995 = vmatprep.subr.bf16.mxu1 %v5082_v1 }
  0x37   : > { %3972 = vmatpush3.bf16.xpose.msra.mxu0 %v5260_v16 }
  0x38   : > { %4257 = vmatprep.subr.msk.bf16.mxu0 %vm423_vm0, %v5249_v12 }
  0x3d   : > { %3996 = vmatpush3.bf16.xpose.msra.mxu1 %v434_v17 }
  0x3e   : > { %4261 = vmatprep.subr.msk.bf16.mxu1 %vm423_vm0, %v5186_v0 }
  0x3f   : > { %3974 = vmatpush3.bf16.xpose.msra.mxu0 %v5265_v18 }
  0x40   : > { %4258 = vmatprep.subr.msk.bf16.mxu0 %vm423_vm0, %v5274_v19 }
  0x44   : > { %3998 = vmatmul.mubr.msk.bf16.vlgmr.msra.gmra.mrb[0].mxu1 %vm423_vm0, %v525_v20 }
  0x45   : > { %4002 = vmatpush3.bf16.xpose.msra.mxu1 %v5199_v3  ;;  %4017 = vmatprep.mubr.msk.bf16.mxu1 %vm423_vm0, %v4487_v23 }
  0x46   : > { %4262 = vmatprep.subr.msk.bf16.mxu1 %vm423_vm0, %v5193_v2 }
  0x47   : > { %3976 = vmatpush3.bf16.xpose.msra.mxu0 %v5284_v21 }
  0x48   : > { %4259 = vmatprep.subr.msk.bf16.mxu0 %vm423_vm0, %v5289_v22 }
  0x4d   : > { %4004 = vmatpush3.bf16.xpose.msra.mxu1 %v5216_v5 }
  0x4e   : > { %4263 = vmatprep.subr.msk.bf16.mxu1 %vm423_vm0, %v5221_v6 }
  0x4f   : > { %3978 = vmatpush3.bf16.xpose.msra.mxu0 %v5302_v24 }
  0x50   : > { %4260 = vmatprep.subr.msk.bf16.mxu0 %vm423_vm0, %v5307_v25 }
  0x55   : > { %4006 = vmatpush3.bf16.xpose.msra.mxu1 %v5234_v10 }
  0x56   : > { %4264 = vmatprep.subr.msk.bf16.mxu1 %vm423_vm0, %v5239_v11 }
  0x57   : > { %3980 = vmatpush3.bf16.xpose.msra.mxu0 %v5317_v26 }
  0x58   : > { %4025 = vmatprep.subr.bf16.mxu0 %v5082_v1 }
  0x5d   : > { %4008 = vmatpush3.bf16.xpose.msra.mxu1 %v5260_v16 }
  0x5e   : > { %3982 = vmatmul.mubr.msk.bf16.vlgmr.msra.gmra.mrb[0].mxu0 %vm423_vm0, %v4476_v8  ;;  %4265 = vmatprep.subr.msk.bf16.mxu1 %vm423_vm0, %v5249_v12 }
  0x5f   : > { %3985 = vmatprep.mubr.msk.bf16.mxu0 %vm423_vm0, %v4478_v13  ;;  %4026 = vmatpush3.bf16.xpose.msra.mxu0 %v796_v27 }
  0x60   : > { %4027 = vmatprep.subr.bf16.mxu0 %v5082_v1 }
  0x65   : > { %4010 = vmatpush3.bf16.xpose.msra.mxu1 %v5265_v18 }
  0x66   : > { %3986 = vmatmul.mubr.msk.bf16.gmra.mrb[4].mxu0 %vm423_vm0, %v4480_v14  ;;  %4266 = vmatprep.subr.msk.bf16.mxu1 %vm423_vm0, %v5274_v19 }
  0x67   : > { %4028 = vmatpush3.bf16.xpose.msra.mxu0 %v799_v29  ;;  %4033 = vmatprep.mubr.msk.bf16.mxu0 %vm5083_vm1, %v5082_v1 }
  0x68   : > { %4029 = vmatprep.subr.bf16.mxu0 %v5082_v1 }
  0x6d   : > { %4012 = vmatpush3.bf16.xpose.msra.mxu1 %v5284_v21 }
  0x6e   : > { %4267 = vmatprep.subr.msk.bf16.mxu1 %vm423_vm0, %v5289_v22 }
  0x6f   : > { %4030 = vmatpush3.bf16.xpose.msra.mxu0 %v802_v31 }
  0x70   : > { %4031 = vmatprep.subr.bf16.mxu0 %v5082_v1 }
  0x75   : > { %4014 = vmatpush3.bf16.xpose.msra.mxu1 %v5302_v24 }
  0x76   : > { %4268 = vmatprep.subr.msk.bf16.mxu1 %vm423_vm0, %v5307_v25 }
  0x77   : > { %4032 = vmatpush3.bf16.xpose.msra.mxu0 %v805_v33 }
  0x78   : > { %4269 = vmatprep.subr.msk.bf16.mxu0 %vm423_vm0, %v5186_v0 }
  0x7d   : > { %4016 = vmatpush3.bf16.xpose.msra.mxu1 %v5317_v26 }
  0x7e   : > { %4034 = vmatmul.mubr.msk.bf16.vlgmr.msra.gmra.mrb[8].mxu0 %vm423_vm0, %v877_v35  ;;  %4061 = vmatprep.subr.bf16.mxu1 %v5082_v1 }
  0x7f   : > { %4038 = vmatpush3.bf16.xpose.msra.mxu0 %v5199_v3  ;;  %4053 = vmatprep.mubr.msk.bf16.mxu0 %vm423_vm0, %v4492_v36 }
  0x80   : > { %4270 = vmatprep.subr.msk.bf16.mxu0 %vm423_vm0, %v5193_v2 }
  0x84   : > { %4018 = vmatmul.mubr.msk.bf16.vlgmr.msra.gmra.mrb[4].mxu1 %vm423_vm0, %v4488_v28 }
  0x85   : > { %4021 = vmatprep.mubr.msk.bf16.mxu1 %vm423_vm0, %v4489_v30  ;;  %4062 = vmatpush3.bf16.xpose.msra.mxu1 %v1147_v37 }
  0x86   : > { %4063 = vmatprep.subr.bf16.mxu1 %v5082_v1 }
  0x87   : > { %4040 = vmatpush3.bf16.xpose.msra.mxu0 %v5216_v5 }
  0x88   : > { %4271 = vmatprep.subr.msk.bf16.mxu0 %vm423_vm0, %v5221_v6 }
  0x8c   : > { %4022 = vmatmul.mubr.msk.bf16.gmra.mrb[8].mxu1 %vm423_vm0, %v4490_v32 }
  0x8d   : > { %4064 = vmatpush3.bf16.xpose.msra.mxu1 %v1150_v39  ;;  %4069 = vmatprep.mubr.msk.bf16.mxu1 %vm5083_vm1, %v5082_v1 }
  0x8e   : > { %4065 = vmatprep.subr.bf16.mxu1 %v5082_v1 }
  0x8f   : > { %4042 = vmatpush3.bf16.xpose.msra.mxu0 %v5234_v10 }
  0x90   : > { %4272 = vmatprep.subr.msk.bf16.mxu0 %vm423_vm0, %v5239_v11 }
  0x95   : > { %4066 = vmatpush3.bf16.xpose.msra.mxu1 %v1153_v41 }
  0x96   : > { %4067 = vmatprep.subr.bf16.mxu1 %v5082_v1 }
  0x97   : > { %4044 = vmatpush3.bf16.xpose.msra.mxu0 %v5260_v16 }
  0x98   : > { %4273 = vmatprep.subr.msk.bf16.mxu0 %vm423_vm0, %v5249_v12 }
  0x9d   : > { %4068 = vmatpush3.bf16.xpose.msra.mxu1 %v1156_v43 }
  0x9e   : > { %4277 = vmatprep.subr.msk.bf16.mxu1 %vm423_vm0, %v5186_v0 }
  0x9f   : > { %4046 = vmatpush3.bf16.xpose.msra.mxu0 %v5265_v18 }
  0xa0   : > { %4274 = vmatprep.subr.msk.bf16.mxu0 %vm423_vm0, %v5274_v19 }
  0xa4   : > { %4070 = vmatmul.mubr.msk.bf16.vlgmr.msra.gmra.mrb[12].mxu1 %vm423_vm0, %v1227_v45 }
  0xa5   : > { %4074 = vmatpush3.bf16.xpose.msra.mxu1 %v5199_v3  ;;  %4089 = vmatprep.mubr.msk.bf16.mxu1 %vm423_vm0, %v4497_v46 }
  0xa6   : > { %4278 = vmatprep.subr.msk.bf16.mxu1 %vm423_vm0, %v5193_v2 }
  0xa7   : > { %4048 = vmatpush3.bf16.xpose.msra.mxu0 %v5284_v21 }
  0xa8   : > { %4275 = vmatprep.subr.msk.bf16.mxu0 %vm423_vm0, %v5289_v22 }
  0xad   : > { %4076 = vmatpush3.bf16.xpose.msra.mxu1 %v5216_v5 }
  0xae   : > { %4279 = vmatprep.subr.msk.bf16.mxu1 %vm423_vm0, %v5221_v6 }
  0xaf   : > { %4050 = vmatpush3.bf16.xpose.msra.mxu0 %v5302_v24 }
  0xb0   : > { %4276 = vmatprep.subr.msk.bf16.mxu0 %vm423_vm0, %v5307_v25 }
  0xb5   : > { %4078 = vmatpush3.bf16.xpose.msra.mxu1 %v5234_v10 }
  0xb6   : > { %4280 = vmatprep.subr.msk.bf16.mxu1 %vm423_vm0, %v5239_v11 }
  0xb7   : > { %4052 = vmatpush3.bf16.xpose.msra.mxu0 %v5317_v26 }
  0xb8   : > { %4097 = vmatprep.subr.bf16.mxu0 %v5082_v1 }
  0xbd   : > { %4080 = vmatpush3.bf16.xpose.msra.mxu1 %v5260_v16 }
  0xbe   : > { %4054 = vmatmul.mubr.msk.bf16.vlgmr.msra.gmra.mrb[12].mxu0 %vm423_vm0, %v4493_v38  ;;  %4281 = vmatprep.subr.msk.bf16.mxu1 %vm423_vm0, %v5249_v12 }
  0xbf   : > { %4057 = vmatprep.mubr.msk.bf16.mxu0 %vm423_vm0, %v4494_v40  ;;  %4098 = vmatpush3.bf16.xpose.msra.mxu0 %v1496_v48 }
  0xc0   : > { %4099 = vmatprep.subr.bf16.mxu0 %v5082_v1 }
  0xc5   : > { %4082 = vmatpush3.bf16.xpose.msra.mxu1 %v5265_v18 }
  0xc6   : > { %4058 = vmatmul.mubr.msk.bf16.gmra.mrb[16].mxu0 %vm423_vm0, %v4495_v42  ;;  %4282 = vmatprep.subr.msk.bf16.mxu1 %vm423_vm0, %v5274_v19 }
  0xc7   : > { %4105 = vmatprep.mubr.msk.bf16.mxu0 %vm5083_vm1, %v5082_v1  ;;  %4100 = vmatpush3.bf16.xpose.msra.mxu0 %v1499_v50 }
  0xc8   : > { %4101 = vmatprep.subr.bf16.mxu0 %v5082_v1 }
  0xcd   : > { %4084 = vmatpush3.bf16.xpose.msra.mxu1 %v5284_v21 }
  0xce   : > { %4283 = vmatprep.subr.msk.bf16.mxu1 %vm423_vm0, %v5289_v22 }
  0xcf   : > { %4102 = vmatpush3.bf16.xpose.msra.mxu0 %v1502_v52 }
  0xd0   : > { %4103 = vmatprep.subr.bf16.mxu0 %v5082_v1 }
  0xd5   : > { %4086 = vmatpush3.bf16.xpose.msra.mxu1 %v5302_v24 }
  0xd6   : > { %4284 = vmatprep.subr.msk.bf16.mxu1 %vm423_vm0, %v5307_v25 }
  0xd7   : > { %4104 = vmatpush3.bf16.xpose.msra.mxu0 %v1505_v54 }
  0xd8   : > { %4285 = vmatprep.subr.msk.bf16.mxu0 %vm423_vm0, %v5186_v0 }
  0xdd   : > { %4088 = vmatpush3.bf16.xpose.msra.mxu1 %v5317_v26 }
  0xde   : > { %4133 = vmatprep.subr.bf16.mxu1 %v5082_v1  ;;  %4106 = vmatmul.mubr.msk.bf16.vlgmr.msra.gmra.mrb[20].mxu0 %vm423_vm0, %v1579_v56 }
  0xdf   : > { %4110 = vmatpush3.bf16.xpose.msra.mxu0 %v5199_v3 }
  0xe0   : > { %4286 = vmatprep.subr.msk.bf16.mxu0 %vm423_vm0, %v5193_v2 }
  0xe4   : > { %4090 = vmatmul.mubr.msk.bf16.vlgmr.msra.gmra.mrb[16].mxu1 %vm423_vm0, %v4498_v47 }
  0xe5   : > { %4093 = vmatprep.mubr.msk.bf16.mxu1 %vm423_vm0, %v4499_v49 }
  0xe7   : > { %4112 = vmatpush3.bf16.xpose.msra.mxu0 %v5216_v5 }
  0xe8   : > { %4287 = vmatprep.subr.msk.bf16.mxu0 %vm423_vm0, %v5221_v6 }
  0xec   : > { %4094 = vmatmul.mubr.msk.bf16.gmra.mrb[20].mxu1 %vm423_vm0, %v4500_v51 }
  0xed   : > { %4141 = vmatprep.mubr.msk.bf16.mxu1 %vm5083_vm1, %v5082_v1 }
  0xef   : > { %4114 = vmatpush3.bf16.xpose.msra.mxu0 %v5234_v10 }
  0xf0   : > { %4288 = vmatprep.subr.msk.bf16.mxu0 %vm423_vm0, %v5239_v11 }
  0xf7   : > { %4116 = vmatpush3.bf16.xpose.msra.mxu0 %v5260_v16 }
  0xf8   : > { %4289 = vmatprep.subr.msk.bf16.mxu0 %vm423_vm0, %v5249_v12 }
  0xff   : > { %4118 = vmatpush3.bf16.xpose.msra.mxu0 %v5265_v18 }
 0x100   : > { %4290 = vmatprep.subr.msk.bf16.mxu0 %vm423_vm0, %v5274_v19 }
 0x107   : > { %4120 = vmatpush3.bf16.xpose.msra.mxu0 %v5284_v21 }
 0x108   : > { %4291 = vmatprep.subr.msk.bf16.mxu0 %vm423_vm0, %v5289_v22 }
 0x10f   : > { %4122 = vmatpush3.bf16.xpose.msra.mxu0 %v5302_v24 }
 0x110   : > { %4292 = vmatprep.subr.msk.bf16.mxu0 %vm423_vm0, %v5307_v25 }
 0x117   : > { %v563_v57 = vpop.f32.mrb[0].mxu1  ;;  %4124 = vmatpush3.bf16.xpose.msra.mxu0 %v5317_v26 }
 0x118   : > { %v3530_v58 = vadd.f32 -0.65, %v563_v57  ;;  %v3532_v59 = vadd.f32 -0.4, %v563_v57  ;;  %747 = vst.msk [vmem:[%s5459_s20] sm:$0x1] %vm691_vm2, %v563_v57  ;;  %4169 = vmatprep.subr.bf16.mxu0 %v5082_v1 }
 0x119   : > { %v3999_v60 = vpop.f32.mrb[1].mxu1 }
 0x11a   : > { %v566_v61 = vpop.f32.mrb[2].mxu1  ;;  %v3531_v62 = vmul.f32 -33.333332, %v3530_v58  ;;  %v3533_v63 = vmul.f32 -33.333332, %v3532_v59 }
 0x11b   : > { %v4000_v0 = vpop.f32.mrb[3].mxu1 }
 0x11c   : > { %v572_v2 = vmul.f32 1.442695, %v3531_v62  ;;  %v580_v4 = vmul.f32 1.442695, %v3533_v63 }
 0x11e   : > { %4522 = vpow2.f32 %v572_v2 }
 0x11f   : > { %4524 = vpow2.f32 %v580_v4 }
 0x128   : > { %v4523_v7 = vpop.eup %4522 }
 0x129   : > { %v4525_v8 = vpop.eup %4524  ;;  %v574_v9 = vadd.f32 1.0, %v4523_v7 }
 0x12a   : > { %v582_v13 = vadd.f32 1.0, %v4525_v8 }
 0x12b   : > { %4526 = vrcp.f32 %v574_v9 }
 0x12c   : > { %4528 = vrcp.f32 %v582_v13 }
 0x131   : > { %v5472_v6 = vpop.f32.mrb[0].mxu0 }
 0x132   : > { %v3536_v14 = vadd.f32 -0.65, %v5472_v6  ;;  %v5475_v15 = vpop.f32.mrb[1].mxu0 }
 0x133   : > { %v3534_v11 = vadd.f32 -0.65, %v5475_v15  ;;  %v5478_v17 = vpop.f32.mrb[2].mxu0 }
 0x134   : > { %v3544_v20 = vmul.f32 -33.333332, %v3536_v14  ;;  %v3537_v23 = vadd.f32 -0.65, %v5478_v17  ;;  %v5482_v27 = vpop.f32.mrb[3].mxu0 }
 0x135   : > { %v3542_v12 = vmul.f32 -33.333332, %v3534_v11  ;;  %v3535_v28 = vadd.f32 -0.65, %v5482_v27  ;;  %v4527_v29 = vpop.eup %4526 }
 0x136   : > { %v614_v30 = vmul.f32 1.442695, %v3544_v20  ;;  %v3545_v31 = vmul.f32 -33.333332, %v3537_v23  ;;  %v4529_v32 = vpop.eup %4528  ;;  %748 = vst.msk [vmem:[%s5488_s21] sm:$0x1] %vm691_vm2, %v4527_v29  ;;  %v690_v33 = vmul.f32 %v4527_v29, %v563_v57 }
 0x137   : > { %v610_v34 = vmul.f32 1.442695, %v3542_v12  ;;  %v3543_v35 = vmul.f32 -33.333332, %v3535_v28  ;;  %v585_v36 = vsub.f32 1.0, %v4529_v32  ;;  %v702_v52 = vsel %vm691_vm2, %v4527_v29, 0.0 }
 0x138   : > { %4530 = vpow2.f32 %v614_v30  ;;  %v616_v37 = vmul.f32 1.442695, %v3545_v31  ;;  %v692_v19 = vsel %vm691_vm2, %v690_v33, 0.0 }
 0x139   : > { %4532 = vpow2.f32 %v610_v34  ;;  %v612_v38 = vmul.f32 1.442695, %v3543_v35  ;;  %v5493_v39 = vpop.f32.mrb[4].mxu0  ;;  %693 = vadd.xlane.f32.xlu0 %v692_v19  ;;  %v716_v40 = vmul.f32 %v585_v36, %v563_v57  ;;  %749 = vst.msk [vmem:[%s5496_s23] sm:$0x1] %vm691_vm2, %v585_v36  ;;  %v727_v62 = vsel %vm691_vm2, %v585_v36, 0.0 }
 0x13a   : > { %4534 = vpow2.f32 %v616_v37  ;;  %v3540_v41 = vadd.f32 -0.65, %v5493_v39  ;;  %v5501_v42 = vpop.f32.mrb[5].mxu0  ;;  %v754_v43 = vmax.f32 %v5472_v6, %v5493_v39 }
 0x13b   : > { %4536 = vpow2.f32 %v612_v38  ;;  %v3538_v44 = vadd.f32 -0.65, %v5501_v42  ;;  %v752_v45 = vmax.f32 %v5475_v15, %v5501_v42  ;;  %v5508_v46 = vpop.f32.mrb[6].mxu0  ;;  %v717_v47 = vsel %vm691_vm2, %v716_v40, 0.0 }
 0x13c   : > { %v3548_v48 = vmul.f32 -33.333332, %v3540_v41  ;;  %v3541_v49 = vadd.f32 -0.65, %v5508_v46  ;;  %v755_v50 = vmax.f32 %v5478_v17, %v5508_v46  ;;  %v5515_v51 = vpop.f32.mrb[7].mxu0  ;;  %718 = vadd.xlane.f32.xlu1 %v717_v47 }
 0x13d   : > { %v3546_v53 = vmul.f32 -33.333332, %v3538_v44  ;;  %v3539_v54 = vadd.f32 -0.65, %v5515_v51  ;;  %v753_v55 = vmax.f32 %v5482_v27, %v5515_v51  ;;  %703 = vadd.xlane.f32.xlu0 %v702_v52 }
 0x13e   : > { %v622_v56 = vmul.f32 1.442695, %v3548_v48  ;;  %v3549_v57 = vmul.f32 -33.333332, %v3541_v49  ;;  %v757_v58 = vmax.f32 %v754_v43, %v755_v50 }
 0x13f   : > { %v618_v59 = vmul.f32 1.442695, %v3546_v53  ;;  %v3547_v60 = vmul.f32 -33.333332, %v3539_v54  ;;  %v756_v61 = vmax.f32 %v752_v45, %v753_v55 }
 0x140   : > { %4538 = vpow2.f32 %v622_v56  ;;  %v624_v22 = vmul.f32 1.442695, %v3549_v57  ;;  %728 = vadd.xlane.f32.xlu1 %v727_v62 }
 0x141   : > { %4540 = vpow2.f32 %v618_v59  ;;  %v620_v63 = vmul.f32 1.442695, %v3547_v60  ;;  %v758_v0 = vmax.f32 %v756_v61, %v757_v58 }
 0x142   : > { %v4531_v2 = vpop.eup %4530  ;;  %4542 = vpow2.f32 %v624_v22  ;;  %v4502_v22 = vld [vmem:[%s5210_s22 + $0x80] sm:$0xff]  }
 0x143   : > { %v4533_v4 = vpop.eup %4532  ;;  %v628_v7 = vadd.f32 1.0, %v4531_v2  ;;  %4544 = vpow2.f32 %v620_v63  ;;  %v759_v8 = vrot.slane %v758_v0, 4  ;;  %4125 = vmatprep.mubr.msk.bf16.mxu0 %vm423_vm0, %v4502_v22 }
 0x144   : > { %v4535_v9 = vpop.eup %4534  ;;  %v626_v13 = vadd.f32 1.0, %v4533_v4 }
 0x145   : > { %v4537_v14 = vpop.eup %4536  ;;  %v760_v11 = vmax.f32 %v758_v0, %v759_v8  ;;  %v629_v20 = vadd.f32 1.0, %v4535_v9  ;;  %v5552_v8 = vld [vmem:[%s5210_s22 + $0x90] sm:$0xff]  }
 0x146   : > { %4546 = vrcp.f32 %v626_v13  ;;  %v627_v23 = vadd.f32 1.0, %v4537_v14 }
 0x147   : > { %4548 = vrcp.f32 %v628_v7  ;;  %v761_v12 = vrot.slane %v760_v11, 2  ;;  %v4503_v7 = vld [vmem:[%s5210_s22 + $0x88] sm:$0xff]  }
 0x148   : > { %4550 = vrcp.f32 %v627_v23  ;;  %v1848_v23 = vsel %vm423_vm0, %v4502_v22, 0  ;;  %4126 = vmatmul.mubr.msk.bf16.vlgmr.msra.gmra.mrb[24].mxu0 %vm423_vm0, %v4503_v7 }
 0x149   : > { %v762_v28 = vmax.f32 %v760_v11, %v761_v12  ;;  %4552 = vrcp.f32 %v629_v20  ;;  %4134 = vmatpush3.bf16.xpose.msra.mxu1 %v1848_v23  ;;  %4129 = vmatprep.mubr.msk.bf16.mxu0 %vm423_vm0, %v5552_v8 }
 0x14a   : > { %v4539_v29 = vpop.eup %4538  ;;  %4135 = vmatprep.subr.bf16.mxu1 %v5082_v1 }
 0x14b   : > { %v4541_v30 = vpop.eup %4540  ;;  %v632_v31 = vadd.f32 1.0, %v4539_v29  ;;  %v763_v32 = vrot.slane %v762_v28, 1 }
 0x14c   : > { %v4543_v33 = vpop.eup %4542  ;;  %v630_v34 = vadd.f32 1.0, %v4541_v30 }
 0x14d   : > { %v4545_v25 = vpop.eup %4544  ;;  %v764_v35 = vmax.f32 %v762_v28, %v763_v32  ;;  %v633_v36 = vadd.f32 1.0, %v4543_v33 }
 0x14e   : > { %4554 = vrcp.f32 %v630_v34  ;;  %v631_v37 = vadd.f32 1.0, %v4545_v25 }
 0x14f   : > { %4556 = vrcp.f32 %v632_v31  ;;  %765 = vst [vmem:[%s5530_s8] sm:$0x1] %v764_v35 }
 0x150   : > { %v4547_v19 = vpop.eup %4546  ;;  %4558 = vrcp.f32 %v631_v37 }
 0x151   : > { %v4549_v38 = vpop.eup %4548  ;;  %v650_v40 = vmul.f32 %v4547_v19, %v5475_v15  ;;  %v5534_v41 = vpop.f32.mrb[8].mxu0  ;;  %4560 = vrcp.f32 %v633_v36 }
 0x152   : > { %v4551_v43 = vpop.eup %4550  ;;  %v3568_v44 = vadd.f32 -0.65, %v5534_v41  ;;  %v3570_v45 = vadd.f32 -0.4, %v5534_v41  ;;  %1098 = vst.msk [vmem:[%s5459_s20 + $0x1] sm:$0x1] %vm691_vm2, %v5534_v41  ;;  %v652_v48 = vmul.f32 %v4549_v38, %v5472_v6 }
 0x153   : > { %v4035_v47 = vpop.f32.mrb[9].mxu0  ;;  %v651_v49 = vmul.f32 %v4551_v43, %v5482_v27  ;;  %v671_v50 = vadd.f32 %v4551_v43, %v4547_v19  ;;  %v4553_v15 = vpop.eup %4552 }
 0x154   : > { %v919_v52 = vpop.f32.mrb[10].mxu0  ;;  %v3569_v53 = vmul.f32 -33.333332, %v3568_v44  ;;  %v3571_v54 = vmul.f32 -33.333332, %v3570_v45  ;;  %v653_v56 = vmul.f32 %v4553_v15, %v5478_v17  ;;  %v1851_v47 = vsel %vm423_vm0, %v4503_v7, 0 }
 0x155   : > { %v4036_v55 = vpop.f32.mrb[11].mxu0  ;;  %v658_v57 = vadd.f32 %v651_v49, %v650_v40  ;;  %v672_v58 = vadd.f32 %v4549_v38, %v671_v50  ;;  %4136 = vmatpush3.bf16.xpose.msra.mxu1 %v1851_v47 }
 0x156   : > { %v925_v59 = vmul.f32 1.442695, %v3569_v53  ;;  %v933_v60 = vmul.f32 1.442695, %v3571_v54  ;;  %4137 = vmatprep.subr.bf16.mxu1 %v5082_v1 }
 0x157   : > { %v659_v61 = vadd.f32 %v658_v57, %v652_v48  ;;  %v673_v62 = vadd.f32 %v4553_v15, %v672_v58  ;;  %v5544_v27 = vpop.f32.mrb[4].mxu1 }
 0x158   : > { %v4555_v6 = vpop.eup %4554  ;;  %4562 = vpow2.f32 %v925_v59  ;;  %v5548_v17 = vpop.f32.mrb[5].mxu1  ;;  %v3574_v14 = vadd.f32 -0.65, %v5544_v27 }
 0x159   : > { %v4557_v63 = vpop.eup %4556  ;;  %v654_v0 = vmul.f32 %v4555_v6, %v5501_v42  ;;  %v660_v2 = vadd.f32 %v659_v61, %v653_v56  ;;  %v674_v4 = vadd.f32 %v4555_v6, %v673_v62  ;;  %4564 = vpow2.f32 %v933_v60  ;;  %v5557_v20 = vpop.f32.mrb[6].mxu1 }
 0x15a   : > { %v4559_v9 = vpop.eup %4558  ;;  %v656_v13 = vmul.f32 %v4557_v63, %v5493_v39  ;;  %v3572_v11 = vadd.f32 -0.65, %v5548_v17  ;;  %v3575_v29 = vadd.f32 -0.65, %v5557_v20  ;;  %v5563_v30 = vpop.f32.mrb[7].mxu1 }
 0x15b   : > { %v661_v42 = vadd.f32 %v660_v2, %v654_v0  ;;  %v655_v12 = vmul.f32 %v4559_v9, %v5515_v51  ;;  %v675_v28 = vadd.f32 %v4559_v9, %v674_v4  ;;  %v4561_v39 = vpop.eup %4560  ;;  %v3582_v31 = vmul.f32 -33.333332, %v3574_v14 }
 0x15c   : > { %v3580_v32 = vmul.f32 -33.333332, %v3572_v11  ;;  %v3573_v33 = vadd.f32 -0.65, %v5563_v30  ;;  %v657_v51 = vmul.f32 %v4561_v39, %v5508_v46  ;;  %v3583_v35 = vmul.f32 -33.333332, %v3575_v29 }
 0x15d   : > { %v662_v34 = vadd.f32 %v661_v42, %v655_v12  ;;  %v676_v25 = vadd.f32 %v4557_v63, %v675_v28  ;;  %v967_v36 = vmul.f32 1.442695, %v3582_v31  ;;  %v1854_v11 = vsel %vm423_vm0, %v5552_v8, 0 }
 0x15e   : > { %v963_v37 = vmul.f32 1.442695, %v3580_v32  ;;  %v3581_v19 = vmul.f32 -33.333332, %v3573_v33  ;;  %v969_v43 = vmul.f32 1.442695, %v3583_v35  ;;  %4138 = vmatpush3.bf16.xpose.msra.mxu1 %v1854_v11 }
 0x15f   : > { %v663_v38 = vadd.f32 %v662_v34, %v656_v13  ;;  %v677_v40 = vadd.f32 %v4561_v39, %v676_v25  ;;  %4566 = vpow2.f32 %v967_v36  ;;  %v5571_v45 = vpop.f32.mrb[8].mxu1  ;;  %4139 = vmatprep.subr.bf16.mxu1 %v5082_v1 }
 0x160   : > { %v965_v44 = vmul.f32 1.442695, %v3581_v19  ;;  %4568 = vpow2.f32 %v963_v37  ;;  %v3578_v49 = vadd.f32 -0.65, %v5571_v45  ;;  %v5575_v46 = vpop.f32.mrb[9].mxu1  ;;  %v1105_v52 = vmax.f32 %v5544_v27, %v5571_v45 }
 0x161   : > { %v664_v48 = vadd.f32 %v663_v38, %v657_v51  ;;  %4570 = vpow2.f32 %v969_v43  ;;  %v3576_v15 = vadd.f32 -0.65, %v5575_v46  ;;  %v1103_v53 = vmax.f32 %v5548_v17, %v5575_v46  ;;  %v5582_v54 = vpop.f32.mrb[10].mxu1 }
 0x162   : > { %v4563_v50 = vpop.eup %4562  ;;  %v678_v56 = vrot.slane %v677_v40, 4  ;;  %4572 = vpow2.f32 %v965_v44  ;;  %v3586_v58 = vmul.f32 -33.333332, %v3578_v49  ;;  %v5584_v59 = vpop.f32.mrb[11].mxu1  ;;  %v3579_v62 = vadd.f32 -0.65, %v5582_v54 }
 0x163   : > { %v4565_v55 = vpop.eup %4564  ;;  %v927_v57 = vadd.f32 1.0, %v4563_v50  ;;  %v3584_v61 = vmul.f32 -33.333332, %v3576_v15  ;;  %v1106_v6 = vmax.f32 %v5557_v20, %v5582_v54  ;;  %v665_v22 = vrot.slane %v664_v48, 4 }
 0x164   : > { %v935_v60 = vadd.f32 1.0, %v4565_v55  ;;  %v975_v63 = vmul.f32 1.442695, %v3586_v58  ;;  %v3577_v0 = vadd.f32 -0.65, %v5584_v59  ;;  %v1104_v13 = vmax.f32 %v5563_v30, %v5584_v59 }
 0x165   : > { %4574 = vrcp.f32 %v927_v57  ;;  %v971_v2 = vmul.f32 1.442695, %v3584_v61  ;;  %v3587_v4 = vmul.f32 -33.333332, %v3579_v62  ;;  %v1108_v7 = vmax.f32 %v1105_v52, %v1106_v6 }
 0x166   : > { %4576 = vrcp.f32 %v935_v60  ;;  %v3585_v9 = vmul.f32 -33.333332, %v3577_v0  ;;  %v679_v23 = vadd.f32 %v678_v56, %v677_v40  ;;  %v1107_v12 = vmax.f32 %v1103_v53, %v1104_v13 }
 0x167   : > { %4578 = vpow2.f32 %v975_v63  ;;  %v977_v14 = vmul.f32 1.442695, %v3587_v4  ;;  %v666_v29 = vadd.f32 %v665_v22, %v664_v48 }
 0x168   : > { %4580 = vpow2.f32 %v971_v2  ;;  %v973_v42 = vmul.f32 1.442695, %v3585_v9  ;;  %v680_v39 = vrot.slane %v679_v23, 2  ;;  %v1109_v33 = vmax.f32 %v1107_v12, %v1108_v7 }
 0x169   : > { %v4567_v28 = vpop.eup %4566  ;;  %4582 = vpow2.f32 %v977_v14  ;;  %v667_v37 = vrot.slane %v666_v29, 2 }
 0x16a   : > { %v4569_v31 = vpop.eup %4568  ;;  %v981_v32 = vadd.f32 1.0, %v4567_v28  ;;  %4584 = vpow2.f32 %v973_v42  ;;  %v681_v25 = vadd.f32 %v680_v39, %v679_v23  ;;  %v1110_v36 = vrot.slane %v1109_v33, 4 }
 0x16b   : > { %v4571_v51 = vpop.eup %4570  ;;  %v979_v34 = vadd.f32 1.0, %v4569_v31  ;;  %v668_v55 = vadd.f32 %v667_v37, %v666_v29 }
 0x16c   : > { %v4573_v35 = vpop.eup %4572  ;;  %v982_v8 = vadd.f32 1.0, %v4571_v51  ;;  %v682_v38 = vrot.slane %v681_v25, 1  ;;  %v1111_v43 = vmax.f32 %v1109_v33, %v1110_v36 }
 0x16d   : > { %4586 = vrcp.f32 %v979_v34  ;;  %v980_v19 = vadd.f32 1.0, %v4573_v35  ;;  %v669_v7 = vrot.slane %v668_v55, 1 }
 0x16e   : > { %4588 = vrcp.f32 %v981_v32  ;;  %v683_v49 = vadd.f32 %v682_v38, %v681_v25  ;;  %v1112_v15 = vrot.slane %v1111_v43, 2 }
 0x16f   : > { %v4575_v40 = vpop.eup %4574  ;;  %4590 = vrcp.f32 %v980_v19  ;;  %v670_v31 = vadd.f32 %v669_v7, %v668_v55  ;;  %v5633_v7 = vld [vmem:[%s6538_s1] sm:$0xff]  }
 0x170   : > { %v4577_v44 = vpop.eup %4576  ;;  %1099 = vst.msk [vmem:[%s5488_s21 + $0x1] sm:$0x1] %vm691_vm2, %v4575_v40  ;;  %v1044_v47 = vmul.f32 %v4575_v40, %v5534_v41  ;;  %v1055_v48 = vsel %vm691_vm2, %v4575_v40, 0.0  ;;  %4592 = vrcp.f32 %v982_v8  ;;  %v1113_v62 = vmax.f32 %v1111_v43, %v1112_v15 }
 0x171   : > { %v4579_v50 = vpop.eup %4578  ;;  %v938_v52 = vsub.f32 1.0, %v4577_v44  ;;  %1056 = vadd.xlane.f32.xlu1 %v1055_v48  ;;  %4594 = vrcp.f32 %v683_v49 }
 0x172   : > { %v4581_v53 = vpop.eup %4580  ;;  %v1045_v56 = vsel %vm691_vm2, %v1044_v47, 0.0  ;;  %v985_v57 = vadd.f32 1.0, %v4579_v50  ;;  %v1114_v0 = vrot.slane %v1113_v62, 1 }
 0x173   : > { %1046 = vadd.xlane.f32.xlu0 %v1045_v56  ;;  %v1069_v58 = vmul.f32 %v938_v52, %v5534_v41  ;;  %1100 = vst.msk [vmem:[%s5496_s23 + $0x1] sm:$0x1] %vm691_vm2, %v938_v52  ;;  %v1080_v60 = vsel %vm691_vm2, %v938_v52, 0.0  ;;  %v983_v61 = vadd.f32 1.0, %v4581_v53  ;;  %v4583_v6 = vpop.eup %4582 }
 0x174   : > { %v4585_v22 = vpop.eup %4584  ;;  %v986_v2 = vadd.f32 1.0, %v4583_v6  ;;  %v1115_v41 = vmax.f32 %v1113_v62, %v1114_v0 }
 0x175   : > { %v1070_v63 = vsel %vm691_vm2, %v1069_v58, 0.0  ;;  %1081 = vadd.xlane.f32.xlu1 %v1080_v60  ;;  %4596 = vrcp.f32 %v983_v61  ;;  %v984_v4 = vadd.f32 1.0, %v4585_v22  ;;  %v4505_v61 = vld [vmem:[%s5210_s22 + $0x98] sm:$0xff]  }
 0x176   : > { %4598 = vrcp.f32 %v985_v57  ;;  %1116 = vst [vmem:[%s5530_s8 + $0x1] sm:$0x1] %v1115_v41  ;;  %4130 = vmatmul.mubr.msk.bf16.gmra.mrb[28].mxu0 %vm423_vm0, %v4505_v61 }
 0x177   : > { %1071 = vadd.xlane.f32.xlu0 %v1070_v63  ;;  %v4587_v9 = vpop.eup %4586  ;;  %4600 = vrcp.f32 %v984_v4  ;;  %v5606_v13 = vpop.f32.mrb[12].mxu1  ;;  %4177 = vmatprep.mubr.msk.bf16.mxu0 %vm5083_vm1, %v5082_v1 }
 0x178   : > { %v4589_v14 = vpop.eup %4588  ;;  %v1003_v11 = vmul.f32 %v4587_v9, %v5548_v17  ;;  %v3606_v23 = vadd.f32 -0.65, %v5606_v13  ;;  %v3608_v42 = vadd.f32 -0.4, %v5606_v13  ;;  %1447 = vst.msk [vmem:[%s5459_s20 + $0x2] sm:$0x1] %vm691_vm2, %v5606_v13  ;;  %4602 = vrcp.f32 %v986_v2 }
 0x179   : > { %v4071_v12 = vpop.f32.mrb[13].mxu1  ;;  %v4591_v28 = vpop.eup %4590  ;;  %v1005_v29 = vmul.f32 %v4589_v14, %v5544_v27  ;;  %v4506_v2 = vld [vmem:[%s5244_s19] ss:$0 sps:$4 sm:$0x44]  }
 0x17a   : > { %v1268_v39 = vpop.f32.mrb[14].mxu1  ;;  %v4593_v32 = vpop.eup %4592  ;;  %v1004_v33 = vmul.f32 %v4591_v28, %v5563_v30  ;;  %v1024_v51 = vadd.f32 %v4591_v28, %v4587_v9  ;;  %v3607_v17 = vmul.f32 -33.333332, %v3606_v23  ;;  %v3609_v34 = vmul.f32 -33.333332, %v3608_v42 }
 0x17b   : > { %v4072_v25 = vpop.f32.mrb[15].mxu1  ;;  %v4595_v35 = vpop.eup %4594  ;;  %v1006_v8 = vmul.f32 %v4593_v32, %v5557_v20 }
 0x17c   : > { %v1011_v36 = vadd.f32 %v1004_v33, %v1003_v11  ;;  %v1025_v37 = vadd.f32 %v4589_v14, %v1024_v51  ;;  %v1274_v19 = vmul.f32 1.442695, %v3607_v17  ;;  %v1282_v38 = vmul.f32 1.442695, %v3609_v34 }
 0x17d   : > { %v5618_v40 = vmul.f32 %v4595_v35, %v670_v31  ;;  %v1928_v14 = vrot.slane %v4506_v2, 2 }
 0x17e   : > { %v1012_v43 = vadd.f32 %v1011_v36, %v1005_v29  ;;  %v1026_v44 = vadd.f32 %v4593_v32, %v1025_v37  ;;  %4604 = vpow2.f32 %v1274_v19  ;;  %v5642_v29 = vld [vmem:[%s6538_s1 + $0x8] sm:$0xff]  }
 0x17f   : > { %v4597_v27 = vpop.eup %4596  ;;  %4606 = vpow2.f32 %v1282_v38 }
 0x180   : > { %v1007_v47 = vmul.f32 %v4597_v27, %v5575_v46  ;;  %v4599_v30 = vpop.eup %4598  ;;  %v1013_v48 = vadd.f32 %v1012_v43, %v1006_v8  ;;  %v1027_v49 = vadd.f32 %v4597_v27, %v1026_v44 }
 0x181   : > { %v4601_v50 = vpop.eup %4600  ;;  %v1009_v20 = vmul.f32 %v4599_v30, %v5571_v45  ;;  %v1857_v45 = vsel %vm423_vm0, %v4505_v61, 0 }
 0x182   : > { %v1014_v52 = vadd.f32 %v1013_v48, %v1007_v47  ;;  %v1008_v15 = vmul.f32 %v4601_v50, %v5584_v59  ;;  %v1028_v53 = vadd.f32 %v4601_v50, %v1027_v49  ;;  %v4603_v55 = vpop.eup %4602  ;;  %4140 = vmatpush3.bf16.xpose.msra.mxu1 %v1857_v45  ;;  %v5674_v49 = vld [vmem:[%s6538_s1 + $0x10] sm:$0xff]  }
 0x183   : > { %v1010_v56 = vmul.f32 %v4603_v55, %v5582_v54  ;;  %4293 = vmatprep.subr.msk.bf16.mxu1 %vm423_vm0, %v5633_v7 }
 0x184   : > { %v1015_v57 = vadd.f32 %v1014_v52, %v1008_v15  ;;  %v1029_v58 = vadd.f32 %v4599_v30, %v1028_v53 }
 0x186   : > { %v1016_v60 = vadd.f32 %v1015_v57, %v1009_v20  ;;  %v1030_v46 = vadd.f32 %v4603_v55, %v1029_v58 }
 0x188   : > { %v4605_v62 = vpop.eup %4604  ;;  %v1017_v6 = vadd.f32 %v1016_v60, %v1010_v56  ;;  %v1031_v22 = vrot.slane %v1030_v46, 4 }
 0x189   : > { %v4607_v63 = vpop.eup %4606  ;;  %v1276_v0 = vadd.f32 1.0, %v4605_v62  ;;  %4142 = vmatmul.mubr.msk.bf16.vlgmr.msra.gmra.mrb[24].mxu1 %vm423_vm0, %v1928_v14 }
 0x18a   : > { %v1018_v59 = vrot.slane %v1017_v6, 4  ;;  %v1284_v4 = vadd.f32 1.0, %v4607_v63  ;;  %v1032_v54 = vadd.f32 %v1031_v22, %v1030_v46  ;;  %4146 = vmatpush3.bf16.xpose.msra.mxu1 %v5199_v3  ;;  %v5691_v63 = vld [vmem:[%s6538_s1 + $0x18] sm:$0xff]  }
 0x18b   : > { %4608 = vrcp.f32 %v1276_v0  ;;  %4294 = vmatprep.subr.msk.bf16.mxu1 %vm423_vm0, %v5642_v29 }
 0x18c   : > { %v1019_v41 = vadd.f32 %v1018_v59, %v1017_v6  ;;  %4610 = vrcp.f32 %v1284_v4  ;;  %v1033_v9 = vrot.slane %v1032_v54, 2 }
 0x18e   : > { %v1034_v11 = vadd.f32 %v1033_v9, %v1032_v54  ;;  %v1020_v23 = vrot.slane %v1019_v41, 2 }
 0x190   : > { %v1035_v42 = vrot.slane %v1034_v11, 1  ;;  %v1021_v28 = vadd.f32 %v1020_v23, %v1019_v41  ;;  %v5699_v41 = vld [vmem:[%s6538_s1 + $0x20] sm:$0xff]  }
 0x191   : > { %v5650_v17 = vpop.f32.mrb[12].mxu0 }
 0x192   : > { %v1036_v12 = vadd.f32 %v1035_v42, %v1034_v11  ;;  %v1022_v34 = vrot.slane %v1021_v28, 1  ;;  %v3612_v35 = vadd.f32 -0.65, %v5650_v17  ;;  %v5654_v8 = vpop.f32.mrb[13].mxu0  ;;  %4148 = vmatpush3.bf16.xpose.msra.mxu1 %v5216_v5  ;;  %v5707_v42 = vld [vmem:[%s6538_s1 + $0x28] sm:$0xff]  }
 0x193   : > { %v3610_v19 = vadd.f32 -0.65, %v5654_v8  ;;  %v5661_v38 = vpop.f32.mrb[14].mxu0  ;;  %4295 = vmatprep.subr.msk.bf16.mxu1 %vm423_vm0, %v5674_v49 }
 0x194   : > { %4612 = vrcp.f32 %v1036_v12  ;;  %v3620_v27 = vmul.f32 -33.333332, %v3612_v35  ;;  %v3613_v43 = vadd.f32 -0.65, %v5661_v38  ;;  %v5664_v44 = vpop.f32.mrb[15].mxu0  ;;  %v1023_v50 = vadd.f32 %v1022_v34, %v1021_v28 }
 0x195   : > { %v4609_v39 = vpop.eup %4608  ;;  %v3618_v30 = vmul.f32 -33.333332, %v3610_v19 }
 0x196   : > { %v4611_v31 = vpop.eup %4610  ;;  %1448 = vst.msk [vmem:[%s5488_s21 + $0x2] sm:$0x1] %vm691_vm2, %v4609_v39  ;;  %v1393_v32 = vmul.f32 %v4609_v39, %v5606_v13  ;;  %v1404_v51 = vsel %vm691_vm2, %v4609_v39, 0.0  ;;  %v1316_v20 = vmul.f32 1.442695, %v3620_v27 }
 0x197   : > { %v1287_v33 = vsub.f32 1.0, %v4611_v31  ;;  %1405 = vadd.xlane.f32.xlu1 %v1404_v51  ;;  %v3621_v52 = vmul.f32 -33.333332, %v3613_v43  ;;  %v1312_v53 = vmul.f32 1.442695, %v3618_v30 }
 0x198   : > { %v1394_v25 = vsel %vm691_vm2, %v1393_v32, 0.0  ;;  %4614 = vpow2.f32 %v1316_v20 }
 0x199   : > { %1395 = vadd.xlane.f32.xlu0 %v1394_v25  ;;  %v1418_v36 = vmul.f32 %v1287_v33, %v5606_v13  ;;  %1449 = vst.msk [vmem:[%s5496_s23 + $0x2] sm:$0x1] %vm691_vm2, %v1287_v33  ;;  %v1429_v37 = vsel %vm691_vm2, %v1287_v33, 0.0  ;;  %v3611_v13 = vadd.f32 -0.65, %v5664_v44  ;;  %v5669_v48 = vpop.f32.mrb[16].mxu0  ;;  %4616 = vpow2.f32 %v1312_v53 }
 0x19a   : > { %v1454_v15 = vmax.f32 %v5650_v17, %v5669_v48  ;;  %v5680_v56 = vpop.f32.mrb[17].mxu0  ;;  %v1318_v58 = vmul.f32 1.442695, %v3621_v52  ;;  %4150 = vmatpush3.bf16.xpose.msra.mxu1 %v5234_v10  ;;  %v5733_v52 = vld [vmem:[%s6538_s1 + $0x38] sm:$0xff]  }
 0x19b   : > { %v1419_v47 = vsel %vm691_vm2, %v1418_v36, 0.0  ;;  %1430 = vadd.xlane.f32.xlu1 %v1429_v37  ;;  %v3619_v55 = vmul.f32 -33.333332, %v3611_v13  ;;  %v3614_v60 = vadd.f32 -0.65, %v5680_v56  ;;  %v1452_v61 = vmax.f32 %v5654_v8, %v5680_v56  ;;  %4296 = vmatprep.subr.msk.bf16.mxu1 %vm423_vm0, %v5691_v63  ;;  %v5719_v37 = vld [vmem:[%s6538_s1 + $0x30] sm:$0xff]  }
 0x19c   : > { %4618 = vpow2.f32 %v1318_v58  ;;  %s5085_s1 = smov [#allocation4]  }
 0x19d   : > { %1420 = vadd.xlane.f32.xlu0 %v1419_v47  ;;  %v1314_v46 = vmul.f32 1.442695, %v3619_v55  ;;  %v3622_v6 = vmul.f32 -33.333332, %v3614_v60  ;;  %v5737_v60 = vpop.f32.mrb[18].mxu0  ;;  %s4902_s2 = sshll.u32 %s5085_s1, 4  ;;  %s4903_s2 = int_to_ptr.vmem [resolvable:$false] %s4902_s2 }
 0x19e   : > { %v4613_v57 = vpop.eup %4612 }
 0x19f   : > { %v5685_v62 = vmul.f32 %v4613_v57, %v1023_v50  ;;  %4620 = vpow2.f32 %v1314_v46  ;;  %v1320_v22 = vmul.f32 1.442695, %v3622_v6  ;;  %v3616_v50 = vadd.f32 -0.65, %v5669_v48  ;;  %v5739_v6 = vpop.f32.mrb[19].mxu0 }
 0x1a1   : > { %4622 = vpow2.f32 %v1320_v22  ;;  %v3624_v53 = vmul.f32 -33.333332, %v3616_v50 }
 0x1a2   : > { %v4615_v0 = vpop.eup %4614  ;;  %4152 = vmatpush3.bf16.xpose.msra.mxu1 %v5260_v16 }
 0x1a3   : > { %v4617_v45 = vpop.eup %4616  ;;  %v1330_v59 = vadd.f32 1.0, %v4615_v0  ;;  %4297 = vmatprep.subr.msk.bf16.mxu1 %vm423_vm0, %v5699_v41  ;;  %v1324_v58 = vmul.f32 1.442695, %v3624_v53  ;;  %v3617_v0 = vadd.f32 -0.65, %v5737_v60 }
 0x1a4   : > { %v1328_v4 = vadd.f32 1.0, %v4617_v45  ;;  %v1455_v45 = vmax.f32 %v5661_v38, %v5737_v60 }
 0x1a6   : > { %v4619_v2 = vpop.eup %4618  ;;  %4624 = vrcp.f32 %v1328_v4 }
 0x1a7   : > { %v1331_v9 = vadd.f32 1.0, %v4619_v2  ;;  %4626 = vrcp.f32 %v1330_v59  ;;  %v3615_v59 = vadd.f32 -0.65, %v5739_v6 }
 0x1a9   : > { %v4621_v54 = vpop.eup %4620 }
 0x1aa   : > { %v1329_v14 = vadd.f32 1.0, %v4621_v54  ;;  %4154 = vmatpush3.bf16.xpose.msra.mxu1 %v5265_v18  ;;  %v1453_v54 = vmax.f32 %v5664_v44, %v5739_v6 }
 0x1ab   : > { %v4623_v11 = vpop.eup %4622  ;;  %4298 = vmatprep.subr.msk.bf16.mxu1 %vm423_vm0, %v5707_v42 }
 0x1ac   : > { %4628 = vrcp.f32 %v1329_v14  ;;  %v1332_v23 = vadd.f32 1.0, %v4623_v11  ;;  %v1457_v14 = vmax.f32 %v1454_v15, %v1455_v45  ;;  %v3623_v11 = vmul.f32 -33.333332, %v3615_v59 }
 0x1ad   : > { %4630 = vrcp.f32 %v1331_v9  ;;  %v3625_v9 = vmul.f32 -33.333332, %v3617_v0 }
 0x1ae   : > { %4632 = vrcp.f32 %v1332_v23 }
 0x1af   : > { %4634 = vpow2.f32 %v1324_v58 }
 0x1b0   : > { %v4625_v12 = vpop.eup %4624 }
 0x1b1   : > { %v4627_v28 = vpop.eup %4626  ;;  %v1352_v39 = vmul.f32 %v4625_v12, %v5654_v8 }
 0x1b2   : > { %v1354_v32 = vmul.f32 %v4627_v28, %v5650_v17  ;;  %4156 = vmatpush3.bf16.xpose.msra.mxu1 %v5284_v21 }
 0x1b3   : > { %4299 = vmatprep.subr.msk.bf16.mxu1 %vm423_vm0, %v5719_v37 }
 0x1b6   : > { %v4629_v31 = vpop.eup %4628 }
 0x1b7   : > { %v1353_v33 = vmul.f32 %v4629_v31, %v5664_v44  ;;  %v1373_v51 = vadd.f32 %v4629_v31, %v4625_v12  ;;  %v4631_v34 = vpop.eup %4630  ;;  %v1456_v12 = vmax.f32 %v1452_v61, %v1453_v54  ;;  %v4507_v61 = vld [vmem:[%s5210_s22 + $0xa0] sm:$0xff]  }
 0x1b8   : > { %v1355_v25 = vmul.f32 %v4631_v34, %v5661_v38  ;;  %v4633_v19 = vpop.eup %4632  ;;  %4161 = vmatprep.mubr.msk.bf16.mxu1 %vm423_vm0, %v4507_v61 }
 0x1b9   : > { %v1360_v35 = vadd.f32 %v1353_v33, %v1352_v39  ;;  %v1374_v36 = vadd.f32 %v4627_v28, %v1373_v51  ;;  %v1356_v43 = vmul.f32 %v4633_v19, %v5680_v56  ;;  %v1326_v28 = vmul.f32 1.442695, %v3625_v9  ;;  %v4635_v8 = vpop.eup %4634 }
 0x1ba   : > { %4158 = vmatpush3.bf16.xpose.msra.mxu1 %v5302_v24  ;;  %v1322_v39 = vmul.f32 1.442695, %v3623_v11 }
 0x1bb   : > { %v1361_v27 = vadd.f32 %v1360_v35, %v1354_v32  ;;  %v1375_v47 = vadd.f32 %v4631_v34, %v1374_v36  ;;  %4300 = vmatprep.subr.msk.bf16.mxu1 %vm423_vm0, %v5733_v52  ;;  %v1458_v32 = vmax.f32 %v1456_v12, %v1457_v14  ;;  %4636 = vpow2.f32 %v1326_v28  ;;  %v4508_v36 = vld [vmem:[%s5210_s22 + $0xa8] sm:$0xff]  }
 0x1bc   : > { %4638 = vpow2.f32 %v1322_v39  ;;  %v2200_v58 = vsel %vm423_vm0, %v4508_v36, 0 }
 0x1bd   : > { %v1362_v30 = vadd.f32 %v1361_v27, %v1355_v25  ;;  %v5724_v13 = vadd.f32 %v4633_v19, %v1375_v47  ;;  %v1459_v17 = vrot.slane %v1458_v32, 4  ;;  %v1334_v19 = vadd.f32 1.0, %v4635_v8  ;;  %v4509_v47 = vld [vmem:[%s5210_s22 + $0xb0] sm:$0xff]  }
 0x1be   : > { %v2203_v54 = vsel %vm423_vm0, %v4509_v47, 0 }
 0x1bf   : > { %v5727_v20 = vadd.f32 %v1362_v30, %v1356_v43  ;;  %v1460_v34 = vmax.f32 %v1458_v32, %v1459_v17  ;;  %v2197_v43 = vsel %vm423_vm0, %v4507_v61, 0  ;;  %4640 = vrcp.f32 %v1334_v19 }
 0x1c0   : > { %4170 = vmatpush3.bf16.xpose.msra.mxu0 %v2197_v43 }
 0x1c1   : > { %v1461_v35 = vrot.slane %v1460_v34, 2  ;;  %4171 = vmatprep.subr.bf16.mxu0 %v5082_v1 }
 0x1c2   : > { %4160 = vmatpush3.bf16.xpose.msra.mxu1 %v5317_v26 }
 0x1c3   : > { %4205 = vmatprep.subr.bf16.mxu1 %v5082_v1  ;;  %v1462_v56 = vmax.f32 %v1460_v34, %v1461_v35 }
 0x1c5   : > { %v1463_v27 = vrot.slane %v1462_v56, 1  ;;  %v4637_v30 = vpop.eup %4636 }
 0x1c6   : > { %v694_v55 = vpop.xlane.xlu0 %693  ;;  %v4639_v50 = vpop.eup %4638 }
 0x1c7   : > { %v695_v57 = vrot.slane %v694_v55, 4  ;;  %v1464_v53 = vmax.f32 %v1462_v56, %v1463_v27 }
 0x1c8   : > { %4172 = vmatpush3.bf16.xpose.msra.mxu0 %v2200_v58  ;;  %v4510_v58 = vld [vmem:[%s5210_s22 + $0xb8] sm:$0xff]  }
 0x1c9   : > { %v696_v46 = vadd.f32 %v695_v57, %v694_v55  ;;  %4162 = vmatmul.mubr.msk.bf16.vlgmr.msra.gmra.mrb[28].mxu1 %vm423_vm0, %v4508_v36  ;;  %v1335_v55 = vadd.f32 1.0, %v4637_v30  ;;  %v1333_v57 = vadd.f32 1.0, %v4639_v50  ;;  %1465 = vst [vmem:[%s5530_s8 + $0x2] sm:$0x1] %v1464_v53  ;;  %4173 = vmatprep.subr.bf16.mxu0 %v5082_v1  ;;  %v719_v34 = vpop.xlane.xlu1 %718 }
 0x1ca   : > { %v704_v22 = vpop.xlane.xlu0 %703  ;;  %4165 = vmatprep.mubr.msk.bf16.mxu1 %vm423_vm0, %v4509_v47  ;;  %v720_v27 = vrot.slane %v719_v34, 4 }
 0x1cb   : > { %v697_v2 = vrot.slane %v696_v46, 2  ;;  %v705_v4 = vrot.slane %v704_v22, 4  ;;  %4642 = vrcp.f32 %v1333_v57 }
 0x1cc   : > { %4644 = vrcp.f32 %v1335_v55  ;;  %v721_v53 = vadd.f32 %v720_v27, %v719_v34 }
 0x1cd   : > { %v706_v23 = vadd.f32 %v705_v4, %v704_v22  ;;  %v698_v38 = vadd.f32 %v697_v2, %v696_v46  ;;  %v5766_v46 = vpop.f32.mrb[20].mxu0  ;;  %v4641_v2 = vpop.eup %4640 }
 0x1ce   : > { %v3644_v22 = vadd.f32 -0.65, %v5766_v46  ;;  %1799 = vst.msk [vmem:[%s5459_s20 + $0x3] sm:$0x1] %vm691_vm2, %v5766_v46  ;;  %v4107_v0 = vpop.f32.mrb[21].mxu0  ;;  %v1358_v11 = vmul.f32 %v4641_v2, %v5669_v48  ;;  %v729_v61 = vpop.xlane.xlu1 %728 }
 0x1cf   : > { %v707_v31 = vrot.slane %v706_v23, 2  ;;  %v699_v44 = vrot.slane %v698_v38, 1  ;;  %v3646_v45 = vadd.f32 -0.4, %v5766_v46  ;;  %v1620_v59 = vpop.f32.mrb[22].mxu0  ;;  %v730_v47 = vrot.slane %v729_v61, 4 }
 0x1d0   : > { %v3645_v4 = vmul.f32 -33.333332, %v3644_v22  ;;  %v4108_v9 = vpop.f32.mrb[23].mxu0  ;;  %4174 = vmatpush3.bf16.xpose.msra.mxu0 %v2203_v54  ;;  %v722_v22 = vrot.slane %v721_v53, 2  ;;  %v2206_v0 = vsel %vm423_vm0, %v4510_v58, 0 }
 0x1d1   : > { %v700_v33 = vadd.f32 %v699_v44, %v698_v38  ;;  %v708_v51 = vadd.f32 %v707_v31, %v706_v23  ;;  %v3647_v39 = vmul.f32 -33.333332, %v3646_v45  ;;  %4175 = vmatprep.subr.bf16.mxu0 %v5082_v1  ;;  %v731_v55 = vadd.f32 %v730_v47, %v729_v61  ;;  %4166 = vmatmul.mubr.msk.bf16.gmra.mrb[32].mxu1 %vm423_vm0, %v4510_v58  ;;  %v4511_v54 = vld [vmem:[%s5244_s19] ss:$0 sps:$4 sm:$0x44]  }
 0x1d2   : > { %v1626_v12 = vmul.f32 1.442695, %v3645_v4  ;;  %4213 = vmatprep.mubr.msk.bf16.mxu1 %vm5083_vm1, %v5082_v1 }
 0x1d3   : > { %4317 = vpush %v700_v33  ;;  %v709_v15 = vrot.slane %v708_v51, 1  ;;  %v1634_v17 = vmul.f32 1.442695, %v3647_v39  ;;  %v732_v45 = vrot.slane %v731_v55, 2 }
 0x1d4   : > { %4646 = vpow2.f32 %v1626_v12  ;;  %v2278_v12 = vshrl.u32 %v4511_v54, 16 }
 0x1d5   : > { %v710_v25 = vadd.f32 %v709_v15, %v708_v51  ;;  %v4643_v14 = vpop.eup %4642  ;;  %4648 = vpow2.f32 %v1634_v17  ;;  %v733_v39 = vadd.f32 %v732_v45, %v731_v55 }
 0x1d6   : > { %v1357_v23 = vmul.f32 %v4643_v14, %v5739_v6  ;;  %v1377_v38 = vadd.f32 %v4643_v14, %v5724_v13  ;;  %v4645_v28 = vpop.eup %4644 }
 0x1d7   : > { %4319 = vpush %v710_v25  ;;  %v1359_v31 = vmul.f32 %v4645_v28, %v5737_v60  ;;  %v734_v17 = vrot.slane %v733_v39, 1 }
 0x1d8   : > { %v1364_v44 = vadd.f32 %v5727_v20, %v1357_v23  ;;  %v1378_v32 = vadd.f32 %v4641_v2, %v1377_v38  ;;  %4176 = vmatpush3.bf16.xpose.msra.mxu0 %v2206_v0  ;;  %v723_v23 = vadd.f32 %v722_v22, %v721_v53 }
 0x1d9   : > { %4301 = vmatprep.subr.msk.bf16.mxu0 %vm423_vm0, %v5633_v7 }
 0x1da   : > { %v1365_v33 = vadd.f32 %v1364_v44, %v1358_v11  ;;  %v1379_v51 = vadd.f32 %v4645_v28, %v1378_v32  ;;  %v2280_v44 = vrot.slane %v2278_v12, 2 }
 0x1dc   : > { %v1366_v48 = vadd.f32 %v1365_v33, %v1359_v31  ;;  %v1380_v6 = vrot.slane %v1379_v51, 4  ;;  %v724_v33 = vrot.slane %v723_v23, 1 }
 0x1de   : > { %v4647_v15 = vpop.eup %4646  ;;  %v1381_v25 = vadd.f32 %v1380_v6, %v1379_v51  ;;  %v1367_v35 = vrot.slane %v1366_v48, 4  ;;  %v725_v6 = vadd.f32 %v724_v33, %v723_v23 }
 0x1df   : > { %v1628_v13 = vadd.f32 1.0, %v4647_v15  ;;  %v4649_v8 = vpop.eup %4648  ;;  %4178 = vmatmul.mubr.msk.bf16.vlgmr.msra.gmra.mrb[32].mxu0 %vm423_vm0, %v2280_v44  ;;  %v735_v15 = vadd.f32 %v734_v17, %v733_v39 }
 0x1e0   : > { %v1382_v60 = vrot.slane %v1381_v25, 2  ;;  %v1368_v56 = vadd.f32 %v1367_v35, %v1366_v48  ;;  %v1636_v19 = vadd.f32 1.0, %v4649_v8  ;;  %4182 = vmatpush3.bf16.xpose.msra.mxu0 %v5199_v3 }
 0x1e1   : > { %4650 = vrcp.f32 %v1628_v13  ;;  %4302 = vmatprep.subr.msk.bf16.mxu0 %vm423_vm0, %v5642_v29  ;;  %v5805_v13 = vpop.f32.mrb[16].mxu1 }
 0x1e2   : > { %v1383_v20 = vadd.f32 %v1382_v60, %v1381_v25  ;;  %v1369_v30 = vrot.slane %v1368_v56, 2  ;;  %4652 = vrcp.f32 %v1636_v19  ;;  %v3650_v34 = vadd.f32 -0.65, %v5805_v13  ;;  %v5808_v25 = vpop.f32.mrb[17].mxu1 }
 0x1e3   : > { %v3648_v60 = vadd.f32 -0.65, %v5808_v25  ;;  %v5812_v8 = vpop.f32.mrb[18].mxu1 }
 0x1e4   : > { %v1384_v36 = vrot.slane %v1383_v20, 1  ;;  %v1370_v57 = vadd.f32 %v1369_v30, %v1368_v56  ;;  %v3651_v56 = vadd.f32 -0.65, %v5812_v8  ;;  %v5816_v61 = vpop.f32.mrb[19].mxu1 }
 0x1e5   : > { %v3649_v19 = vadd.f32 -0.65, %v5816_v61  ;;  %v5821_v27 = vpop.f32.mrb[20].mxu1 }
 0x1e6   : > { %v1385_v43 = vadd.f32 %v1384_v36, %v1383_v20  ;;  %v1371_v2 = vrot.slane %v1370_v57, 1  ;;  %v3658_v20 = vmul.f32 -33.333332, %v3650_v34  ;;  %v3656_v36 = vmul.f32 -33.333332, %v3648_v60  ;;  %v5825_v55 = vpop.f32.mrb[21].mxu1 }
 0x1e7   : > { %v3659_v47 = vmul.f32 -33.333332, %v3651_v56  ;;  %v1806_v30 = vmax.f32 %v5805_v13, %v5821_v27  ;;  %v3657_v53 = vmul.f32 -33.333332, %v3649_v19  ;;  %v3652_v58 = vadd.f32 -0.65, %v5825_v55 }
 0x1e8   : > { %4654 = vrcp.f32 %v1385_v43  ;;  %v1372_v14 = vadd.f32 %v1371_v2, %v1370_v57  ;;  %4184 = vmatpush3.bf16.xpose.msra.mxu0 %v5216_v5  ;;  %v1668_v43 = vmul.f32 1.442695, %v3658_v20  ;;  %v1804_v0 = vmax.f32 %v5808_v25, %v5825_v55 }
 0x1e9   : > { %4303 = vmatprep.subr.msk.bf16.mxu0 %vm423_vm0, %v5674_v49  ;;  %v1670_v57 = vmul.f32 1.442695, %v3659_v47  ;;  %v1666_v22 = vmul.f32 1.442695, %v3657_v53  ;;  %v3660_v45 = vmul.f32 -33.333332, %v3652_v58  ;;  %v684_v47 = vstv %s354_s15 }
 0x1eb   : > { %v4651_v50 = vpop.eup %4650 }
 0x1ec   : > { %1800 = vst.msk [vmem:[%s5488_s21 + $0x3] sm:$0x1] %vm691_vm2, %v4651_v50  ;;  %v1745_v4 = vmul.f32 %v4651_v50, %v5766_v46  ;;  %v4653_v9 = vpop.eup %4652 }
 0x1ed   : > { %v1639_v28 = vsub.f32 1.0, %v4653_v9 }
 0x1ee   : > { %v1746_v38 = vsel %vm691_vm2, %v1745_v4, 0.0 }
 0x1ef   : > { %1747 = vadd.xlane.f32.xlu0 %v1746_v38  ;;  %v1770_v32 = vmul.f32 %v1639_v28, %v5766_v46  ;;  %1801 = vst.msk [vmem:[%s5496_s23 + $0x3] sm:$0x1] %vm691_vm2, %v1639_v28  ;;  %v1756_v46 = vsel %vm691_vm2, %v4651_v50, 0.0  ;;  %v1781_v35 = vsel %vm691_vm2, %v1639_v28, 0.0  ;;  %v1664_v50 = vmul.f32 1.442695, %v3656_v36 }
 0x1f0   : > { %1757 = vadd.xlane.f32.xlu1 %v1756_v46  ;;  %4186 = vmatpush3.bf16.xpose.msra.mxu0 %v5234_v10 }
 0x1f1   : > { %v1771_v51 = vsel %vm691_vm2, %v1770_v32, 0.0  ;;  %4304 = vmatprep.subr.msk.bf16.mxu0 %vm423_vm0, %v5691_v63 }
 0x1f2   : > { %v4655_v11 = vpop.eup %4654 }
 0x1f3   : > { %v5794_v31 = vmul.f32 %v4655_v11, %v1372_v14  ;;  %1772 = vadd.xlane.f32.xlu0 %v1771_v51 }
 0x1f4   : > { %1782 = vadd.xlane.f32.xlu1 %v1781_v35 }
 0x1f8   : > { %4188 = vmatpush3.bf16.xpose.msra.mxu0 %v5260_v16 }
 0x1f9   : > { %4305 = vmatprep.subr.msk.bf16.mxu0 %vm423_vm0, %v5699_v41 }
 0x1fe   : > { %v1057_v58 = vpop.xlane.xlu1 %1056 }
 0x200   : > { %4190 = vmatpush3.bf16.xpose.msra.mxu0 %v5265_v18 }
 0x201   : > { %4306 = vmatprep.subr.msk.bf16.mxu0 %vm423_vm0, %v5707_v42 }
 0x204   : > { %s5783_s9 = spop %4317 }
 0x208   : > { %s4320_s14 = spop %4319  ;;  %4192 = vmatpush3.bf16.xpose.msra.mxu0 %v5284_v21 }
 0x209   : > { %v712_v59 = vstv %s4320_s14  ;;  %4307 = vmatprep.subr.msk.bf16.mxu0 %vm423_vm0, %v5719_v37 }
 0x20a   : > { %4656 = vrcp.f32 %v712_v59  ;;  %v1672_v59 = vmul.f32 1.442695, %v3660_v45  ;;  %v1058_v45 = vrot.slane %v1057_v58, 4 }
 0x20b   : > { %4658 = vpow2.f32 %v1668_v43  ;;  %v1047_v43 = vpop.xlane.xlu0 %1046 }
 0x20c   : > { %4660 = vpow2.f32 %v1664_v50 }
 0x20d   : > { %4662 = vpow2.f32 %v1670_v57  ;;  %v1048_v57 = vrot.slane %v1047_v43, 4 }
 0x20e   : > { %4664 = vpow2.f32 %v1666_v22  ;;  %v3654_v22 = vadd.f32 -0.65, %v5821_v27 }
 0x20f   : > { %4666 = vpow2.f32 %v1672_v59 }
 0x210   : > { %4194 = vmatpush3.bf16.xpose.msra.mxu0 %v5302_v24 }
 0x211   : > { %4308 = vmatprep.subr.msk.bf16.mxu0 %vm423_vm0, %v5733_v52 }
 0x214   : > { %v4657_v48 = vpop.eup %4656 }
 0x215   : > { %4321 = vpush %v4657_v48  ;;  %v4659_v2 = vpop.eup %4658 }
 0x216   : > { %4323 = vpush %v725_v6  ;;  %v4661_v4 = vpop.eup %4660  ;;  %v1682_v54 = vadd.f32 1.0, %v4659_v2  ;;  %v1049_v2 = vadd.f32 %v1048_v57, %v1047_v43 }
 0x217   : > { %4325 = vpush %v735_v15  ;;  %v4663_v9 = vpop.eup %4662  ;;  %v1680_v14 = vadd.f32 1.0, %v4661_v4  ;;  %v351_v15 = vlaneseq  ;;  %v3662_v4 = vmul.f32 -33.333332, %v3654_v22 }
 0x218   : > { %v4665_v11 = vpop.eup %4664  ;;  %v1683_v23 = vadd.f32 1.0, %v4663_v9  ;;  %v5084_v9 = vmov 1.0   ;;  %4196 = vmatpush3.bf16.xpose.msra.mxu0 %v5317_v26 }
 0x219   : > { %4668 = vrcp.f32 %v1680_v14  ;;  %v1681_v38 = vadd.f32 1.0, %v4665_v11  ;;  %v4667_v12 = vpop.eup %4666  ;;  %v5848_v19 = vand.u32 127, %v351_v15  ;;  %v1050_v11 = vrot.slane %v1049_v2, 2  ;;  %4241 = vmatprep.subr.bf16.mxu0 %v5082_v1 }
 0x21a   : > { %4670 = vrcp.f32 %v1682_v54  ;;  %v1684_v28 = vadd.f32 1.0, %v4667_v12  ;;  %v1059_v54 = vadd.f32 %v1058_v45, %v1057_v58  ;;  %v5865_v12 = vpop.f32.mrb[22].mxu1 }
 0x21b   : > { %4672 = vrcp.f32 %v1681_v38  ;;  %vm685_vm3 = vcmp.eq.s32.totalorder %v5848_v19, %v684_v47  ;;  %vm741_vm4 = vcmp.eq.s32.totalorder %v5848_v19, 0  ;;  %v1676_v38 = vmul.f32 1.442695, %v3662_v4  ;;  %v4514_v4 = vld [vmem:[%s5210_s22 + $0xd0] sm:$0xff]  }
 0x21c   : > { %4674 = vrcp.f32 %v1683_v23  ;;  %v686_v14 = vsel %vm685_vm3, -99.0, %v5084_v9  ;;  %vm744_vm5 = vcmp.eq.s32.totalorder %v5848_v19, 13 }
 0x21d   : > { %4676 = vrcp.f32 %v1684_v28  ;;  %v689_v23 = vmul.f32 %v5618_v40, %v686_v14  ;;  %v1060_v28 = vrot.slane %v1059_v54, 2  ;;  %v1807_v40 = vmax.f32 %v5812_v8, %v5865_v12 }
 0x223   : > { %v4669_v39 = vpop.eup %4668 }
 0x224   : > { %v4671_v44 = vpop.eup %4670  ;;  %v1704_v32 = vmul.f32 %v4669_v39, %v5808_v25 }
 0x225   : > { %v4673_v33 = vpop.eup %4672  ;;  %v1706_v51 = vmul.f32 %v4671_v44, %v5805_v13 }
 0x226   : > { %v1705_v17 = vmul.f32 %v4673_v33, %v5816_v61  ;;  %v1725_v48 = vadd.f32 %v4673_v33, %v4669_v39  ;;  %v4675_v6 = vpop.eup %4674 }
 0x227   : > { %v1707_v46 = vmul.f32 %v4675_v6, %v5812_v8  ;;  %v4677_v60 = vpop.eup %4676 }
 0x228   : > { %v1712_v34 = vadd.f32 %v1705_v17, %v1704_v32  ;;  %v1726_v35 = vadd.f32 %v4671_v44, %v1725_v48  ;;  %v1708_v56 = vmul.f32 %v4677_v60, %v5825_v55  ;;  %v5867_v32 = vpop.f32.mrb[23].mxu1  ;;  %v4512_v55 = vld [vmem:[%s5210_s22 + $0xc0] sm:$0xff]  }
 0x229   : > { %v3653_v17 = vadd.f32 -0.65, %v5867_v32  ;;  %v1805_v48 = vmax.f32 %v5816_v61, %v5867_v32  ;;  %4197 = vmatprep.mubr.msk.bf16.mxu0 %vm423_vm0, %v4512_v55 }
 0x22a   : > { %v1713_v20 = vadd.f32 %v1712_v34, %v1706_v51  ;;  %v1727_v36 = vadd.f32 %v4675_v6, %v1726_v35  ;;  %v3655_v51 = vadd.f32 -0.65, %v5865_v12  ;;  %v1051_v6 = vadd.f32 %v1050_v11, %v1049_v2 }
 0x22b   : > { %v1061_v34 = vadd.f32 %v1060_v28, %v1059_v54  ;;  %v3661_v35 = vmul.f32 -33.333332, %v3653_v17  ;;  %v1808_v8 = vmax.f32 %v1804_v0, %v1805_v48  ;;  %v4513_v0 = vld [vmem:[%s5210_s22 + $0xc8] sm:$0xff]   ;;  %v2549_v2 = vsel %vm423_vm0, %v4512_v55, 0 }
 0x22c   : > { %v1714_v50 = vadd.f32 %v1713_v20, %v1707_v46  ;;  %v5850_v53 = vadd.f32 %v4677_v60, %v1727_v36  ;;  %v3663_v15 = vmul.f32 -33.333332, %v3655_v51  ;;  %v1809_v46 = vmax.f32 %v1806_v30, %v1807_v40  ;;  %4206 = vmatpush3.bf16.xpose.msra.mxu1 %v2549_v2  ;;  %4198 = vmatmul.mubr.msk.bf16.vlgmr.msra.gmra.mrb[36].mxu0 %vm423_vm0, %v4513_v0 }
 0x22d   : > { %v1674_v20 = vmul.f32 1.442695, %v3661_v35  ;;  %v1052_v36 = vrot.slane %v1051_v6, 1  ;;  %v1062_v61 = vrot.slane %v1061_v34, 1  ;;  %4207 = vmatprep.subr.bf16.mxu1 %v5082_v1  ;;  %4201 = vmatprep.mubr.msk.bf16.mxu0 %vm423_vm0, %v4514_v4  ;;  %v2552_v28 = vsel %vm423_vm0, %v4513_v0, 0 }
 0x22e   : > { %v5853_v59 = vadd.f32 %v1714_v50, %v1708_v56  ;;  %v1678_v60 = vmul.f32 1.442695, %v3663_v15  ;;  %v1810_v56 = vmax.f32 %v1808_v8, %v1809_v46  ;;  %v2555_v15 = vsel %vm423_vm0, %v4514_v4, 0 }
 0x22f   : > { %v1053_v30 = vadd.f32 %v1052_v36, %v1051_v6  ;;  %v1063_v50 = vadd.f32 %v1062_v61, %v1061_v34 }
 0x230   : > { %v1811_v43 = vrot.slane %v1810_v56, 4 }
 0x232   : > { %v1812_v47 = vmax.f32 %v1810_v56, %v1811_v43 }
 0x234   : > { %v1813_v57 = vrot.slane %v1812_v47, 2  ;;  %4208 = vmatpush3.bf16.xpose.msra.mxu1 %v2552_v28 }
 0x235   : > { %4209 = vmatprep.subr.bf16.mxu1 %v5082_v1 }
 0x236   : > { %v1814_v25 = vmax.f32 %v1812_v47, %v1813_v57 }
 0x238   : > { %v1815_v45 = vrot.slane %v1814_v25, 1 }
 0x23a   : > { %v1816_v11 = vmax.f32 %v1814_v25, %v1815_v45  ;;  %v1082_v45 = vpop.xlane.xlu1 %1081 }
 0x23c   : > { %1817 = vst [vmem:[%s5530_s8 + $0x3] sm:$0x1] %v1816_v11  ;;  %4210 = vmatpush3.bf16.xpose.msra.mxu1 %v2555_v15  ;;  %v1083_v11 = vrot.slane %v1082_v45, 4 }
 0x23d   : > { %4211 = vmatprep.subr.bf16.mxu1 %v5082_v1 }
 0x246   : > { %s4322_s16 = spop %4321 }
 0x247   : > { %s715_s14 = smul.f32 %s4322_s16, %s5783_s9  ;;  %s5862_s15 = spop %4323 }
 0x248   : > { %s4326_s29 = spop %4325 }
 0x249   : > { %v742_v39 = vstv %s715_s14  ;;  %v737_v44 = vstv %s4326_s29 }
 0x24a   : > { %v5872_v33 = vsel %vm741_vm4, %v742_v39, %v689_v23  ;;  %4678 = vrcp.f32 %v737_v44 }
 0x24b   : > { %4680 = vpow2.f32 %v1676_v38 }
 0x24c   : > { %4682 = vpow2.f32 %v1678_v60 }
 0x24d   : > { %4684 = vpow2.f32 %v1674_v20 }
 0x254   : > { %v4679_v13 = vpop.eup %4678 }
 0x255   : > { %4327 = vpush %v4679_v13  ;;  %v4681_v58 = vpop.eup %4680 }
 0x256   : > { %4329 = vpush %v1053_v30  ;;  %v1686_v22 = vadd.f32 1.0, %v4681_v58  ;;  %v4683_v54 = vpop.eup %4682 }
 0x257   : > { %4331 = vpush %v1063_v50  ;;  %v4685_v14 = vpop.eup %4684  ;;  %v1687_v23 = vadd.f32 1.0, %v4683_v54 }
 0x258   : > { %v1685_v38 = vadd.f32 1.0, %v4685_v14  ;;  %4686 = vrcp.f32 %v1686_v22 }
 0x25a   : > { %4688 = vrcp.f32 %v1685_v38 }
 0x25b   : > { %4690 = vrcp.f32 %v1687_v23 }
 0x25c   : > { %v5898_v39 = vpop.f32.mrb[24].mxu1 }
 0x25d   : > { %v3682_v44 = vadd.f32 -0.65, %v5898_v39  ;;  %2148 = vst.msk [vmem:[%s5459_s20 + $0x4] sm:$0x1] %vm691_vm2, %v5898_v39  ;;  %v4143_v51 = vpop.f32.mrb[25].mxu1 }
 0x25e   : > { %v3684_v40 = vadd.f32 -0.4, %v5898_v39  ;;  %v1969_v17 = vpop.f32.mrb[26].mxu1 }
 0x25f   : > { %v3683_v6 = vmul.f32 -33.333332, %v3682_v44  ;;  %v4144_v46 = vpop.f32.mrb[27].mxu1  ;;  %v1084_v44 = vadd.f32 %v1083_v11, %v1082_v45 }
 0x260   : > { %v3685_v36 = vmul.f32 -33.333332, %v3684_v40  ;;  %v4515_v40 = vld [vmem:[%s5210_s22 + $0xd8] sm:$0xff]  }
 0x261   : > { %v1975_v20 = vmul.f32 1.442695, %v3683_v6  ;;  %4202 = vmatmul.mubr.msk.bf16.gmra.mrb[40].mxu0 %vm423_vm0, %v4515_v40  ;;  %v1085_v6 = vrot.slane %v1084_v44, 2 }
 0x262   : > { %v4687_v48 = vpop.eup %4686  ;;  %v1983_v50 = vmul.f32 1.442695, %v3685_v36  ;;  %4249 = vmatprep.mubr.msk.bf16.mxu0 %vm5083_vm1, %v5082_v1 }
 0x263   : > { %v1710_v35 = vmul.f32 %v4687_v48, %v5821_v27  ;;  %4692 = vpow2.f32 %v1975_v20 }
 0x264   : > { %v4689_v34 = vpop.eup %4688  ;;  %4694 = vpow2.f32 %v1983_v50 }
 0x265   : > { %v1709_v8 = vmul.f32 %v4689_v34, %v5867_v32  ;;  %v1729_v60 = vadd.f32 %v4689_v34, %v5850_v53  ;;  %v4691_v56 = vpop.eup %4690 }
 0x266   : > { %v1711_v61 = vmul.f32 %v4691_v56, %v5865_v12 }
 0x267   : > { %v1716_v43 = vadd.f32 %v5853_v59, %v1709_v8  ;;  %v1730_v47 = vadd.f32 %v4687_v48, %v1729_v60  ;;  %v1072_v59 = vpop.xlane.xlu0 %1071  ;;  %v2558_v48 = vsel %vm423_vm0, %v4515_v40, 0 }
 0x268   : > { %v1073_v54 = vrot.slane %v1072_v59, 4  ;;  %4212 = vmatpush3.bf16.xpose.msra.mxu1 %v2558_v48 }
 0x269   : > { %v1717_v13 = vadd.f32 %v1716_v43, %v1710_v35  ;;  %v1731_v30 = vadd.f32 %v4691_v56, %v1730_v47  ;;  %4309 = vmatprep.subr.msk.bf16.mxu1 %vm423_vm0, %v5633_v7  ;;  %v4516_v47 = vld [vmem:[%s5244_s19] ss:$0 sps:$4 sm:$0x88]  }
 0x26a   : > { %v1074_v28 = vadd.f32 %v1073_v54, %v1072_v59  ;;  %v2629_v50 = vrot.slane %v4516_v47, 3 }
 0x26b   : > { %v1718_v27 = vadd.f32 %v1717_v13, %v1711_v61  ;;  %v1732_v32 = vrot.slane %v1731_v30, 4 }
 0x26c   : > { %v1075_v17 = vrot.slane %v1074_v28, 2 }
 0x26d   : > { %v4693_v57 = vpop.eup %4692  ;;  %v1733_v58 = vadd.f32 %v1732_v32, %v1731_v30  ;;  %v1719_v25 = vrot.slane %v1718_v27, 4 }
 0x26e   : > { %v1977_v53 = vadd.f32 1.0, %v4693_v57  ;;  %v4695_v12 = vpop.eup %4694  ;;  %v1076_v61 = vadd.f32 %v1075_v17, %v1074_v28 }
 0x26f   : > { %v1734_v55 = vrot.slane %v1733_v58, 2  ;;  %v1720_v22 = vadd.f32 %v1719_v25, %v1718_v27  ;;  %v1985_v4 = vadd.f32 1.0, %v4695_v12  ;;  %4214 = vmatmul.mubr.msk.bf16.vlgmr.msra.gmra.mrb[36].mxu1 %vm423_vm0, %v2629_v50 }
 0x270   : > { %4696 = vrcp.f32 %v1977_v53  ;;  %v1077_v27 = vrot.slane %v1076_v61, 1  ;;  %4218 = vmatpush3.bf16.xpose.msra.mxu1 %v5199_v3 }
 0x271   : > { %v1735_v0 = vadd.f32 %v1734_v55, %v1733_v58  ;;  %v1721_v23 = vrot.slane %v1720_v22, 2  ;;  %4698 = vrcp.f32 %v1985_v4  ;;  %4310 = vmatprep.subr.msk.bf16.mxu1 %vm423_vm0, %v5642_v29  ;;  %v5946_v55 = vpop.f32.mrb[24].mxu0 }
 0x272   : > { %v1078_v58 = vadd.f32 %v1077_v27, %v1076_v61  ;;  %v3688_v12 = vadd.f32 -0.65, %v5946_v55 }
 0x273   : > { %v1736_v2 = vrot.slane %v1735_v0, 1  ;;  %v1722_v51 = vadd.f32 %v1721_v23, %v1720_v22 }
 0x274   : > { %v3696_v22 = vmul.f32 -33.333332, %v3688_v12  ;;  %v1406_v12 = vpop.xlane.xlu1 %1405 }
 0x275   : > { %v1737_v14 = vadd.f32 %v1736_v2, %v1735_v0  ;;  %v1723_v34 = vrot.slane %v1722_v51, 1  ;;  %v5949_v0 = vpop.f32.mrb[25].mxu0 }
 0x276   : > { %v3686_v59 = vadd.f32 -0.65, %v5949_v0  ;;  %v5953_v29 = vpop.f32.mrb[26].mxu0  ;;  %v2017_v11 = vmul.f32 1.442695, %v3696_v22 }
 0x277   : > { %4700 = vrcp.f32 %v1737_v14  ;;  %v1724_v56 = vadd.f32 %v1723_v34, %v1722_v51  ;;  %v3689_v45 = vadd.f32 -0.65, %v5953_v29  ;;  %v5957_v2 = vpop.f32.mrb[27].mxu0 }
 0x278   : > { %4220 = vmatpush3.bf16.xpose.msra.mxu1 %v5216_v5  ;;  %v3694_v4 = vmul.f32 -33.333332, %v3686_v59  ;;  %v3687_v54 = vadd.f32 -0.65, %v5957_v2  ;;  %v5962_v14 = vpop.f32.mrb[28].mxu0 }
 0x279   : > { %4311 = vmatprep.subr.msk.bf16.mxu1 %vm423_vm0, %v5674_v49  ;;  %v3697_v23 = vmul.f32 -33.333332, %v3689_v45 }
 0x27a   : > { %v4697_v38 = vpop.eup %4696  ;;  %v2013_v5 = vmul.f32 1.442695, %v3694_v4  ;;  %v3695_v28 = vmul.f32 -33.333332, %v3687_v54 }
 0x27b   : > { %2149 = vst.msk [vmem:[%s5488_s21 + $0x4] sm:$0x1] %vm691_vm2, %v4697_v38  ;;  %v2094_v8 = vmul.f32 %v4697_v38, %v5898_v39  ;;  %v4699_v60 = vpop.eup %4698  ;;  %v2019_v51 = vmul.f32 1.442695, %v3697_v23 }
 0x27c   : > { %v1988_v13 = vsub.f32 1.0, %v4699_v60  ;;  %v2015_v49 = vmul.f32 1.442695, %v3695_v28 }
 0x27d   : > { %v2095_v43 = vsel %vm691_vm2, %v2094_v8, 0.0 }
 0x27e   : > { %2096 = vadd.xlane.f32.xlu0 %v2095_v43  ;;  %v2119_v7 = vmul.f32 %v1988_v13, %v5898_v39  ;;  %2150 = vst.msk [vmem:[%s5496_s23 + $0x4] sm:$0x1] %vm691_vm2, %v1988_v13  ;;  %v2105_v39 = vsel %vm691_vm2, %v4697_v38, 0.0  ;;  %v2130_v3 = vsel %vm691_vm2, %v1988_v13, 0.0  ;;  %v2155_v38 = vmax.f32 %v5946_v55, %v5962_v14 }
 0x27f   : > { %2106 = vadd.xlane.f32.xlu1 %v2105_v39 }
 0x280   : > { %v2120_v32 = vsel %vm691_vm2, %v2119_v7, 0.0  ;;  %4222 = vmatpush3.bf16.xpose.msra.mxu1 %v5234_v10 }
 0x281   : > { %v4701_v36 = vpop.eup %4700  ;;  %4312 = vmatprep.subr.msk.bf16.mxu1 %vm423_vm0, %v5691_v63 }
 0x282   : > { %v5935_v30 = vmul.f32 %v4701_v36, %v1724_v56  ;;  %2121 = vadd.xlane.f32.xlu0 %v2120_v32 }
 0x283   : > { %2131 = vadd.xlane.f32.xlu1 %v2130_v3  ;;  %v1407_v3 = vrot.slane %v1406_v12, 4 }
 0x285   : > { %v1408_v4 = vadd.f32 %v1407_v3, %v1406_v12 }
 0x286   : > { %s4328_s29 = spop %4327 }
 0x287   : > { %s740_s9 = smul.f32 %s4328_s29, %s5862_s15  ;;  %s5917_s16 = spop %4329  ;;  %v1409_v28 = vrot.slane %v1408_v4, 2 }
 0x288   : > { %s4332_s14 = spop %4331  ;;  %s5932_s15 = scalar_lea.vmem [#allocation7], %s5453_s18  ;;  %4224 = vmatpush3.bf16.xpose.msra.mxu1 %v5260_v16 }
 0x289   : > { %v745_v15 = vstv %s740_s9  ;;  %v1065_v46 = vstv %s4332_s14  ;;  %4313 = vmatprep.subr.msk.bf16.mxu1 %vm423_vm0, %v5699_v41  ;;  %s1037_s18 = sadd.s32 2, %s5181_s13 }
 0x28a   : > { %v746_v35 = vsel %vm744_vm5, %v745_v15, %v5872_v33  ;;  %4702 = vrcp.f32 %v1065_v46  ;;  %v1086_v33 = vadd.f32 %v1085_v6, %v1084_v44  ;;  %v5966_v44 = vpop.f32.mrb[29].mxu0 }
 0x28b   : > { %v750_v20 = vmul.f32 14.285714, %v746_v35  ;;  %4704 = vpow2.f32 %v2017_v11  ;;  %v3690_v40 = vadd.f32 -0.65, %v5966_v44  ;;  %v2153_v48 = vmax.f32 %v5949_v0, %v5966_v44 }
 0x28c   : > { %v1087_v57 = vrot.slane %v1086_v33, 1  ;;  %4706 = vpow2.f32 %v2013_v5 }
 0x28d   : > { %751 = vst [vmem:[%s5932_s15] sm:$0x1] %v750_v20  ;;  %4708 = vpow2.f32 %v2019_v51  ;;  %v3698_v17 = vmul.f32 -33.333332, %v3690_v40 }
 0x28e   : > { %v1088_v25 = vadd.f32 %v1087_v57, %v1086_v33  ;;  %4710 = vpow2.f32 %v2015_v49 }
 0x28f   : > { %v2021_v6 = vmul.f32 1.442695, %v3698_v17 }
 0x290   : > { %4226 = vmatpush3.bf16.xpose.msra.mxu1 %v5265_v18 }
 0x291   : > { %4712 = vpow2.f32 %v2021_v6  ;;  %4314 = vmatprep.subr.msk.bf16.mxu1 %vm423_vm0, %v5707_v42 }
 0x294   : > { %v4703_v53 = vpop.eup %4702 }
 0x295   : > { %4333 = vpush %v4703_v53  ;;  %v4705_v15 = vpop.eup %4704  ;;  %v1396_v53 = vpop.xlane.xlu0 %1395 }
 0x296   : > { %4335 = vpush %v1078_v58  ;;  %v4707_v46 = vpop.eup %4706  ;;  %v2031_v34 = vadd.f32 1.0, %v4705_v15  ;;  %v1038_v58 = vstv %s1037_s18 }
 0x297   : > { %4337 = vpush %v1088_v25  ;;  %v4709_v35 = vpop.eup %4708  ;;  %v2029_v8 = vadd.f32 1.0, %v4707_v46  ;;  %vm1039_vm6 = vcmp.eq.s32.totalorder %v5848_v19, %v1038_v58 }
 0x298   : > { %v4711_v60 = vpop.eup %4710  ;;  %v2032_v20 = vadd.f32 1.0, %v4709_v35  ;;  %4228 = vmatpush3.bf16.xpose.msra.mxu1 %v5284_v21  ;;  %v1397_v21 = vrot.slane %v1396_v53, 4  ;;  %v1040_v54 = vsel %vm1039_vm6, -99.0, %v5084_v9  ;;  %v1410_v35 = vadd.f32 %v1409_v28, %v1408_v4 }
 0x299   : > { %4714 = vrcp.f32 %v2029_v8  ;;  %v2030_v56 = vadd.f32 1.0, %v4711_v60  ;;  %4315 = vmatprep.subr.msk.bf16.mxu1 %vm423_vm0, %v5719_v37  ;;  %v3692_v37 = vadd.f32 -0.65, %v5962_v14  ;;  %v1043_v23 = vmul.f32 %v5685_v62, %v1040_v54 }
 0x29a   : > { %4716 = vrcp.f32 %v2031_v34  ;;  %v1398_v22 = vadd.f32 %v1397_v21, %v1396_v53 }
 0x29b   : > { %v4713_v10 = vpop.eup %4712  ;;  %4718 = vrcp.f32 %v2030_v56  ;;  %v3700_v45 = vmul.f32 -33.333332, %v3692_v37 }
 0x29c   : > { %v2033_v36 = vadd.f32 1.0, %v4713_v10  ;;  %4720 = vrcp.f32 %v2032_v20  ;;  %v1399_v11 = vrot.slane %v1398_v22, 2 }
 0x29d   : > { %v2025_v5 = vmul.f32 1.442695, %v3700_v45 }
 0x29e   : > { %4722 = vrcp.f32 %v2033_v36  ;;  %v1400_v46 = vadd.f32 %v1399_v11, %v1398_v22 }
 0x2a0   : > { %4230 = vmatpush3.bf16.xpose.msra.mxu1 %v5302_v24  ;;  %v6003_v24 = vpop.f32.mrb[30].mxu0  ;;  %v1401_v10 = vrot.slane %v1400_v46, 1 }
 0x2a1   : > { %4316 = vmatprep.subr.msk.bf16.mxu1 %vm423_vm0, %v5733_v52  ;;  %v6005_v52 = vpop.f32.mrb[31].mxu0  ;;  %v3693_v17 = vadd.f32 -0.65, %v6003_v24  ;;  %v2156_v62 = vmax.f32 %v5953_v29, %v6003_v24 }
 0x2a2   : > { %v3691_v6 = vadd.f32 -0.65, %v6005_v52  ;;  %v2154_v15 = vmax.f32 %v5957_v2, %v6005_v52 }
 0x2a3   : > { %v4715_v16 = vpop.eup %4714  ;;  %v3701_v34 = vmul.f32 -33.333332, %v3693_v17 }
 0x2a4   : > { %v4717_v63 = vpop.eup %4716  ;;  %v2053_v41 = vmul.f32 %v4715_v16, %v5949_v0  ;;  %v3699_v8 = vmul.f32 -33.333332, %v3691_v6  ;;  %v2157_v60 = vmax.f32 %v2153_v48, %v2154_v15  ;;  %v4518_v48 = vld [vmem:[%s5210_s22 + $0xe8] sm:$0xff]  }
 0x2a5   : > { %v4719_v61 = vpop.eup %4718  ;;  %v2055_v43 = vmul.f32 %v4717_v63, %v5946_v55  ;;  %v2027_v20 = vmul.f32 1.442695, %v3701_v34 }
 0x2a6   : > { %v2054_v47 = vmul.f32 %v4719_v61, %v5957_v2  ;;  %v2074_v13 = vadd.f32 %v4719_v61, %v4715_v16  ;;  %v4721_v33 = vpop.eup %4720  ;;  %v1411_v2 = vrot.slane %v1410_v35, 1 }
 0x2a7   : > { %v2056_v18 = vmul.f32 %v4721_v33, %v5953_v29  ;;  %v2023_v29 = vmul.f32 1.442695, %v3699_v8 }
 0x2a8   : > { %v2061_v50 = vadd.f32 %v2054_v47, %v2053_v41  ;;  %v2075_v42 = vadd.f32 %v4717_v63, %v2074_v13  ;;  %v4723_v7 = vpop.eup %4722  ;;  %4232 = vmatpush3.bf16.xpose.msra.mxu1 %v5317_v26  ;;  %v2158_v26 = vmax.f32 %v2155_v38, %v2156_v62  ;;  %v1402_v38 = vadd.f32 %v1401_v10, %v1400_v46 }
 0x2a9   : > { %v2057_v32 = vmul.f32 %v4723_v7, %v5966_v44  ;;  %v1412_v63 = vadd.f32 %v1411_v2, %v1410_v35  ;;  %v4517_v44 = vld [vmem:[%s5210_s22 + $0xe0] sm:$0xff]  }
 0x2aa   : > { %v2062_v27 = vadd.f32 %v2061_v50, %v2055_v43  ;;  %v2076_v57 = vadd.f32 %v4721_v33, %v2075_v42  ;;  %v2159_v56 = vmax.f32 %v2157_v60, %v2158_v26  ;;  %v2898_v13 = vsel %vm423_vm0, %v4517_v44, 0  ;;  %v4519_v33 = vld [vmem:[%s5210_s22 + $0xf0] sm:$0xff]   ;;  %4233 = vmatprep.mubr.msk.bf16.mxu1 %vm423_vm0, %v4517_v44  ;;  %v1421_v60 = vpop.xlane.xlu0 %1420 }
 0x2ab   : > { %4242 = vmatpush3.bf16.xpose.msra.mxu0 %v2898_v13  ;;  %v2904_v22 = vsel %vm423_vm0, %v4519_v33, 0 }
 0x2ac   : > { %v2063_v25 = vadd.f32 %v2062_v27, %v2056_v18  ;;  %v5989_v39 = vadd.f32 %v4723_v7, %v2076_v57  ;;  %v2160_v36 = vrot.slane %v2159_v56, 4  ;;  %4243 = vmatprep.subr.bf16.mxu0 %v5082_v1 }
 0x2ae   : > { %v5992_v59 = vadd.f32 %v2063_v25, %v2057_v32  ;;  %v2161_v16 = vmax.f32 %v2159_v56, %v2160_v36  ;;  %v2901_v32 = vsel %vm423_vm0, %v4518_v48, 0  ;;  %v1422_v56 = vrot.slane %v1421_v60, 4 }
 0x2af   : > { %4234 = vmatmul.mubr.msk.bf16.vlgmr.msra.gmra.mrb[40].mxu1 %vm423_vm0, %v4518_v48 }
 0x2b0   : > { %v2162_v41 = vrot.slane %v2161_v16, 2  ;;  %4237 = vmatprep.mubr.msk.bf16.mxu1 %vm423_vm0, %v4519_v33 }
 0x2b2   : > { %v2163_v0 = vmax.f32 %v2161_v16, %v2162_v41  ;;  %v6034_v57 = vpop.f32.mrb[32].mxu0  ;;  %v4520_v41 = vld [vmem:[%s5210_s22 + $0xf8] sm:$0xff]   ;;  %s1386_s22 = sadd.s32 3, %s5181_s13 }
 0x2b3   : > { %4244 = vmatpush3.bf16.xpose.msra.mxu0 %v2901_v32  ;;  %v3720_v53 = vadd.f32 -0.65, %v6034_v57  ;;  %2500 = vst.msk [vmem:[%s5459_s20 + $0x5] sm:$0x1] %vm691_vm2, %v6034_v57  ;;  %v4179_v58 = vpop.f32.mrb[33].mxu0 }
 0x2b4   : > { %v2164_v47 = vrot.slane %v2163_v0, 1  ;;  %4245 = vmatprep.subr.bf16.mxu0 %v5082_v1  ;;  %v2321_v25 = vpop.f32.mrb[34].mxu0  ;;  %v3722_v12 = vadd.f32 -0.4, %v6034_v57 }
 0x2b5   : > { %v3721_v21 = vmul.f32 -33.333332, %v3720_v53  ;;  %v4180_v37 = vpop.f32.mrb[35].mxu0 }
 0x2b6   : > { %v2165_v42 = vmax.f32 %v2163_v0, %v2164_v47  ;;  %v3723_v28 = vmul.f32 -33.333332, %v3722_v12  ;;  %v2907_v0 = vsel %vm423_vm0, %v4520_v41, 0 }
 0x2b7   : > { %v2327_v4 = vmul.f32 1.442695, %v3721_v21  ;;  %4238 = vmatmul.mubr.msk.bf16.gmra.mrb[44].mxu1 %vm423_vm0, %v4520_v41 }
 0x2b8   : > { %2166 = vst [vmem:[%s5530_s8 + $0x4] sm:$0x1] %v2165_v42  ;;  %v2335_v15 = vmul.f32 1.442695, %v3723_v28 }
 0x2bb   : > { %4246 = vmatpush3.bf16.xpose.msra.mxu0 %v2904_v22 }
 0x2bc   : > { %4247 = vmatprep.subr.bf16.mxu0 %v5082_v1 }
 0x2c3   : > { %4248 = vmatpush3.bf16.xpose.msra.mxu0 %v2907_v0 }
 0x2c6   : > { %s4334_s29 = spop %4333 }
 0x2c7   : > { %s1068_s9 = smul.f32 %s4334_s29, %s5917_s16  ;;  %s6000_s14 = spop %4335 }
 0x2c8   : > { %s4338_s18 = spop %4337 }
 0x2c9   : > { %v1094_v51 = vstv %s1068_s9  ;;  %v1090_v40 = vstv %s4338_s18 }
 0x2ca   : > { %v6010_v49 = vsel %vm741_vm4, %v1094_v51, %v1043_v23  ;;  %4724 = vrcp.f32 %v1090_v40 }
 0x2cb   : > { %4726 = vpow2.f32 %v2025_v5 }
 0x2cc   : > { %4728 = vpow2.f32 %v2027_v20  ;;  %v1431_v20 = vpop.xlane.xlu1 %1430 }
 0x2cd   : > { %4730 = vpow2.f32 %v2023_v29  ;;  %v1432_v36 = vrot.slane %v1431_v20, 4 }
 0x2d4   : > { %v4725_v55 = vpop.eup %4724 }
 0x2d5   : > { %4339 = vpush %v4725_v55  ;;  %v4727_v61 = vpop.eup %4726  ;;  %v1423_v55 = vadd.f32 %v1422_v56, %v1421_v60 }
 0x2d6   : > { %4341 = vpush %v1402_v38  ;;  %v2035_v43 = vadd.f32 1.0, %v4727_v61  ;;  %v4729_v18 = vpop.eup %4728  ;;  %v1433_v38 = vadd.f32 %v1432_v36, %v1431_v20 }
 0x2d7   : > { %4343 = vpush %v1412_v63  ;;  %v4731_v50 = vpop.eup %4730  ;;  %v2036_v7 = vadd.f32 1.0, %v4729_v18  ;;  %v1424_v61 = vrot.slane %v1423_v55, 2  ;;  %v4521_v18 = vld [vmem:[%s5244_s19] ss:$0 sps:$4 sm:$0x88]  }
 0x2d8   : > { %v2034_v27 = vadd.f32 1.0, %v4731_v50  ;;  %4732 = vrcp.f32 %v2035_v43  ;;  %v1434_v44 = vrot.slane %v1433_v38, 2  ;;  %v2979_v58 = vshrl.u32 %v4521_v18, 16 }
 0x2d9   : > { %v1425_v32 = vadd.f32 %v1424_v61, %v1423_v55 }
 0x2da   : > { %4734 = vrcp.f32 %v2034_v27  ;;  %v1435_v21 = vadd.f32 %v1434_v44, %v1433_v38 }
 0x2db   : > { %4736 = vrcp.f32 %v2036_v7 }
 0x2dc   : > { %4738 = vpow2.f32 %v2327_v4 }
 0x2dd   : > { %4740 = vpow2.f32 %v2335_v15 }
 0x2e2   : > { %v4733_v3 = vpop.eup %4732 }
 0x2e3   : > { %v2059_v54 = vmul.f32 %v4733_v3, %v5962_v14 }
 0x2e4   : > { %v4735_v45 = vpop.eup %4734 }
 0x2e5   : > { %v2058_v11 = vmul.f32 %v4735_v45, %v6005_v52  ;;  %v2078_v23 = vadd.f32 %v4735_v45, %v5989_v39  ;;  %v4737_v5 = vpop.eup %4736  ;;  %v1436_v45 = vrot.slane %v1435_v21, 1 }
 0x2e6   : > { %v2060_v51 = vmul.f32 %v4737_v5, %v6003_v24  ;;  %v4739_v14 = vpop.eup %4738 }
 0x2e7   : > { %v2065_v40 = vadd.f32 %v5992_v59, %v2058_v11  ;;  %v2079_v17 = vadd.f32 %v4733_v3, %v2078_v23  ;;  %v2329_v34 = vadd.f32 1.0, %v4739_v14  ;;  %v4741_v8 = vpop.eup %4740  ;;  %v1426_v3 = vrot.slane %v1425_v32, 1 }
 0x2e8   : > { %v2337_v29 = vadd.f32 1.0, %v4741_v8  ;;  %v1437_v11 = vadd.f32 %v1436_v45, %v1435_v21  ;;  %v1748_v21 = vpop.xlane.xlu0 %1747  ;;  %v1758_v45 = vpop.xlane.xlu1 %1757 }
 0x2e9   : > { %v2066_v62 = vadd.f32 %v2065_v40, %v2059_v54  ;;  %v2080_v6 = vadd.f32 %v4737_v5, %v2079_v17  ;;  %4742 = vrcp.f32 %v2329_v34  ;;  %v1427_v54 = vadd.f32 %v1426_v3, %v1425_v32  ;;  %v6072_v5 = vpop.f32.mrb[28].mxu1 }
 0x2ea   : > { %4744 = vrcp.f32 %v2337_v29  ;;  %v6075_v28 = vpop.f32.mrb[29].mxu1 }
 0x2eb   : > { %v2067_v46 = vadd.f32 %v2066_v62, %v2060_v51  ;;  %v2081_v52 = vrot.slane %v2080_v6, 4  ;;  %v3724_v40 = vadd.f32 -0.65, %v6075_v28  ;;  %v6079_v17 = vpop.f32.mrb[30].mxu1 }
 0x2ec   : > { %v6082_v15 = vpop.f32.mrb[31].mxu1 }
 0x2ed   : > { %v2082_v39 = vadd.f32 %v2081_v52, %v2080_v6  ;;  %v2068_v26 = vrot.slane %v2067_v46, 4  ;;  %v3727_v6 = vadd.f32 -0.65, %v6079_v17  ;;  %v3725_v14 = vadd.f32 -0.65, %v6082_v15  ;;  %v6085_v52 = vpop.f32.mrb[32].mxu1 }
 0x2ef   : > { %v2083_v35 = vrot.slane %v2082_v39, 2  ;;  %v2069_v59 = vadd.f32 %v2068_v26, %v2067_v46  ;;  %v3732_v46 = vmul.f32 -33.333332, %v3724_v40  ;;  %v2507_v26 = vmax.f32 %v6072_v5, %v6085_v52 }
 0x2f0   : > { %v3733_v8 = vmul.f32 -33.333332, %v3725_v14 }
 0x2f1   : > { %v2084_v24 = vadd.f32 %v2083_v35, %v2082_v39  ;;  %v2070_v16 = vrot.slane %v2069_v59, 2  ;;  %v3735_v39 = vmul.f32 -33.333332, %v3727_v6  ;;  %v2365_v35 = vmul.f32 1.442695, %v3732_v46 }
 0x2f2   : > { %v2367_v20 = vmul.f32 1.442695, %v3733_v8 }
 0x2f3   : > { %v2085_v1 = vrot.slane %v2084_v24, 1  ;;  %v4743_v2 = vpop.eup %4742  ;;  %v2071_v63 = vadd.f32 %v2070_v16, %v2069_v59  ;;  %v2371_v60 = vmul.f32 1.442695, %v3735_v39 }
 0x2f4   : > { %2501 = vst.msk [vmem:[%s5488_s21 + $0x5] sm:$0x1] %vm691_vm2, %v4743_v2  ;;  %v2446_v33 = vmul.f32 %v4743_v2, %v6034_v57  ;;  %v4745_v50 = vpop.eup %4744  ;;  %v2457_v23 = vsel %vm691_vm2, %v4743_v2, 0.0 }
 0x2f5   : > { %v2086_v10 = vadd.f32 %v2085_v1, %v2084_v24  ;;  %v2072_v47 = vrot.slane %v2071_v63, 1  ;;  %v2340_v25 = vsub.f32 1.0, %v4745_v50  ;;  %2458 = vadd.xlane.f32.xlu1 %v2457_v23  ;;  %v6089_v24 = vpop.f32.mrb[33].mxu1 }
 0x2f6   : > { %v2447_v53 = vsel %vm691_vm2, %v2446_v33, 0.0  ;;  %v3728_v59 = vadd.f32 -0.65, %v6089_v24  ;;  %v2505_v29 = vmax.f32 %v6075_v28, %v6089_v24  ;;  %v6111_v14 = vpop.f32.mrb[34].mxu1 }
 0x2f7   : > { %4746 = vrcp.f32 %v2086_v10  ;;  %v2073_v7 = vadd.f32 %v2072_v47, %v2071_v63  ;;  %2448 = vadd.xlane.f32.xlu0 %v2447_v53  ;;  %v2471_v37 = vmul.f32 %v2340_v25, %v6034_v57  ;;  %2502 = vst.msk [vmem:[%s5496_s23 + $0x5] sm:$0x1] %vm691_vm2, %v2340_v25  ;;  %v3726_v57 = vadd.f32 -0.65, %v6072_v5  ;;  %v2261_v8 = vpop.f32.mrb[35].mxu1 }
 0x2f8   : > { %v2482_v51 = vsel %vm691_vm2, %v2340_v25, 0.0  ;;  %v3736_v1 = vmul.f32 -33.333332, %v3728_v59  ;;  %v3731_v59 = vadd.f32 -0.65, %v6111_v14 }
 0x2f9   : > { %v2472_v22 = vsel %vm691_vm2, %v2471_v37, 0.0  ;;  %v3734_v62 = vmul.f32 -33.333332, %v3726_v57  ;;  %2483 = vadd.xlane.f32.xlu1 %v2482_v51 }
 0x2fa   : > { %v2373_v56 = vmul.f32 1.442695, %v3736_v1  ;;  %v3729_v1 = vadd.f32 -0.65, %v2261_v8 }
 0x2fb   : > { %2473 = vadd.xlane.f32.xlu0 %v2472_v22  ;;  %v2369_v34 = vmul.f32 1.442695, %v3734_v62  ;;  %v1749_v22 = vrot.slane %v1748_v21, 4 }
 0x2fd   : > { %v1750_v23 = vadd.f32 %v1749_v22, %v1748_v21 }
 0x2ff   : > { %v1751_v62 = vrot.slane %v1750_v23, 2 }
 0x301   : > { %v4747_v27 = vpop.eup %4746 }
 0x302   : > { %v6064_v12 = vmul.f32 %v4747_v27, %v2073_v7 }
 0x306   : > { %s4340_s16 = spop %4339 }
 0x307   : > { %s1093_s29 = smul.f32 %s4340_s16, %s6000_s14  ;;  %s6053_s9 = spop %4341 }
 0x308   : > { %s4344_s18 = spop %4343 }
 0x309   : > { %v1096_v48 = vstv %s1093_s29  ;;  %v1414_v43 = vstv %s4344_s18 }
 0x30a   : > { %v1097_v13 = vsel %vm744_vm5, %v1096_v48, %v6010_v49  ;;  %4748 = vrcp.f32 %v1414_v43  ;;  %v2981_v49 = vrot.slane %v2979_v58, 3 }
 0x30b   : > { %v1101_v42 = vmul.f32 14.285714, %v1097_v13  ;;  %4750 = vpow2.f32 %v2369_v34 }
 0x30c   : > { %4250 = vmatmul.mubr.msk.bf16.vlgmr.msra.gmra.mrb[44].mxu0 %vm423_vm0, %v2981_v49  ;;  %4752 = vpow2.f32 %v2365_v35  ;;  %v1387_v49 = vstv %s1386_s22 }
 0x30d   : > { %1102 = vst [vmem:[%s5932_s15 + $0x1] sm:$0x1] %v1101_v42  ;;  %4754 = vpow2.f32 %v2371_v60  ;;  %vm1388_vm7 = vcmp.eq.s32.totalorder %v5848_v19, %v1387_v49 }
 0x30e   : > { %4756 = vpow2.f32 %v2367_v20  ;;  %v1389_v40 = vsel %vm1388_vm7, -99.0, %v5084_v9  ;;  %v2508_v20 = vmax.f32 %v6079_v17, %v6111_v14 }
 0x30f   : > { %4758 = vpow2.f32 %v2373_v56  ;;  %v1392_v6 = vmul.f32 %v5794_v31, %v1389_v40  ;;  %v2506_v31 = vmax.f32 %v6082_v15, %v2261_v8  ;;  %v1752_v56 = vadd.f32 %v1751_v62, %v1750_v23 }
 0x314   : > { %v4749_v4 = vpop.eup %4748 }
 0x315   : > { %4345 = vpush %v4749_v4  ;;  %v4751_v10 = vpop.eup %4750  ;;  %v3730_v4 = vadd.f32 -0.65, %v6085_v52 }
 0x316   : > { %4347 = vpush %v1427_v54  ;;  %v4753_v2 = vpop.eup %4752  ;;  %v2383_v36 = vadd.f32 1.0, %v4751_v10  ;;  %v1759_v54 = vrot.slane %v1758_v45, 4  ;;  %v3739_v10 = vmul.f32 -33.333332, %v3731_v59 }
 0x317   : > { %4349 = vpush %v1437_v11  ;;  %v4755_v16 = vpop.eup %4754  ;;  %v2381_v55 = vadd.f32 1.0, %v4753_v2  ;;  %v3738_v57 = vmul.f32 -33.333332, %v3730_v4  ;;  %v2510_v2 = vmax.f32 %v2507_v26, %v2508_v20 }
 0x318   : > { %v4757_v38 = vpop.eup %4756  ;;  %v2384_v63 = vadd.f32 1.0, %v4755_v16  ;;  %v1760_v51 = vadd.f32 %v1759_v54, %v1758_v45  ;;  %v3737_v16 = vmul.f32 -33.333332, %v3729_v1 }
 0x319   : > { %4760 = vrcp.f32 %v2381_v55  ;;  %v2382_v41 = vadd.f32 1.0, %v4757_v38  ;;  %v4759_v61 = vpop.eup %4758  ;;  %v2377_v46 = vmul.f32 1.442695, %v3738_v57  ;;  %v2509_v55 = vmax.f32 %v2505_v29, %v2506_v31  ;;  %v1773_v31 = vpop.xlane.xlu0 %1772 }
 0x31a   : > { %4762 = vrcp.f32 %v2383_v36  ;;  %v2385_v0 = vadd.f32 1.0, %v4759_v61  ;;  %v1761_v34 = vrot.slane %v1760_v51, 2  ;;  %v2379_v38 = vmul.f32 1.442695, %v3739_v10 }
 0x31b   : > { %4764 = vrcp.f32 %v2382_v41  ;;  %v2511_v41 = vmax.f32 %v2509_v55, %v2510_v2  ;;  %v1774_v2 = vrot.slane %v1773_v31, 4 }
 0x31c   : > { %4766 = vrcp.f32 %v2384_v63  ;;  %v1762_v36 = vadd.f32 %v1761_v34, %v1760_v51  ;;  %v2375_v63 = vmul.f32 1.442695, %v3737_v16 }
 0x31d   : > { %4768 = vrcp.f32 %v2385_v0 }
 0x31e   : > { %v1763_v61 = vrot.slane %v1762_v36, 1 }
 0x323   : > { %v4761_v44 = vpop.eup %4760 }
 0x324   : > { %v4763_v48 = vpop.eup %4762  ;;  %v2405_v43 = vmul.f32 %v4761_v44, %v6075_v28 }
 0x325   : > { %v4765_v47 = vpop.eup %4764  ;;  %v2407_v13 = vmul.f32 %v4763_v48, %v6072_v5  ;;  %v1764_v5 = vadd.f32 %v1763_v61, %v1762_v36 }
 0x326   : > { %v2406_v33 = vmul.f32 %v4765_v47, %v6082_v15  ;;  %v2426_v18 = vadd.f32 %v4765_v47, %v4761_v44  ;;  %v4767_v50 = vpop.eup %4766  ;;  %v2512_v15 = vrot.slane %v2511_v41, 4 }
 0x327   : > { %v2408_v42 = vmul.f32 %v4767_v50, %v6079_v17  ;;  %v4769_v32 = vpop.eup %4768  ;;  %v1753_v17 = vrot.slane %v1752_v56, 1 }
 0x328   : > { %v2413_v7 = vadd.f32 %v2406_v33, %v2405_v43  ;;  %v2427_v27 = vadd.f32 %v4763_v48, %v2426_v18  ;;  %v2409_v58 = vmul.f32 %v4769_v32, %v6089_v24  ;;  %v2513_v0 = vmax.f32 %v2511_v41, %v2512_v15 }
 0x329   : > { %v1754_v48 = vadd.f32 %v1753_v17, %v1752_v56 }
 0x32a   : > { %v2414_v53 = vadd.f32 %v2413_v7, %v2407_v13  ;;  %v2428_v25 = vadd.f32 %v4767_v50, %v2427_v27  ;;  %v2514_v26 = vrot.slane %v2513_v0, 2 }
 0x32c   : > { %v2415_v37 = vadd.f32 %v2414_v53, %v2408_v42  ;;  %v6100_v3 = vadd.f32 %v4769_v32, %v2428_v25  ;;  %v2515_v28 = vmax.f32 %v2513_v0, %v2514_v26 }
 0x32e   : > { %v6103_v11 = vadd.f32 %v2415_v37, %v2409_v58  ;;  %v2516_v29 = vrot.slane %v2515_v28, 1 }
 0x330   : > { %v2517_v33 = vmax.f32 %v2515_v28, %v2516_v29 }
 0x332   : > { %2518 = vst [vmem:[%s5530_s8 + $0x5] sm:$0x1] %v2517_v33 }
 0x342   : > { %v6128_v42 = vpop.f32.mrb[36].mxu1 }
 0x343   : > { %v3758_v7 = vadd.f32 -0.65, %v6128_v42  ;;  %2849 = vst.msk [vmem:[%s5459_s20 + $0x6] sm:$0x1] %vm691_vm2, %v6128_v42  ;;  %v4215_v27 = vpop.f32.mrb[37].mxu1 }
 0x344   : > { %v2670_v32 = vpop.f32.mrb[38].mxu1  ;;  %v3760_v58 = vadd.f32 -0.4, %v6128_v42 }
 0x345   : > { %v3759_v53 = vmul.f32 -33.333332, %v3758_v7  ;;  %v4216_v25 = vpop.f32.mrb[39].mxu1 }
 0x346   : > { %s4346_s19 = spop %4345  ;;  %v3761_v23 = vmul.f32 -33.333332, %v3760_v58 }
 0x347   : > { %s1417_s14 = smul.f32 %s4346_s19, %s6053_s9  ;;  %s6108_s16 = spop %4347  ;;  %v2676_v37 = vmul.f32 1.442695, %v3759_v53 }
 0x348   : > { %s4350_s29 = spop %4349 }
 0x349   : > { %v1443_v39 = vstv %s1417_s14  ;;  %v1439_v35 = vstv %s4350_s29  ;;  %s1738_s14 = sadd.s32 4, %s5181_s13 }
 0x34a   : > { %v6115_v60 = vsel %vm741_vm4, %v1443_v39, %v1392_v6  ;;  %4770 = vrcp.f32 %v1439_v35 }
 0x34b   : > { %4772 = vpow2.f32 %v2377_v46  ;;  %v2684_v46 = vmul.f32 1.442695, %v3761_v23 }
 0x34c   : > { %4774 = vpow2.f32 %v2379_v38 }
 0x34d   : > { %4776 = vpow2.f32 %v2375_v63  ;;  %v1775_v63 = vadd.f32 %v1774_v2, %v1773_v31 }
 0x34f   : > { %v1776_v61 = vrot.slane %v1775_v63, 2 }
 0x354   : > { %v4771_v44 = vpop.eup %4770 }
 0x355   : > { %4351 = vpush %v4771_v44  ;;  %v4773_v43 = vpop.eup %4772 }
 0x356   : > { %4353 = vpush %v1754_v48  ;;  %v2387_v24 = vadd.f32 1.0, %v4773_v43  ;;  %v4775_v47 = vpop.eup %4774 }
 0x357   : > { %4355 = vpush %v1764_v5  ;;  %v4777_v13 = vpop.eup %4776  ;;  %v2388_v18 = vadd.f32 1.0, %v4775_v47  ;;  %v1777_v47 = vadd.f32 %v1776_v61, %v1775_v63 }
 0x358   : > { %v2386_v50 = vadd.f32 1.0, %v4777_v13  ;;  %4778 = vrcp.f32 %v2387_v24 }
 0x35a   : > { %4780 = vrcp.f32 %v2386_v50 }
 0x35b   : > { %4782 = vrcp.f32 %v2388_v18 }
 0x35c   : > { %4784 = vpow2.f32 %v2676_v37 }
 0x35d   : > { %4786 = vpow2.f32 %v2684_v46 }
 0x362   : > { %v4779_v21 = vpop.eup %4778 }
 0x363   : > { %v2411_v22 = vmul.f32 %v4779_v21, %v6085_v52 }
 0x364   : > { %v4781_v49 = vpop.eup %4780 }
 0x365   : > { %v2410_v45 = vmul.f32 %v4781_v49, %v2261_v8  ;;  %v2430_v4 = vadd.f32 %v4781_v49, %v6100_v3  ;;  %v4783_v54 = vpop.eup %4782  ;;  %v6157_v49 = vpop.f32.mrb[36].mxu0 }
 0x366   : > { %v2412_v57 = vmul.f32 %v4783_v54, %v6111_v14  ;;  %v4785_v39 = vpop.eup %4784  ;;  %v6160_v37 = vpop.f32.mrb[37].mxu0 }
 0x367   : > { %v2417_v51 = vadd.f32 %v6103_v11, %v2410_v45  ;;  %v2431_v40 = vadd.f32 %v4779_v21, %v2430_v4  ;;  %v2678_v59 = vadd.f32 1.0, %v4785_v39  ;;  %v4787_v20 = vpop.eup %4786  ;;  %v1783_v11 = vpop.xlane.xlu1 %1782  ;;  %v3762_v45 = vadd.f32 -0.65, %v6160_v37 }
 0x368   : > { %v2686_v10 = vadd.f32 1.0, %v4787_v20  ;;  %v1784_v55 = vrot.slane %v1783_v11, 4  ;;  %v6164_v4 = vpop.f32.mrb[38].mxu0 }
 0x369   : > { %v2418_v62 = vadd.f32 %v2417_v51, %v2411_v22  ;;  %v2432_v6 = vadd.f32 %v4783_v54, %v2431_v40  ;;  %4788 = vrcp.f32 %v2678_v59  ;;  %v3765_v23 = vadd.f32 -0.65, %v6164_v4 }
 0x36a   : > { %4790 = vrcp.f32 %v2686_v10  ;;  %v1785_v41 = vadd.f32 %v1784_v55, %v1783_v11  ;;  %v3770_v51 = vmul.f32 -33.333332, %v3762_v45 }
 0x36b   : > { %v2419_v34 = vadd.f32 %v2418_v62, %v2412_v57  ;;  %v2433_v35 = vrot.slane %v2432_v6, 4  ;;  %v6167_v57 = vpop.f32.mrb[39].mxu0  ;;  %v3773_v46 = vmul.f32 -33.333332, %v3765_v23 }
 0x36c   : > { %v1786_v15 = vrot.slane %v1785_v41, 2  ;;  %v3763_v40 = vadd.f32 -0.65, %v6167_v57  ;;  %v6170_v62 = vpop.f32.mrb[40].mxu0  ;;  %v2714_v39 = vmul.f32 1.442695, %v3770_v51 }
 0x36d   : > { %v2434_v52 = vadd.f32 %v2433_v35, %v2432_v6  ;;  %v2420_v3 = vrot.slane %v2419_v34, 4  ;;  %v6174_v59 = vpop.f32.mrb[41].mxu0 }
 0x36e   : > { %v1787_v18 = vadd.f32 %v1786_v15, %v1785_v41  ;;  %v3771_v35 = vmul.f32 -33.333332, %v3763_v40  ;;  %v6196_v40 = vpop.f32.mrb[42].mxu0 }
 0x36f   : > { %v2435_v8 = vrot.slane %v2434_v52, 2  ;;  %v2421_v14 = vadd.f32 %v2420_v3, %v2419_v34  ;;  %v2856_v34 = vmax.f32 %v6157_v49, %v6170_v62  ;;  %v3766_v3 = vadd.f32 -0.65, %v6174_v59 }
 0x370   : > { %v1788_v32 = vrot.slane %v1787_v18, 1 }
 0x371   : > { %v2436_v1 = vadd.f32 %v2435_v8, %v2434_v52  ;;  %v2422_v38 = vrot.slane %v2421_v14, 2  ;;  %v2720_v52 = vmul.f32 1.442695, %v3773_v46  ;;  %v2716_v8 = vmul.f32 1.442695, %v3771_v35  ;;  %v2613_v35 = vpop.f32.mrb[43].mxu0 }
 0x372   : > { %v1789_v25 = vadd.f32 %v1788_v32, %v1787_v18  ;;  %v3774_v20 = vmul.f32 -33.333332, %v3766_v3  ;;  %v1739_v18 = vstv %s1738_s14  ;;  %v2107_v32 = vpop.xlane.xlu1 %2106  ;;  %v3769_v3 = vadd.f32 -0.65, %v6196_v40 }
 0x373   : > { %v2437_v56 = vrot.slane %v2436_v1, 1  ;;  %v4789_v16 = vpop.eup %4788  ;;  %v2423_v17 = vadd.f32 %v2422_v38, %v2421_v14  ;;  %vm1740_vm8 = vcmp.eq.s32.totalorder %v5848_v19, %v1739_v18 }
 0x374   : > { %2850 = vst.msk [vmem:[%s5488_s21 + $0x6] sm:$0x1] %vm691_vm2, %v4789_v16  ;;  %v2795_v26 = vmul.f32 %v4789_v16, %v6128_v42  ;;  %v4791_v43 = vpop.eup %4790  ;;  %v2806_v21 = vsel %vm691_vm2, %v4789_v16, 0.0  ;;  %v2722_v31 = vmul.f32 1.442695, %v3774_v20  ;;  %v1741_v45 = vsel %vm1740_vm8, -99.0, %v5084_v9 }
 0x375   : > { %v2438_v36 = vadd.f32 %v2437_v56, %v2436_v1  ;;  %v2424_v48 = vrot.slane %v2423_v17, 1  ;;  %v2689_v33 = vsub.f32 1.0, %v4791_v43  ;;  %2807 = vadd.xlane.f32.xlu1 %v2806_v21  ;;  %v2854_v1 = vmax.f32 %v6160_v37, %v6174_v59 }
 0x376   : > { %v2796_v13 = vsel %vm691_vm2, %v2795_v26, 0.0  ;;  %v1744_v23 = vmul.f32 %v5935_v30, %v1741_v45  ;;  %v3767_v20 = vadd.f32 -0.65, %v2613_v35  ;;  %v2855_v30 = vmax.f32 %v6167_v57, %v2613_v35 }
 0x377   : > { %4792 = vrcp.f32 %v2438_v36  ;;  %v2425_v24 = vadd.f32 %v2424_v48, %v2423_v17  ;;  %2797 = vadd.xlane.f32.xlu0 %v2796_v13  ;;  %v2820_v7 = vmul.f32 %v2689_v33, %v6128_v42  ;;  %2851 = vst.msk [vmem:[%s5496_s23 + $0x6] sm:$0x1] %vm691_vm2, %v2689_v33  ;;  %v3764_v42 = vadd.f32 -0.65, %v6157_v49 }
 0x378   : > { %v2831_v22 = vsel %vm691_vm2, %v2689_v33, 0.0  ;;  %v2097_v33 = vpop.xlane.xlu0 %2096 }
 0x379   : > { %v2821_v27 = vsel %vm691_vm2, %v2820_v7, 0.0  ;;  %v3772_v54 = vmul.f32 -33.333332, %v3764_v42  ;;  %2832 = vadd.xlane.f32.xlu1 %v2831_v22 }
 0x37b   : > { %2822 = vadd.xlane.f32.xlu0 %v2821_v27  ;;  %v2718_v6 = vmul.f32 1.442695, %v3772_v54  ;;  %v2098_v27 = vrot.slane %v2097_v33, 4 }
 0x37d   : > { %v2099_v21 = vadd.f32 %v2098_v27, %v2097_v33 }
 0x37f   : > { %v2100_v54 = vrot.slane %v2099_v21, 2 }
 0x381   : > { %v4793_v29 = vpop.eup %4792 }
 0x382   : > { %v6150_v50 = vmul.f32 %v4793_v29, %v2425_v24 }
 0x386   : > { %s4352_s9 = spop %4351 }
 0x387   : > { %s1442_s18 = smul.f32 %s4352_s9, %s6108_s16  ;;  %s6142_s22 = spop %4353 }
 0x388   : > { %s4356_s19 = spop %4355 }
 0x389   : > { %v1445_v0 = vstv %s1442_s18  ;;  %v1766_v44 = vstv %s4356_s19 }
 0x38a   : > { %v1446_v5 = vsel %vm744_vm5, %v1445_v0, %v6115_v60  ;;  %4794 = vrcp.f32 %v1766_v44  ;;  %v1778_v60 = vrot.slane %v1777_v47, 1 }
 0x38b   : > { %v1450_v28 = vmul.f32 14.285714, %v1446_v5  ;;  %4796 = vpow2.f32 %v2718_v6 }
 0x38c   : > { %v1779_v58 = vadd.f32 %v1778_v60, %v1777_v47  ;;  %4798 = vpow2.f32 %v2714_v39 }
 0x38d   : > { %1451 = vst [vmem:[%s5932_s15 + $0x2] sm:$0x1] %v1450_v28  ;;  %4800 = vpow2.f32 %v2720_v52 }
 0x38e   : > { %4802 = vpow2.f32 %v2716_v8  ;;  %v2857_v8 = vmax.f32 %v6164_v4, %v6196_v40 }
 0x38f   : > { %4804 = vpow2.f32 %v2722_v31  ;;  %v2101_v31 = vadd.f32 %v2100_v54, %v2099_v21 }
 0x394   : > { %v4795_v53 = vpop.eup %4794 }
 0x395   : > { %4357 = vpush %v4795_v53  ;;  %v4797_v14 = vpop.eup %4796  ;;  %v3768_v53 = vadd.f32 -0.65, %v6170_v62 }
 0x396   : > { %4359 = vpush %v1779_v58  ;;  %v4799_v11 = vpop.eup %4798  ;;  %v2732_v56 = vadd.f32 1.0, %v4797_v14  ;;  %v2108_v58 = vrot.slane %v2107_v32, 4  ;;  %v3777_v14 = vmul.f32 -33.333332, %v3769_v3 }
 0x397   : > { %4361 = vpush %v1789_v25  ;;  %v4801_v10 = vpop.eup %4800  ;;  %v2730_v2 = vadd.f32 1.0, %v4799_v11  ;;  %v3776_v42 = vmul.f32 -33.333332, %v3768_v53  ;;  %v2859_v11 = vmax.f32 %v2856_v34, %v2857_v8 }
 0x398   : > { %v4803_v36 = vpop.eup %4802  ;;  %v2733_v16 = vadd.f32 1.0, %v4801_v10  ;;  %v2109_v22 = vadd.f32 %v2108_v58, %v2107_v32  ;;  %v3775_v10 = vmul.f32 -33.333332, %v3767_v20 }
 0x399   : > { %4806 = vrcp.f32 %v2730_v2  ;;  %v2731_v55 = vadd.f32 1.0, %v4803_v36  ;;  %v4805_v38 = vpop.eup %4804  ;;  %v2726_v51 = vmul.f32 1.442695, %v3776_v42  ;;  %v2858_v2 = vmax.f32 %v2854_v1, %v2855_v30  ;;  %v2122_v30 = vpop.xlane.xlu0 %2121 }
 0x39a   : > { %4808 = vrcp.f32 %v2732_v56  ;;  %v2734_v63 = vadd.f32 1.0, %v4805_v38  ;;  %v2110_v6 = vrot.slane %v2109_v22, 2  ;;  %v2728_v36 = vmul.f32 1.442695, %v3777_v14 }
 0x39b   : > { %4810 = vrcp.f32 %v2731_v55  ;;  %v2860_v55 = vmax.f32 %v2858_v2, %v2859_v11  ;;  %v2123_v11 = vrot.slane %v2122_v30, 4 }
 0x39c   : > { %4812 = vrcp.f32 %v2733_v16  ;;  %v2111_v56 = vadd.f32 %v2110_v6, %v2109_v22  ;;  %v2724_v16 = vmul.f32 1.442695, %v3775_v10 }
 0x39d   : > { %4814 = vrcp.f32 %v2734_v63 }
 0x39e   : > { %v2112_v38 = vrot.slane %v2111_v56, 1 }
 0x3a3   : > { %v4807_v41 = vpop.eup %4806 }
 0x3a4   : > { %v4809_v17 = vpop.eup %4808  ;;  %v2754_v61 = vmul.f32 %v4807_v41, %v6160_v37 }
 0x3a5   : > { %v4811_v15 = vpop.eup %4810  ;;  %v2756_v0 = vmul.f32 %v4809_v17, %v6157_v49  ;;  %v2113_v49 = vadd.f32 %v2112_v38, %v2111_v56 }
 0x3a6   : > { %v2755_v44 = vmul.f32 %v4811_v15, %v6167_v57  ;;  %v2775_v48 = vadd.f32 %v4811_v15, %v4807_v41  ;;  %v4813_v5 = vpop.eup %4812  ;;  %v2861_v57 = vrot.slane %v2860_v55, 4 }
 0x3a7   : > { %v2757_v26 = vmul.f32 %v4813_v5, %v6164_v4  ;;  %v4815_v24 = vpop.eup %4814  ;;  %v2102_v4 = vrot.slane %v2101_v31, 1 }
 0x3a8   : > { %v2762_v43 = vadd.f32 %v2755_v44, %v2754_v61  ;;  %v2776_v28 = vadd.f32 %v4809_v17, %v2775_v48  ;;  %v2758_v47 = vmul.f32 %v4815_v24, %v6174_v59  ;;  %v2862_v63 = vmax.f32 %v2860_v55, %v2861_v57 }
 0x3a9   : > { %v2103_v17 = vadd.f32 %v2102_v4, %v2101_v31 }
 0x3aa   : > { %v2763_v29 = vadd.f32 %v2762_v43, %v2756_v0  ;;  %v2777_v13 = vadd.f32 %v4813_v5, %v2776_v28  ;;  %v2863_v34 = vrot.slane %v2862_v63, 2 }
 0x3ac   : > { %v2764_v7 = vadd.f32 %v2763_v29, %v2757_v26  ;;  %v6185_v60 = vadd.f32 %v4815_v24, %v2777_v13  ;;  %v2864_v37 = vmax.f32 %v2862_v63, %v2863_v34 }
 0x3ae   : > { %v6188_v25 = vadd.f32 %v2764_v7, %v2758_v47  ;;  %v2865_v1 = vrot.slane %v2864_v37, 1 }
 0x3b0   : > { %v2866_v44 = vmax.f32 %v2864_v37, %v2865_v1 }
 0x3b2   : > { %2867 = vst [vmem:[%s5530_s8 + $0x6] sm:$0x1] %v2866_v44 }
 0x3c6   : > { %s4358_s16 = spop %4357 }
 0x3c7   : > { %s1769_s29 = smul.f32 %s4358_s16, %s6142_s22  ;;  %s6193_s9 = spop %4359 }
 0x3c8   : > { %s4362_s18 = spop %4361 }
 0x3c9   : > { %v1795_v46 = vstv %s1769_s29  ;;  %v1791_v39 = vstv %s4362_s18  ;;  %s2087_s29 = sadd.s32 5, %s5181_s13 }
 0x3ca   : > { %v6200_v52 = vsel %vm741_vm4, %v1795_v46, %v1744_v23  ;;  %4816 = vrcp.f32 %v1791_v39 }
 0x3cb   : > { %4818 = vpow2.f32 %v2726_v51 }
 0x3cc   : > { %4820 = vpow2.f32 %v2728_v36 }
 0x3cd   : > { %4822 = vpow2.f32 %v2724_v16  ;;  %v2124_v16 = vadd.f32 %v2123_v11, %v2122_v30 }
 0x3cf   : > { %v2125_v38 = vrot.slane %v2124_v16, 2 }
 0x3d4   : > { %v4817_v41 = vpop.eup %4816 }
 0x3d5   : > { %4363 = vpush %v4817_v41  ;;  %v4819_v61 = vpop.eup %4818 }
 0x3d6   : > { %4365 = vpush %v2103_v17  ;;  %v2736_v59 = vadd.f32 1.0, %v4819_v61  ;;  %v4821_v15 = vpop.eup %4820 }
 0x3d7   : > { %4367 = vpush %v2113_v49  ;;  %v4823_v0 = vpop.eup %4822  ;;  %v2737_v48 = vadd.f32 1.0, %v4821_v15  ;;  %v2126_v15 = vadd.f32 %v2125_v38, %v2124_v16 }
 0x3d8   : > { %v2735_v5 = vadd.f32 1.0, %v4823_v0  ;;  %4824 = vrcp.f32 %v2736_v59 }
 0x3da   : > { %4826 = vrcp.f32 %v2735_v5 }
 0x3db   : > { %4828 = vrcp.f32 %v2737_v48 }
 0x3df   : > { %v6213_v26 = vpop.f32.mrb[44].mxu0 }
 0x3e0   : > { %v3796_v43 = vadd.f32 -0.65, %v6213_v26  ;;  %3201 = vst.msk [vmem:[%s5459_s20 + $0x7] sm:$0x1] %vm691_vm2, %v6213_v26  ;;  %v4251_v28 = vpop.f32.mrb[45].mxu0 }
 0x3e1   : > { %v3022_v24 = vpop.f32.mrb[46].mxu0  ;;  %v3798_v47 = vadd.f32 -0.4, %v6213_v26 }
 0x3e2   : > { %v3797_v29 = vmul.f32 -33.333332, %v3796_v43  ;;  %v4252_v13 = vpop.f32.mrb[47].mxu0  ;;  %v4825_v33 = vpop.eup %4824 }
 0x3e3   : > { %v2760_v27 = vmul.f32 %v4825_v33, %v6170_v62  ;;  %v3799_v21 = vmul.f32 -33.333332, %v3798_v47 }
 0x3e4   : > { %v4827_v18 = vpop.eup %4826  ;;  %v3028_v7 = vmul.f32 1.442695, %v3797_v29 }
 0x3e5   : > { %v2759_v32 = vmul.f32 %v4827_v18, %v2613_v35  ;;  %v2779_v53 = vadd.f32 %v4827_v18, %v6185_v60  ;;  %v4829_v58 = vpop.eup %4828  ;;  %v3036_v51 = vmul.f32 1.442695, %v3799_v21  ;;  %v2449_v18 = vpop.xlane.xlu0 %2448 }
 0x3e6   : > { %4830 = vpow2.f32 %v3028_v7  ;;  %v2761_v42 = vmul.f32 %v4829_v58, %v6196_v40  ;;  %v2088_v7 = vstv %s2087_s29 }
 0x3e7   : > { %v2766_v22 = vadd.f32 %v6188_v25, %v2759_v32  ;;  %v2780_v45 = vadd.f32 %v4825_v33, %v2779_v53  ;;  %4832 = vpow2.f32 %v3036_v51  ;;  %v2132_v25 = vpop.xlane.xlu1 %2131  ;;  %vm2089_vm9 = vcmp.eq.s32.totalorder %v5848_v19, %v2088_v7 }
 0x3e8   : > { %v2133_v2 = vrot.slane %v2132_v25, 4 }
 0x3e9   : > { %v2767_v54 = vadd.f32 %v2766_v22, %v2760_v27  ;;  %v2781_v23 = vadd.f32 %v4829_v58, %v2780_v45  ;;  %v2450_v27 = vrot.slane %v2449_v18, 4 }
 0x3ea   : > { %v2134_v55 = vadd.f32 %v2133_v2, %v2132_v25 }
 0x3eb   : > { %v2768_v6 = vadd.f32 %v2767_v54, %v2761_v42  ;;  %v2782_v39 = vrot.slane %v2781_v23, 4  ;;  %v2459_v32 = vpop.xlane.xlu1 %2458  ;;  %v2451_v58 = vadd.f32 %v2450_v27, %v2449_v18  ;;  %v2090_v42 = vsel %vm2089_vm9, -99.0, %v5084_v9 }
 0x3ec   : > { %v2135_v57 = vrot.slane %v2134_v55, 2  ;;  %v2460_v53 = vrot.slane %v2459_v32, 4  ;;  %v2093_v45 = vmul.f32 %v6064_v12, %v2090_v42  ;;  %v2474_v12 = vpop.xlane.xlu0 %2473 }
 0x3ed   : > { %v2783_v62 = vadd.f32 %v2782_v39, %v2781_v23  ;;  %v2769_v60 = vrot.slane %v2768_v6, 4  ;;  %v2452_v22 = vrot.slane %v2451_v58, 2  ;;  %v2475_v30 = vrot.slane %v2474_v12, 4 }
 0x3ee   : > { %v2136_v48 = vadd.f32 %v2135_v57, %v2134_v55  ;;  %v2461_v21 = vadd.f32 %v2460_v53, %v2459_v32 }
 0x3ef   : > { %v2784_v35 = vrot.slane %v2783_v62, 2  ;;  %v2770_v40 = vadd.f32 %v2769_v60, %v2768_v6  ;;  %v2476_v25 = vadd.f32 %v2475_v30, %v2474_v12 }
 0x3f0   : > { %v4831_v46 = vpop.eup %4830  ;;  %v2137_v24 = vrot.slane %v2136_v48, 1  ;;  %v2462_v54 = vrot.slane %v2461_v21, 2 }
 0x3f1   : > { %v3030_v3 = vadd.f32 1.0, %v4831_v46  ;;  %v4833_v8 = vpop.eup %4832  ;;  %v2785_v20 = vadd.f32 %v2784_v35, %v2783_v62  ;;  %v2771_v36 = vrot.slane %v2770_v40, 2  ;;  %v2453_v46 = vadd.f32 %v2452_v22, %v2451_v58 }
 0x3f2   : > { %v3038_v14 = vadd.f32 1.0, %v4833_v8  ;;  %v2138_v13 = vadd.f32 %v2137_v24, %v2136_v48  ;;  %v2463_v39 = vadd.f32 %v2462_v54, %v2461_v21 }
 0x3f3   : > { %4834 = vrcp.f32 %v3030_v3  ;;  %v2786_v31 = vrot.slane %v2785_v20, 1  ;;  %v2772_v4 = vadd.f32 %v2771_v36, %v2770_v40  ;;  %v2454_v3 = vrot.slane %v2453_v46, 1 }
 0x3f4   : > { %4836 = vrcp.f32 %v3038_v14  ;;  %v2464_v62 = vrot.slane %v2463_v39, 1  ;;  %v2477_v14 = vrot.slane %v2476_v25, 2 }
 0x3f5   : > { %v2787_v56 = vadd.f32 %v2786_v31, %v2785_v20  ;;  %v2773_v17 = vrot.slane %v2772_v4, 1  ;;  %v2455_v35 = vadd.f32 %v2454_v3, %v2453_v46  ;;  %v2484_v20 = vpop.xlane.xlu1 %2483 }
 0x3f6   : > { %v2465_v8 = vadd.f32 %v2464_v62, %v2463_v39  ;;  %v2485_v40 = vrot.slane %v2484_v20, 4  ;;  %v2478_v16 = vadd.f32 %v2477_v14, %v2476_v25 }
 0x3f7   : > { %4838 = vrcp.f32 %v2787_v56  ;;  %v2774_v59 = vadd.f32 %v2773_v17, %v2772_v4 }
 0x3f8   : > { %v2486_v31 = vadd.f32 %v2485_v40, %v2484_v20  ;;  %v2479_v4 = vrot.slane %v2478_v16, 1 }
 0x3fa   : > { %v2487_v11 = vrot.slane %v2486_v31, 2 }
 0x3fc   : > { %v2488_v55 = vadd.f32 %v2487_v11, %v2486_v31 }
 0x3fd   : > { %v4835_v10 = vpop.eup %4834 }
 0x3fe   : > { %3202 = vst.msk [vmem:[%s5488_s21 + $0x7] sm:$0x1] %vm691_vm2, %v4835_v10  ;;  %v3147_v34 = vmul.f32 %v4835_v10, %v6213_v26  ;;  %v4837_v61 = vpop.eup %4836  ;;  %v3158_v33 = vsel %vm691_vm2, %v4835_v10, 0.0  ;;  %v2489_v38 = vrot.slane %v2488_v55, 1 }
 0x3ff   : > { %v3041_v44 = vsub.f32 1.0, %v4837_v61  ;;  %3159 = vadd.xlane.f32.xlu1 %v3158_v33 }
 0x400   : > { %v3148_v0 = vsel %vm691_vm2, %v3147_v34, 0.0 }
 0x401   : > { %v4839_v1 = vpop.eup %4838  ;;  %3149 = vadd.xlane.f32.xlu0 %v3148_v0  ;;  %v3172_v43 = vmul.f32 %v3041_v44, %v6213_v26  ;;  %3203 = vst.msk [vmem:[%s5496_s23 + $0x7] sm:$0x1] %vm691_vm2, %v3041_v44  ;;  %v3183_v26 = vsel %vm691_vm2, %v3041_v44, 0.0 }
 0x402   : > { %v6235_v5 = vmul.f32 %v4839_v1, %v2774_v59  ;;  %v2808_v61 = vpop.xlane.xlu1 %2807 }
 0x403   : > { %v3173_v28 = vsel %vm691_vm2, %v3172_v43, 0.0  ;;  %3184 = vadd.xlane.f32.xlu1 %v3183_v26 }
 0x404   : > { %v2798_v17 = vpop.xlane.xlu0 %2797 }
 0x405   : > { %3174 = vadd.xlane.f32.xlu0 %v3173_v28  ;;  %v2799_v34 = vrot.slane %v2798_v17, 4 }
 0x406   : > { %s4364_s22 = spop %4363 }
 0x407   : > { %s1794_s19 = smul.f32 %s4364_s22, %s6193_s9  ;;  %s6227_s14 = spop %4365  ;;  %v2800_v59 = vadd.f32 %v2799_v34, %v2798_v17 }
 0x408   : > { %s4368_s16 = spop %4367 }
 0x409   : > { %v1797_v63 = vstv %s1794_s19  ;;  %v2115_v41 = vstv %s4368_s16  ;;  %v2801_v0 = vrot.slane %v2800_v59, 2 }
 0x40a   : > { %v1798_v49 = vsel %vm744_vm5, %v1797_v63, %v6200_v52  ;;  %4840 = vrcp.f32 %v2115_v41  ;;  %v2127_v52 = vrot.slane %v2126_v15, 1  ;;  %v2480_v63 = vadd.f32 %v2479_v4, %v2478_v16  ;;  %v2823_v4 = vpop.xlane.xlu0 %2822 }
 0x40b   : > { %v1802_v37 = vmul.f32 14.285714, %v1798_v49  ;;  %v2490_v41 = vadd.f32 %v2489_v38, %v2488_v55  ;;  %v2802_v24 = vadd.f32 %v2801_v0, %v2800_v59  ;;  %v2833_v38 = vpop.xlane.xlu1 %2832 }
 0x40c   : > { %v2128_v47 = vadd.f32 %v2127_v52, %v2126_v15 }
 0x40d   : > { %1803 = vst [vmem:[%s5932_s15 + $0x3] sm:$0x1] %v1802_v37  ;;  %v2809_v37 = vrot.slane %v2808_v61, 4 }
 0x40f   : > { %v2810_v1 = vadd.f32 %v2809_v37, %v2808_v61 }
 0x411   : > { %v2811_v48 = vrot.slane %v2810_v1, 2 }
 0x414   : > { %v4841_v29 = vpop.eup %4840 }
 0x415   : > { %4369 = vpush %v4841_v29  ;;  %v2812_v29 = vadd.f32 %v2811_v48, %v2810_v1 }
 0x416   : > { %4371 = vpush %v2128_v47  ;;  %v2803_v47 = vrot.slane %v2802_v24, 1 }
 0x417   : > { %4373 = vpush %v2138_v13  ;;  %v2813_v13 = vrot.slane %v2812_v29, 1 }
 0x418   : > { %v2804_v26 = vadd.f32 %v2803_v47, %v2802_v24 }
 0x419   : > { %v2814_v18 = vadd.f32 %v2813_v13, %v2812_v29 }
 0x446   : > { %s4370_s9 = spop %4369 }
 0x447   : > { %s2118_s18 = smul.f32 %s4370_s9, %s6227_s14  ;;  %s6247_s22 = spop %4371 }
 0x448   : > { %s4374_s19 = spop %4373 }
 0x449   : > { %v2144_v23 = vstv %s2118_s18  ;;  %v2140_v51 = vstv %s4374_s19  ;;  %s2439_s18 = sadd.s32 6, %s5181_s13 }
 0x44a   : > { %v2145_v6 = vsel %vm741_vm4, %v2144_v23, %v2093_v45  ;;  %4842 = vrcp.f32 %v2140_v51  ;;  %v2440_v49 = vstv %s2439_s18 }
 0x44b   : > { %vm2441_vm10 = vcmp.eq.s32.totalorder %v5848_v19, %v2440_v49 }
 0x44c   : > { %v2442_v15 = vsel %vm2441_vm10, -99.0, %v5084_v9 }
 0x44d   : > { %v2445_v44 = vmul.f32 %v6150_v50, %v2442_v15  ;;  %v6269_v50 = vpop.f32.mrb[40].mxu1 }
 0x44e   : > { %v3802_v7 = vadd.f32 -0.65, %v6269_v50  ;;  %v6272_v27 = vpop.f32.mrb[41].mxu1 }
 0x44f   : > { %v3800_v32 = vadd.f32 -0.65, %v6272_v27  ;;  %v6275_v53 = vpop.f32.mrb[42].mxu1 }
 0x450   : > { %v3810_v58 = vmul.f32 -33.333332, %v3802_v7  ;;  %v6277_v21 = vpop.f32.mrb[43].mxu1  ;;  %v3803_v46 = vadd.f32 -0.65, %v6275_v53 }
 0x451   : > { %v3808_v42 = vmul.f32 -33.333332, %v3800_v32  ;;  %v3801_v22 = vadd.f32 -0.65, %v6277_v21  ;;  %v6280_v45 = vpop.f32.mrb[44].mxu1 }
 0x452   : > { %v3070_v54 = vmul.f32 1.442695, %v3810_v58  ;;  %v3208_v23 = vmax.f32 %v6269_v50, %v6280_v45  ;;  %v3811_v3 = vmul.f32 -33.333332, %v3803_v46  ;;  %v3806_v17 = vadd.f32 -0.65, %v6280_v45 }
 0x453   : > { %v3066_v51 = vmul.f32 1.442695, %v3808_v42  ;;  %v2959_v0 = vpop.f32.mrb[45].mxu1 }
 0x454   : > { %v4843_v60 = vpop.eup %4842  ;;  %v3072_v62 = vmul.f32 1.442695, %v3811_v3  ;;  %v3814_v61 = vmul.f32 -33.333332, %v3806_v17  ;;  %v6293_v24 = vpop.f32.mrb[46].mxu1 }
 0x455   : > { %4375 = vpush %v4843_v60  ;;  %v2962_v47 = vpop.f32.mrb[47].mxu1 }
 0x456   : > { %4377 = vpush %v2455_v35  ;;  %v3078_v15 = vmul.f32 1.442695, %v3814_v61 }
 0x457   : > { %4379 = vpush %v2465_v8 }
 0x486   : > { %s4376_s14 = spop %4375 }
 0x487   : > { %s2143_s16 = smul.f32 %s4376_s14, %s6247_s22  ;;  %s6253_s29 = spop %4377 }
 0x488   : > { %s4380_s9 = spop %4379 }
 0x489   : > { %v2146_v56 = vstv %s2143_s16  ;;  %v2467_v10 = vstv %s4380_s9 }
 0x48a   : > { %v2147_v2 = vsel %vm744_vm5, %v2146_v56, %v2145_v6  ;;  %4844 = vrcp.f32 %v2467_v10  ;;  %v3809_v6 = vmul.f32 -33.333332, %v3801_v22  ;;  %v3206_v22 = vmax.f32 %v6272_v27, %v2959_v0 }
 0x48b   : > { %v2151_v36 = vmul.f32 14.285714, %v2147_v2 }
 0x48c   : > { %v3068_v39 = vmul.f32 1.442695, %v3809_v6  ;;  %v3207_v6 = vmax.f32 %v6277_v21, %v2962_v47 }
 0x48d   : > { %2152 = vst [vmem:[%s5932_s15 + $0x4] sm:$0x1] %v2151_v36 }
 0x494   : > { %v4845_v57 = vpop.eup %4844 }
 0x495   : > { %4381 = vpush %v4845_v57 }
 0x496   : > { %4383 = vpush %v2480_v63  ;;  %v2824_v63 = vrot.slane %v2823_v4, 4 }
 0x497   : > { %4385 = vpush %v2490_v41  ;;  %v2834_v41 = vrot.slane %v2833_v38, 4 }
 0x498   : > { %v2825_v49 = vadd.f32 %v2824_v63, %v2823_v4 }
 0x499   : > { %v2835_v34 = vadd.f32 %v2834_v41, %v2833_v38 }
 0x49a   : > { %v2826_v37 = vrot.slane %v2825_v49, 2 }
 0x49b   : > { %v2836_v1 = vrot.slane %v2835_v34, 2 }
 0x49d   : > { %v2837_v7 = vadd.f32 %v2836_v1, %v2835_v34 }
 0x4c6   : > { %s4382_s22 = spop %4381 }
 0x4c7   : > { %s2470_s19 = smul.f32 %s4382_s22, %s6253_s29  ;;  %s6262_s14 = spop %4383 }
 0x4c8   : > { %s4386_s16 = spop %4385 }
 0x4c9   : > { %v2496_v43 = vstv %s2470_s19  ;;  %v2492_v52 = vstv %s4386_s16  ;;  %s2788_s19 = sadd.s32 7, %s5181_s13 }
 0x4ca   : > { %v6267_v28 = vsel %vm741_vm4, %v2496_v43, %v2445_v44  ;;  %4846 = vrcp.f32 %v2492_v52  ;;  %v3804_v52 = vadd.f32 -0.65, %v2959_v0 }
 0x4cb   : > { %4848 = vpow2.f32 %v3070_v54  ;;  %v3807_v54 = vadd.f32 -0.65, %v6293_v24 }
 0x4cc   : > { %4850 = vpow2.f32 %v3066_v51  ;;  %v3209_v51 = vmax.f32 %v6275_v53, %v6293_v24 }
 0x4cd   : > { %4852 = vpow2.f32 %v3068_v39  ;;  %v3815_v39 = vmul.f32 -33.333332, %v3807_v54 }
 0x4ce   : > { %4854 = vpow2.f32 %v3072_v62  ;;  %v3211_v3 = vmax.f32 %v3208_v23, %v3209_v51 }
 0x4d4   : > { %v4847_v33 = vpop.eup %4846 }
 0x4d5   : > { %4387 = vpush %v4847_v33  ;;  %v4849_v60 = vpop.eup %4848  ;;  %v2827_v33 = vadd.f32 %v2826_v37, %v2825_v49 }
 0x4d6   : > { %4389 = vpush %v2804_v26  ;;  %v4851_v35 = vpop.eup %4850  ;;  %v3084_v8 = vadd.f32 1.0, %v4849_v60  ;;  %v3812_v26 = vmul.f32 -33.333332, %v3804_v52  ;;  %v3210_v60 = vmax.f32 %v3206_v22, %v3207_v6 }
 0x4d7   : > { %4391 = vpush %v2814_v18  ;;  %v3082_v12 = vadd.f32 1.0, %v4851_v35  ;;  %v4853_v20 = vpop.eup %4852  ;;  %v3805_v18 = vadd.f32 -0.65, %v2962_v47  ;;  %v2828_v46 = vrot.slane %v2827_v33, 1  ;;  %v2838_v35 = vrot.slane %v2837_v7, 1 }
 0x4d8   : > { %v3083_v30 = vadd.f32 1.0, %v4853_v20  ;;  %v4855_v40 = vpop.eup %4854  ;;  %v3074_v32 = vmul.f32 1.442695, %v3812_v26 }
 0x4d9   : > { %4856 = vrcp.f32 %v3082_v12  ;;  %v3085_v36 = vadd.f32 1.0, %v4855_v40  ;;  %v2829_v20 = vadd.f32 %v2828_v46, %v2827_v33 }
 0x4da   : > { %4858 = vrcp.f32 %v3084_v8  ;;  %v3080_v8 = vmul.f32 1.442695, %v3815_v39 }
 0x4db   : > { %4860 = vrcp.f32 %v3083_v30  ;;  %v2839_v30 = vadd.f32 %v2838_v35, %v2837_v7  ;;  %v2789_v7 = vstv %s2788_s19 }
 0x4dc   : > { %4862 = vrcp.f32 %v3085_v36  ;;  %vm2790_vm11 = vcmp.eq.s32.totalorder %v5848_v19, %v2789_v7 }
 0x4dd   : > { %v2791_v6 = vsel %vm2790_vm11, -99.0, %v5084_v9 }
 0x4e3   : > { %v4857_v25 = vpop.eup %4856 }
 0x4e4   : > { %v4859_v31 = vpop.eup %4858  ;;  %v3106_v14 = vmul.f32 %v4857_v25, %v6272_v27  ;;  %v3212_v27 = vmax.f32 %v3210_v60, %v3211_v3 }
 0x4e5   : > { %v4861_v11 = vpop.eup %4860  ;;  %v3108_v56 = vmul.f32 %v4859_v31, %v6269_v50 }
 0x4e6   : > { %v3107_v10 = vmul.f32 %v4861_v11, %v6277_v21  ;;  %v3127_v2 = vadd.f32 %v4861_v11, %v4857_v25  ;;  %v4863_v59 = vpop.eup %4862 }
 0x4e7   : > { %v3109_v43 = vmul.f32 %v4863_v59, %v6275_v53  ;;  %v3213_v53 = vrot.slane %v3212_v27, 4 }
 0x4e8   : > { %v3114_v16 = vadd.f32 %v3107_v10, %v3106_v14  ;;  %v3128_v55 = vadd.f32 %v4859_v31, %v3127_v2 }
 0x4e9   : > { %v3214_v40 = vmax.f32 %v3212_v27, %v3213_v53 }
 0x4ea   : > { %v3115_v57 = vadd.f32 %v3114_v16, %v3108_v56  ;;  %v3129_v42 = vadd.f32 %v4863_v59, %v3128_v55 }
 0x4eb   : > { %v3215_v25 = vrot.slane %v3214_v40, 2 }
 0x4ec   : > { %v3116_v58 = vadd.f32 %v3115_v57, %v3109_v43 }
 0x4ed   : > { %v3216_v14 = vmax.f32 %v3214_v40, %v3215_v25 }
 0x4ef   : > { %v3217_v56 = vrot.slane %v3216_v14, 1 }
 0x4f1   : > { %v3218_v36 = vmax.f32 %v3216_v14, %v3217_v56 }
 0x4f3   : > { %3219 = vst [vmem:[%s5530_s8 + $0x7] sm:$0x1] %v3218_v36 }
 0x506   : > { %s4388_s29 = spop %4387 }
 0x507   : > { %s2495_s9 = smul.f32 %s4388_s29, %s6262_s14  ;;  %s6290_s18 = spop %4389 }
 0x508   : > { %s4392_s22 = spop %4391 }
 0x509   : > { %v2498_v44 = vstv %s2495_s9  ;;  %v2816_v48 = vstv %s4392_s22 }
 0x50a   : > { %v2499_v29 = vsel %vm744_vm5, %v2498_v44, %v6267_v28  ;;  %4864 = vrcp.f32 %v2816_v48  ;;  %v3813_v28 = vmul.f32 -33.333332, %v3805_v18 }
 0x50b   : > { %v2503_v13 = vmul.f32 14.285714, %v2499_v29  ;;  %4866 = vpow2.f32 %v3078_v15 }
 0x50c   : > { %4868 = vpow2.f32 %v3074_v32  ;;  %v3076_v62 = vmul.f32 1.442695, %v3813_v28 }
 0x50d   : > { %2504 = vst [vmem:[%s5932_s15 + $0x5] sm:$0x1] %v2503_v13 }
 0x50e   : > { %4870 = vpow2.f32 %v3076_v62  ;;  %v2794_v62 = vmul.f32 %v6235_v5, %v2791_v6 }
 0x50f   : > { %4872 = vpow2.f32 %v3080_v8 }
 0x514   : > { %v4865_v12 = vpop.eup %4864 }
 0x515   : > { %4393 = vpush %v4865_v12  ;;  %v4867_v21 = vpop.eup %4866 }
 0x516   : > { %4395 = vpush %v2829_v20  ;;  %v4869_v50 = vpop.eup %4868  ;;  %v3088_v23 = vadd.f32 1.0, %v4867_v21 }
 0x517   : > { %4397 = vpush %v2839_v30  ;;  %v3086_v31 = vadd.f32 1.0, %v4869_v50 }
 0x518   : > { %v4871_v11 = vpop.eup %4870 }
 0x519   : > { %4874 = vrcp.f32 %v3086_v31  ;;  %v3087_v10 = vadd.f32 1.0, %v4871_v11  ;;  %v4873_v2 = vpop.eup %4872 }
 0x51a   : > { %4876 = vrcp.f32 %v3088_v23  ;;  %v3089_v16 = vadd.f32 1.0, %v4873_v2 }
 0x51b   : > { %4878 = vrcp.f32 %v3087_v10 }
 0x51c   : > { %4880 = vrcp.f32 %v3089_v16 }
 0x523   : > { %v4875_v55 = vpop.eup %4874 }
 0x524   : > { %v3110_v4 = vmul.f32 %v4875_v55, %v2959_v0  ;;  %v3130_v38 = vadd.f32 %v4875_v55, %v3129_v42  ;;  %v4877_v57 = vpop.eup %4876  ;;  %v3160_v42 = vpop.xlane.xlu1 %3159 }
 0x525   : > { %v4879_v63 = vpop.eup %4878  ;;  %v3112_v17 = vmul.f32 %v4877_v57, %v6280_v45  ;;  %v3161_v22 = vrot.slane %v3160_v42, 4 }
 0x526   : > { %v3117_v41 = vadd.f32 %v3116_v58, %v3110_v4  ;;  %v3111_v49 = vmul.f32 %v4879_v63, %v2962_v47  ;;  %v3131_v34 = vadd.f32 %v4879_v63, %v3130_v38  ;;  %v4881_v61 = vpop.eup %4880 }
 0x527   : > { %v3113_v37 = vmul.f32 %v4881_v61, %v6293_v24  ;;  %v3150_v24 = vpop.xlane.xlu0 %3149  ;;  %v3162_v28 = vadd.f32 %v3161_v22, %v3160_v42 }
 0x528   : > { %v3118_v59 = vadd.f32 %v3117_v41, %v3111_v49  ;;  %v3132_v1 = vadd.f32 %v4877_v57, %v3131_v34  ;;  %v3151_v58 = vrot.slane %v3150_v24, 4  ;;  %v3185_v50 = vpop.xlane.xlu1 %3184 }
 0x529   : > { %v3163_v60 = vrot.slane %v3162_v28, 2  ;;  %v3186_v31 = vrot.slane %v3185_v50, 4 }
 0x52a   : > { %v3119_v15 = vadd.f32 %v3118_v59, %v3112_v17  ;;  %v3133_v44 = vadd.f32 %v4881_v61, %v3132_v1  ;;  %v3152_v51 = vadd.f32 %v3151_v58, %v3150_v24 }
 0x52b   : > { %v3164_v20 = vadd.f32 %v3163_v60, %v3162_v28  ;;  %v3175_v5 = vpop.xlane.xlu0 %3174  ;;  %v3187_v11 = vadd.f32 %v3186_v31, %v3185_v50 }
 0x52c   : > { %v3120_v48 = vadd.f32 %v3119_v15, %v3113_v37  ;;  %v3134_v43 = vrot.slane %v3133_v44, 4  ;;  %v3153_v3 = vrot.slane %v3152_v51, 2  ;;  %v3176_v23 = vrot.slane %v3175_v5, 4 }
 0x52d   : > { %v3165_v30 = vrot.slane %v3164_v20, 1  ;;  %v3188_v10 = vrot.slane %v3187_v11, 2 }
 0x52e   : > { %v3121_v52 = vrot.slane %v3120_v48, 4  ;;  %v3135_v0 = vadd.f32 %v3134_v43, %v3133_v44  ;;  %v3154_v12 = vadd.f32 %v3153_v3, %v3152_v51  ;;  %v3177_v14 = vadd.f32 %v3176_v23, %v3175_v5 }
 0x52f   : > { %v3166_v25 = vadd.f32 %v3165_v30, %v3164_v20  ;;  %v3189_v38 = vadd.f32 %v3188_v10, %v3187_v11 }
 0x530   : > { %v3122_v29 = vadd.f32 %v3121_v52, %v3120_v48  ;;  %v3136_v13 = vrot.slane %v3135_v0, 2  ;;  %v3155_v53 = vrot.slane %v3154_v12, 1  ;;  %v3178_v56 = vrot.slane %v3177_v14, 2 }
 0x532   : > { %v3137_v33 = vadd.f32 %v3136_v13, %v3135_v0  ;;  %v3123_v26 = vrot.slane %v3122_v29, 2  ;;  %v3156_v40 = vadd.f32 %v3155_v53, %v3154_v12  ;;  %v3179_v4 = vadd.f32 %v3178_v56, %v3177_v14 }
 0x534   : > { %v3138_v18 = vrot.slane %v3137_v33, 1  ;;  %v3124_v47 = vadd.f32 %v3123_v26, %v3122_v29  ;;  %v3180_v57 = vrot.slane %v3179_v4, 1 }
 0x536   : > { %v3139_v45 = vadd.f32 %v3138_v18, %v3137_v33  ;;  %v3125_v32 = vrot.slane %v3124_v47, 1 }
 0x538   : > { %4882 = vrcp.f32 %v3139_v45  ;;  %v3126_v54 = vadd.f32 %v3125_v32, %v3124_v47 }
 0x542   : > { %v4883_v46 = vpop.eup %4882 }
 0x543   : > { %v6316_v39 = vmul.f32 %v4883_v46, %v3126_v54 }
 0x546   : > { %s4394_s14 = spop %4393 }
 0x547   : > { %s2819_s16 = smul.f32 %s4394_s14, %s6290_s18  ;;  %s6314_s29 = spop %4395 }
 0x548   : > { %s4398_s9 = spop %4397 }
 0x549   : > { %v2845_v35 = vstv %s2819_s16  ;;  %v2841_v8 = vstv %s4398_s9  ;;  %s6530_s16 = sand.u32 1, %s5151_s28   ;;  %s6328_s9 = sshll.u32 %s5151_s28, 7 }
 0x54a   : > { %v2846_v27 = vsel %vm741_vm4, %v2845_v35, %v2794_v62  ;;  %4884 = vrcp.f32 %v2841_v8  ;;  %s6335_s17 = scalar_lea.hbm %s6541_s4, %s6328_s9 }
 0x554   : > { %v4885_v21 = vpop.eup %4884 }
 0x555   : > { %4399 = vpush %v4885_v21 }
 0x556   : > { %4401 = vpush %v3156_v40 }
 0x557   : > { %4403 = vpush %v3166_v25 }
 0x586   : > { %s4400_s18 = spop %4399 }
 0x587   : > { %s2844_s22 = smul.f32 %s4400_s18, %s6314_s29  ;;  %s6322_s19 = spop %4401 }
 0x588   : > { %s4404_s14 = spop %4403  ;;  %s4904_s29 = scalar_lea.vmem %s4903_s2, 256 }
 0x589   : > { %v2847_v2 = vstv %s2844_s22  ;;  %v3168_v36 = vstv %s4404_s14  ;;  %s3267_s22 = sshll.u32 %s5488_s21, 4  ;;  %s6342_s14 = scalar_lea.sflag [#allocation5], %s6530_s16  ;;  %s6338_s22 = int_to_ptr.vmem [resolvable:$true] %s3267_s22 }
 0x58a   : > { %v2848_v16 = vsel %vm744_vm5, %v2847_v2, %v2846_v27  ;;  %4886 = vrcp.f32 %v3168_v36  ;;  %s4898_s0 = scalar_lea.vmem %s6338_s22, 128  ;;  %p4905_p1 = scmp.lt.s32.totalorder %s6338_s22, %s4903_s2 }
 0x58b   : > { %v2852_v55 = vmul.f32 14.285714, %v2848_v16  ;;  %p4899_p12 = scmp.ne.s32.totalorder %s6338_s22, %s4898_s0  ;;  %p4906_p2 = scmp.lt.s32.totalorder %s4904_s29, %s4898_s0 }
 0x58d   : > { %2853 = vst [vmem:[%s5932_s15 + $0x6] sm:$0x1] %v2852_v55  ;;  %p4900_p13 = pnand %p4899_p12, %p5170_p5  ;;  %p4907_p3 = por %p4906_p2, %p4905_p1 }
 0x58f   : > { %p4901_p0 = pneg %p4900_p13 }
 0x591   : > { %p4908_p4 = pnand %p4907_p3, %p4901_p0 }
 0x593   : > { %4911 = shalt.err (!%p4908_p4)
}
 0x594   : > { %s4912_s21 = scalar_lea.hbm %s6335_s17, 128  ;;  %s4916_s1 = scalar_lea.hbm %s6541_s4, 256 }
 0x595   : > { %p4913_p7 = scmp.ne.s32.totalorder %s6335_s17, %s4912_s21  ;;  %p4917_p10 = scmp.lt.u32.totalorder %s6335_s17, %s6541_s4 }
 0x596   : > { %p4918_p11 = scmp.lt.u32.totalorder %s4916_s1, %s4912_s21  ;;  %p4920_p13 = scmp.lt.u32.totalorder %s4912_s21, %s6335_s17 }
 0x597   : > { %p4914_p8 = pnand %p4913_p7, %p5170_p5 }
 0x598   : > { %p4919_p12 = por %p4918_p11, %p4917_p10 }
 0x599   : > { %p4915_p9 = pneg %p4914_p8 }
 0x59a   : > { %p4921_p0 = por %p4920_p13, %p4919_p12 }
 0x59c   : > { %p4922_p1 = pnand %p4921_p0, %p4915_p9 }
 0x59e   : > { %4925 = shalt.err (!%p4922_p1)
}
 0x59f   : > { %4414 = dma.vmem_to_hbm [thread:$0]  (%p5170_p5), %s6338_s22, 128, %s6335_s17, %s6342_s14   ;;  %v3190_v63 = vrot.slane %v3189_v38, 1  ;;  %v4887_v41 = vpop.eup %4886  ;;  %v3181_v17 = vadd.f32 %v3180_v57, %v3179_v4 }
 0x5a0   : > { %s6370_s16 = scalar_lea.hbm %s6523_s3, %s6328_s9  ;;  %s3254_s29 = sshll.u32 %s5459_s20, 4  ;;  %4405 = vpush %v4887_v41  ;;  %s6379_s29 = int_to_ptr.vmem [resolvable:$true] %s3254_s29 }
 0x5a1   : > { %s6377_s1 = scalar_lea.hbm %s6525_s5, %s6328_s9  ;;  %v3191_v49 = vadd.f32 %v3190_v63, %v3189_v38  ;;  %s6542_s22 = sand.u32 1, %s5072_s25  }
 0x5a2   : > { %s3221_s2 = scalar_lea.sflag [#allocation3], %s6542_s22  ;;  %s4926_s0 = scalar_lea.vmem %s6379_s29, 128 }
 0x5a3   : > { %p4927_p2 = scmp.ne.s32.totalorder %s6379_s29, %s4926_s0  ;;  %s5086_s20 = smov [#allocation2]  }
 0x5a4   : > { %s4930_s10 = sshll.u32 %s5086_s20, 4  ;;  %s4931_s10 = int_to_ptr.vmem [resolvable:$false] %s4930_s10 }
 0x5a5   : > { %p4928_p3 = pnand %p4927_p2, %p5170_p5  ;;  %s4932_s21 = scalar_lea.vmem %s4931_s10, 256 }
 0x5a6   : > { %p4933_p7 = scmp.lt.s32.totalorder %s6379_s29, %s4931_s10  ;;  %p4934_p8 = scmp.lt.s32.totalorder %s4932_s21, %s4926_s0 }
 0x5a7   : > { %p4929_p4 = pneg %p4928_p3 }
 0x5a8   : > { %p4935_p9 = por %p4934_p8, %p4933_p7 }
 0x5aa   : > { %p4936_p10 = pnand %p4935_p9, %p4929_p4 }
 0x5ac   : > { %4939 = shalt.err (!%p4936_p10)
}
 0x5ad   : > { %s4940_s18 = scalar_lea.hbm %s6370_s16, 128  ;;  %s4944_s20 = scalar_lea.hbm %s6523_s3, 256 }
 0x5ae   : > { %p4941_p11 = scmp.ne.s32.totalorder %s6370_s16, %s4940_s18  ;;  %p4945_p0 = scmp.lt.u32.totalorder %s6370_s16, %s6523_s3 }
 0x5af   : > { %p4946_p1 = scmp.lt.u32.totalorder %s4944_s20, %s4940_s18  ;;  %p4948_p3 = scmp.lt.u32.totalorder %s4940_s18, %s6370_s16 }
 0x5b0   : > { %p4942_p12 = pnand %p4941_p11, %p5170_p5 }
 0x5b1   : > { %p4947_p2 = por %p4946_p1, %p4945_p0 }
 0x5b2   : > { %p4943_p13 = pneg %p4942_p12 }
 0x5b3   : > { %p4949_p4 = por %p4948_p3, %p4947_p2 }
 0x5b5   : > { %p4950_p7 = pnand %p4949_p4, %p4943_p13 }
 0x5b7   : > { %4953 = shalt.err (!%p4950_p7)
}
 0x5b8   : > { %4413 = dma.vmem_to_hbm [thread:$0]  (%p5170_p5), %s6379_s29, 128, %s6370_s16, %s3221_s2   ;;  %4407 = vpush %v3181_v17 }
 0x5b9   : > { %s6543_s17 = sshll.u32 %s5496_s23, 4  ;;  %4409 = vpush %v3191_v49  ;;  %s5087_s4 = smov [#allocation6]   ;;  %s3281_s17 = int_to_ptr.vmem [resolvable:$true] %s6543_s17 }
 0x5ba   : > { %s4954_s0 = scalar_lea.vmem %s3281_s17, 128  ;;  %s4958_s21 = sshll.u32 %s5087_s4, 4  ;;  %s4959_s21 = int_to_ptr.vmem [resolvable:$false] %s4958_s21 }
 0x5bb   : > { %p4955_p8 = scmp.ne.s32.totalorder %s3281_s17, %s4954_s0  ;;  %s4960_s18 = scalar_lea.vmem %s4959_s21, 256 }
 0x5bc   : > { %p4961_p11 = scmp.lt.s32.totalorder %s3281_s17, %s4959_s21  ;;  %p4962_p12 = scmp.lt.s32.totalorder %s4960_s18, %s4954_s0 }
 0x5bd   : > { %p4956_p9 = pnand %p4955_p8, %p5170_p5 }
 0x5be   : > { %p4963_p13 = por %p4962_p12, %p4961_p11 }
 0x5bf   : > { %p4957_p10 = pneg %p4956_p9 }
 0x5c1   : > { %p4964_p0 = pnand %p4963_p13, %p4957_p10 }
 0x5c3   : > { %4967 = shalt.err (!%p4964_p0)
}
 0x5c4   : > { %s4968_s23 = scalar_lea.hbm %s6377_s1, 128  ;;  %s4972_s2 = scalar_lea.hbm %s6525_s5, 256 }
 0x5c5   : > { %p4969_p1 = scmp.ne.s32.totalorder %s6377_s1, %s4968_s23  ;;  %p4973_p4 = scmp.lt.u32.totalorder %s6377_s1, %s6525_s5 }
 0x5c6   : > { %p4974_p7 = scmp.lt.u32.totalorder %s4972_s2, %s4968_s23  ;;  %p4976_p9 = scmp.lt.u32.totalorder %s4968_s23, %s6377_s1 }
 0x5c7   : > { %p4970_p2 = pnand %p4969_p1, %p5170_p5 }
 0x5c8   : > { %p4975_p8 = por %p4974_p7, %p4973_p4 }
 0x5c9   : > { %p4971_p3 = pneg %p4970_p2 }
 0x5ca   : > { %p4977_p10 = por %p4976_p9, %p4975_p8 }
 0x5cc   : > { %p4978_p11 = pnand %p4977_p10, %p4971_p3 }
 0x5ce   : > { %4981 = shalt.err (!%p4978_p11)
}
 0x5cf   : > { %4415 = dma.vmem_to_hbm [thread:$0]  (%p5170_p5), %s3281_s17, 128, %s6377_s1, %s6342_s14  }
 0x5d0   : > { %s3140_s10 = sadd.s32 8, %s5181_s13  ;;  %s3293_s1 = sshll.u32 %s5932_s15, 4  ;;  %s6442_s1 = int_to_ptr.vmem [resolvable:$true] %s3293_s1 }
 0x5d1   : > { %v3141_v34 = vstv %s3140_s10  ;;  %s4406_s0 = spop %4405  ;;  %s6440_s16 = scalar_lea.hbm %s6526_s6, %s6328_s9 }
 0x5d2   : > { %vm3142_vm12 = vcmp.eq.s32.totalorder %v5848_v19, %v3141_v34  ;;  %s3171_s4 = smul.f32 %s4406_s0, %s6322_s19  ;;  %s3306_s19 = sshll.u32 %s5530_s8, 4  ;;  %s6450_s19 = int_to_ptr.vmem [resolvable:$true] %s3306_s19 }
 0x5d3   : > { %v3143_v61 = vsel %vm3142_vm12, -99.0, %v5084_v9  ;;  %s6448_s22 = scalar_lea.hbm %s6527_s7, %s6328_s9  ;;  %s6544_s8 = sand.u32 1, %s5151_s28  }
 0x5d4   : > { %v3146_v37 = vmul.f32 %v6316_v39, %v3143_v61  ;;  %v3197_v59 = vstv %s3171_s4  ;;  %s6455_s20 = scalar_lea.sflag [#allocation8], %s6544_s8  ;;  %s4982_s10 = scalar_lea.vmem %s6442_s1, 128 }
 0x5d5   : > { %p4983_p12 = scmp.ne.s32.totalorder %s6442_s1, %s4982_s10  ;;  %s5088_s0 = smov [#allocation7]  }
 0x5d6   : > { %v3198_v15 = vsel %vm741_vm4, %v3197_v59, %v3146_v37  ;;  %s4986_s4 = sshll.u32 %s5088_s0, 4  ;;  %s4987_s4 = int_to_ptr.vmem [resolvable:$false] %s4986_s4 }
 0x5d7   : > { %p4984_p13 = pnand %p4983_p12, %p5170_p5  ;;  %p4989_p1 = scmp.lt.s32.totalorder %s6442_s1, %s4987_s4 }
 0x5d9   : > { %p4985_p0 = pneg %p4984_p13 }
 0x5e9   : > { %s4408_s21 = spop %4407 }
 0x5ea   : > { %s4410_s18 = spop %4409 }
 0x5eb   : > { %v3193_v1 = vstv %s4410_s18 }
 0x5ec   : > { %4888 = vrcp.f32 %v3193_v1 }
 0x5f6   : > { %v4889_v44 = vpop.eup %4888 }
 0x5f7   : > { %4411 = vpush %v4889_v44 }
 0x628   : > { %s4412_s13 = spop %4411 }
 0x629   : > { %s3196_s14 = smul.f32 %s4412_s13, %s4408_s21  ;;  %s4988_s21 = scalar_lea.vmem %s4987_s4, 256 }
 0x62a   : > { %p4990_p2 = scmp.lt.s32.totalorder %s4988_s21, %s4982_s10 }
 0x62b   : > { %v3199_v9 = vstv %s3196_s14 }
 0x62c   : > { %v3200_v48 = vsel %vm744_vm5, %v3199_v9, %v3198_v15  ;;  %p4991_p3 = por %p4990_p2, %p4989_p1 }
 0x62d   : > { %v3204_v43 = vmul.f32 14.285714, %v3200_v48 }
 0x62e   : > { %p4992_p4 = pnand %p4991_p3, %p4985_p0 }
 0x62f   : > { %3205 = vst [vmem:[%s5932_s15 + $0x7] sm:$0x1] %v3204_v43 }
 0x630   : > { %4995 = shalt.err (!%p4992_p4)
}
 0x631   : > { %s4996_s28 = scalar_lea.hbm %s6440_s16, 128  ;;  %s5000_s18 = scalar_lea.hbm %s6526_s6, 256 }
 0x632   : > { %p4997_p7 = scmp.ne.s32.totalorder %s6440_s16, %s4996_s28  ;;  %p5001_p10 = scmp.lt.u32.totalorder %s6440_s16, %s6526_s6 }
 0x633   : > { %p5002_p11 = scmp.lt.u32.totalorder %s5000_s18, %s4996_s28  ;;  %p5004_p13 = scmp.lt.u32.totalorder %s4996_s28, %s6440_s16 }
 0x634   : > { %p4998_p8 = pnand %p4997_p7, %p5170_p5 }
 0x635   : > { %p5003_p12 = por %p5002_p11, %p5001_p10 }
 0x636   : > { %p4999_p9 = pneg %p4998_p8 }
 0x637   : > { %p5005_p0 = por %p5004_p13, %p5003_p12 }
 0x639   : > { %p5006_p1 = pnand %p5005_p0, %p4999_p9 }
 0x63b   : > { %5009 = shalt.err (!%p5006_p1)
}
 0x63c   : > { %4416 = dma.vmem_to_hbm [thread:$0]  (%p5170_p5), %s6442_s1, 128, %s6440_s16, %s6455_s20  }
 0x63d   : > { %s5010_s17 = scalar_lea.vmem %s6450_s19, 128  ;;  %s5089_s23 = smov [#allocation9]  }
 0x63e   : > { %p5011_p2 = scmp.ne.s32.totalorder %s6450_s19, %s5010_s17  ;;  %s5014_s29 = sshll.u32 %s5089_s23, 4  ;;  %s5015_s29 = int_to_ptr.vmem [resolvable:$false] %s5014_s29 }
 0x63f   : > { %s5016_s2 = scalar_lea.vmem %s5015_s29, 256  ;;  %p5017_p7 = scmp.lt.s32.totalorder %s6450_s19, %s5015_s29 }
 0x640   : > { %p5012_p3 = pnand %p5011_p2, %p5170_p5  ;;  %p5018_p8 = scmp.lt.s32.totalorder %s5016_s2, %s5010_s17 }
 0x642   : > { %p5013_p4 = pneg %p5012_p3  ;;  %p5019_p9 = por %p5018_p8, %p5017_p7 }
 0x644   : > { %p5020_p10 = pnand %p5019_p9, %p5013_p4 }
 0x646   : > { %5023 = shalt.err (!%p5020_p10)
}
 0x647   : > { %s5024_s1 = scalar_lea.hbm %s6448_s22, 128  ;;  %s5028_s10 = scalar_lea.hbm %s6527_s7, 256 }
 0x648   : > { %p5025_p11 = scmp.ne.s32.totalorder %s6448_s22, %s5024_s1  ;;  %p5029_p0 = scmp.lt.u32.totalorder %s6448_s22, %s6527_s7 }
 0x649   : > { %p5030_p1 = scmp.lt.u32.totalorder %s5028_s10, %s5024_s1  ;;  %p5032_p3 = scmp.lt.u32.totalorder %s5024_s1, %s6448_s22 }
 0x64a   : > { %p5026_p12 = pnand %p5025_p11, %p5170_p5 }
 0x64b   : > { %p5031_p2 = por %p5030_p1, %p5029_p0 }
 0x64c   : > { %p5027_p13 = pneg %p5026_p12 }
 0x64d   : > { %p5033_p4 = por %p5032_p3, %p5031_p2 }
 0x64f   : > { %p5034_p7 = pnand %p5033_p4, %p5027_p13 }
 0x651   : > { %5037 = shalt.err (!%p5034_p7)
}
 0x652   : > { %4417 = dma.vmem_to_hbm [thread:$0]  (%p5170_p5), %s6450_s19, 128, %s6448_s22, %s6455_s20  }
 0x653 PF: > { %p4439_p8 = scmp.ge.s32.totalorder %s5080_s27, 2  ;;  %s3318_s21 = sand.u32 1, %s5068_s24  }
 0x654   : > { %s3319_s28 = scalar_lea.sflag [#allocation3], %s3318_s21 }
 0x655   : > { %p4424_p9 = pnand %p4439_p8, %p5174_p6 }
 0x657   : > { %5055 = dma.done.wait (!%p4424_p9), %s3319_s28, 128  }
 0x658   : > { %5057 = vsyncadd (!%p4424_p9), %s3319_s28, 4294967168  ;;  %s6545_s15 = sadd.s32 4294967294, %s5080_s27  }
 0x659   : > { %s3327_s9 = sand.u32 1, %s6545_s15  }
 0x65a   : > { %s3328_s18 = scalar_lea.sflag [#allocation5], %s3327_s9 }
 0x65b   : > { %5059 = dma.done.wait (!%p4424_p9), %s3328_s18, 256  }
 0x65c   : > { %5061 = vsyncadd (!%p4424_p9), %s3328_s18, 4294967040  ;;  %s3346_s11 = scalar_lea.sflag [#allocation8], %s3327_s9 }
 0x65d   : > { %5063 = dma.done.wait (!%p4424_p9), %s3346_s11, 256  }
 0x65e   : > { %5065 = vsyncadd (!%p4424_p9), %s3346_s11, 4294967040  ;;  %s6546_s19 = sld [smem:[#allocation13_spill]]  ;;  %p24_p5 = scmp.ge.s32.totalorder %s5155_s30, 4  }
 0x65f   : > { %s6547_s24 = smov %s5072_s25  ;;  %s6548_s25 = smov %s5076_s26 }
 0x660   : > { %s6550_s27 = smov %s5155_s30  ;;  %26 = sbr.rel (!%p24_p5) target bundleno = 12 (0xc), region = 141 }
 0x664   : > { %s6549_s26 = smov %s6546_s19 }
 0x667   :  { %3360 = vsyncpa [#allocation3], 1 }
 0x668   :  { %3362 = vsyncpa [#allocation3 + $0x1], 1 }
 0x669   :  { %3363 = vsyncpa [#allocation5], 1 }
 0x66a   :  { %3365 = vsyncpa [#allocation5 + $0x1], 1 }
 0x66b   :  { %3366 = vsyncpa [#allocation8], 1 }
 0x66c   :  { %3368 = vsyncpa [#allocation8 + $0x1], 1 }

</bundles_post_ra>
